<compile_context>
chip_gen: v5e
topology: v5e:2x2
jax: 0.10.0
libtpu: 0.0.40
codegen_flags: <defaults>
</compile_context>

<pallas_src>
import math
from functools import partial

import jax
import jax.numpy as jnp
from jax import lax
from jax.experimental import pallas as pl
from jax.experimental.pallas import tpu as pltpu


# ----------------------------- helpers -----------------------------

def _rms_norm(x, w, eps):
    var = jnp.mean(x * x, axis=-1, keepdims=True)
    return (x * lax.rsqrt(var + eps)) * w


def _rotate_half(x):
    half = x.shape[-1] // 2
    return jnp.concatenate([-x[..., half:], x[..., :half]], axis=-1)


def _rope_tables(seq_len, head_dim, rope_theta):
    inv_freq = 1.0 / (rope_theta ** (jnp.arange(0, head_dim, 2,
                                                 dtype=jnp.float32) / head_dim))
    pos = jnp.arange(seq_len, dtype=jnp.float32)
    freqs = pos[:, None] * inv_freq[None, :]              # (S, hd/2)
    emb = jnp.concatenate([freqs, freqs], axis=-1)        # (S, hd)
    return jnp.cos(emb), jnp.sin(emb)


# ----------------------------- fused Pallas kernel -----------------------------

def llama_fused_kernel(x_ref, cos_ref, sin_ref,
                       ln1_ref, wqkv_ref, wo_ref,
                       ln2_ref, wgu_ref, wd_ref,
                       lnf_ref, wlm_ref,
                       o_ref, hf_ref, *, num_heads, head_dim, eps):
    j = pl.program_id(1)          # vocab-tile index (innermost grid axis)

    # The full decoder block + final RMSNorm runs once per batch element
    # (on the first vocab tile) and is stashed in VMEM scratch.
    @pl.when(j == 0)
    def _compute_hidden():
        x = x_ref[...]                          # (S, H) float32
        S, H = x.shape
        I = wd_ref.shape[0]
        cos = cos_ref[...][None, :, :]          # (1, S, hd), broadcast over heads
        sin = sin_ref[...][None, :, :]          # sign-folded sin table

        # ---- input RMSNorm + fused QKV projection (bf16 MXU, f32 acc) ----
        xn = _rms_norm(x, ln1_ref[...], eps).astype(jnp.bfloat16)
        qkv = jnp.dot(xn, wqkv_ref[...],
                      preferred_element_type=jnp.float32)          # (S, 3H)

        # head_dim == 128 == lane width, so these slices are lane-aligned views.
        def heads(t):                             # (S, H) -> (nH, S, hd)
            return jnp.concatenate(
                [t[None, :, h * head_dim:(h + 1) * head_dim]
                 for h in range(num_heads)], axis=0)

        q3 = heads(qkv[:, :H])                    # 1/sqrt(hd) folded into wq
        k3 = heads(qkv[:, H:2 * H])
        v3 = heads(qkv[:, 2 * H:]).astype(jnp.bfloat16)

        # ---- RoPE: rotate_half == roll(hd/2) * sign; sign folded into sin ----
        half = head_dim // 2
        q3 = (q3 * cos + pltpu.roll(q3, shift=half, axis=2) * sin).astype(jnp.bfloat16)
        k3 = (k3 * cos + pltpu.roll(k3, shift=half, axis=2) * sin).astype(jnp.bfloat16)

        # ---- multi-head attention, batched over the head axis ----
        s = lax.dot_general(q3, k3, (((2,), (2,)), ((0,), (0,))),
                            preferred_element_type=jnp.float32)     # (nH, S, S)
        row = lax.broadcasted_iota(jnp.int32, s.shape, 1)
        col = lax.broadcasted_iota(jnp.int32, s.shape, 2)
        s = jnp.where(col <= row, s, jnp.float32(-1e30))            # causal, where-based
        s = s - jnp.max(s, axis=-1, keepdims=True)
        p = jnp.exp(s)
        p = p * pl.reciprocal(jnp.sum(p, axis=-1, keepdims=True), approx=True)
        a3 = lax.dot_general(p.astype(jnp.bfloat16), v3,
                             (((2,), (1,)), ((0,), (0,))),
                             preferred_element_type=jnp.float32)     # (nH, S, hd)

        # head-merge fused into o_proj: per-head (S,hd)x(hd,H), summed over heads
        proj = lax.dot_general(a3.astype(jnp.bfloat16), wo_ref[...],
                               (((2,), (1,)), ((0,), (0,))),
                               preferred_element_type=jnp.float32)   # (nH, S, H)
        attn = proj[0]
        for h in range(1, num_heads):
            attn = attn + proj[h]

        h1 = x + attn

        # ---- post-attention RMSNorm + SwiGLU MLP (fused gate/up) ----
        hn = _rms_norm(h1, ln2_ref[...], eps).astype(jnp.bfloat16)
        gu = jnp.dot(hn, wgu_ref[...], preferred_element_type=jnp.float32)   # (S, 2I)
        g = gu[:, :I]
        u = gu[:, I:]
        act = (g * jax.nn.sigmoid(g) * u).astype(jnp.bfloat16)
        h2 = h1 + jnp.dot(act, wd_ref[...], preferred_element_type=jnp.float32)

        # ---- final RMSNorm, stashed for all vocab tiles ----
        hf_ref[...] = _rms_norm(h2, lnf_ref[...], eps).astype(jnp.bfloat16)

    # ---- streamed lm_head: one 128-aligned vocab tile per grid step ----
    o_ref[...] = jnp.dot(hf_ref[...], wlm_ref[...],
                         preferred_element_type=jnp.float32)


# ----------------------------- wrapper -----------------------------

def llama_forward(params, input_ids, cfg, *, vocab_tile=512):
    H = cfg["hidden_size"]
    nH = cfg["num_attention_heads"]
    hd = H // nH
    I = cfg["intermediate_size"]
    V = cfg["vocab_size"]
    eps = cfg["rms_norm_eps"]
    B, S = input_ids.shape

    assert hd % 128 == 0, "head_dim must be a multiple of the 128-lane width"
    assert H % 128 == 0 and I % 128 == 0 and S % 8 == 0
    TN = min(vocab_tile, V)
    assert V % TN == 0
    nV = V // TN

    # embedding lookup (gather stays in plain JAX)
    x = params["emb"][input_ids].astype(jnp.float32)               # (B, S, H)

    # RoPE tables kept at (S, hd); fold the rotate_half sign into sin.
    cos, sin = _rope_tables(S, hd, cfg["rope_theta"])
    sign = jnp.concatenate([-jnp.ones((hd // 2,), jnp.float32),
                            jnp.ones((hd // 2,), jnp.float32)])
    sin_signed = sin * sign[None, :]

    # Reference quirk: only the LAST layer reaches the head.
    lp = params["layers"][-1]
    wq_scaled = lp["wq"] * (1.0 / math.sqrt(hd))                   # fold attn scale
    w_qkv = jnp.concatenate([wq_scaled, lp["wk"], lp["wv"]],
                            axis=1).astype(jnp.bfloat16)           # (H, 3H)
    wo3 = lp["wo"].reshape(nH, hd, H).astype(jnp.bfloat16)         # per-head o_proj
    w_gu = jnp.concatenate([lp["wg"], lp["wu"]],
                           axis=1).astype(jnp.bfloat16)            # (H, 2I)
    wd = lp["wd"].astype(jnp.bfloat16)                             # (I, H)
    w_lm = params["w_lm"].astype(jnp.bfloat16)                     # (H, V)

    kern = partial(llama_fused_kernel, num_heads=nH, head_dim=hd, eps=eps)

    def const(shape):
        return pl.BlockSpec(shape, lambda b, j: (0,) * len(shape))

    # cost estimate (lets XLA overlap the gather and neighbours with the kernel)
    flops = int(B * (2 * S * H * 3 * H          # qkv
                     + 4 * nH * S * S * hd      # scores + p@v
                     + 2 * S * H * H            # o_proj
                     + 6 * S * H * I            # gate/up + down
                     + 2 * S * H * V))          # lm_head
    transcendentals = int(B * (nH * S * S + S * I))
    bytes_accessed = int(
        x.size * 4
        + sum(a.size * a.dtype.itemsize for a in
              (cos, sin_signed, lp["ln1"], w_qkv, wo3, lp["ln2"], w_gu, wd,
               params["ln_f"], w_lm))
        + B * S * V * 4)

    # VMEM budget: double-buffered resident blocks + headroom.
    weight_resident = sum(a.size * a.dtype.itemsize for a in
                          (cos, sin_signed, lp["ln1"], w_qkv, wo3, lp["ln2"],
                           w_gu, wd, params["ln_f"]))
    block_resident = S * H * 4 + H * TN * 2 + S * TN * 4
    vmem_limit = int(min(2 * (weight_resident + block_resident) + (16 << 20),
                         100 << 20))

    logits = pl.pallas_call(
        kern,
        out_shape=jax.ShapeDtypeStruct((B, S, V), jnp.float32),
        grid=(B, nV),
        in_specs=[
            pl.BlockSpec((None, S, H), lambda b, j: (b, 0, 0)),   # x (per-batch block)
            const((S, hd)),                                       # cos
            const((S, hd)),                                       # sin (sign-folded)
            const((1, H)),                                        # ln1
            const((H, 3 * H)),                                    # [wq/sqrt(hd), wk, wv]
            const((nH, hd, H)),                                   # wo per head
            const((1, H)),                                        # ln2
            const((H, 2 * I)),                                    # [wg, wu]
            const((I, H)),                                        # wd
            const((1, H)),                                        # ln_f
            pl.BlockSpec((H, TN), lambda b, j: (0, j)),           # lm_head vocab tile
        ],
        out_specs=pl.BlockSpec((None, S, TN), lambda b, j: (b, 0, j)),
        scratch_shapes=[pltpu.VMEM((S, H), jnp.bfloat16)],        # hf stash
        compiler_params=pltpu.CompilerParams(
            dimension_semantics=("parallel", "arbitrary"),
            vmem_limit_bytes=vmem_limit),
        cost_estimate=pl.CostEstimate(flops=flops,
                                      transcendentals=transcendentals,
                                      bytes_accessed=bytes_accessed),
    )(x, cos, sin_signed,
      lp["ln1"], w_qkv, wo3, lp["ln2"], w_gu, wd,
      params["ln_f"], w_lm)

    # TODO(synk): labels / CrossEntropyLoss branch not implemented (labels=None path only).
    return logits


# ----------------------------- pure-JAX fp32 reference -----------------------------

def ref_forward(params, input_ids, cfg):
    H = cfg["hidden_size"]
    nH = cfg["num_attention_heads"]
    hd = H // nH
    eps = cfg["rms_norm_eps"]
    B, S = input_ids.shape
    P = lax.Precision.HIGHEST

    x = params["emb"][input_ids].astype(jnp.float32)
    cos, sin = _rope_tables(S, hd, cfg["rope_theta"])              # (S, hd)

    # reference-style causal mask
    min_v = jnp.finfo(jnp.float32).min
    cm = jnp.triu(jnp.full((S, S + 1), min_v, jnp.float32), k=1)
    cm = cm * (jnp.arange(S + 1)[None, :] >
               jnp.arange(S)[:, None]).astype(jnp.float32)
    mask = cm[:, :S]

    def rms(v, w):
        return w * (v * lax.rsqrt(jnp.mean(v * v, -1, keepdims=True) + eps))

    def split_heads(t):
        return t.reshape(B, S, nH, hd).transpose(0, 2, 1, 3)

    out = x
    for lp in params["layers"]:
        h = x                               # reference loop quirk: always embeddings
        xn = rms(h, lp["ln1"])
        q = split_heads(jnp.einsum('bsh,hd->bsd', xn, lp["wq"], precision=P))
        k = split_heads(jnp.einsum('bsh,hd->bsd', xn, lp["wk"], precision=P))
        v = split_heads(jnp.einsum('bsh,hd->bsd', xn, lp["wv"], precision=P))
        q = q * cos + _rotate_half(q) * sin
        k = k * cos + _rotate_half(k) * sin
        s = jnp.einsum('bnqd,bnkd->bnqk', q, k, precision=P) / math.sqrt(hd) + mask
        p = jax.nn.softmax(s, axis=-1)
        a = jnp.einsum('bnqk,bnkd->bnqd', p, v, precision=P)
        a = a.transpose(0, 2, 1, 3).reshape(B, S, H)
        a = jnp.einsum('bsh,ho->bso', a, lp["wo"], precision=P)
        h1 = h + a
        hn = rms(h1, lp["ln2"])
        g = jnp.einsum('bsh,hi->bsi', hn, lp["wg"], precision=P)
        u = jnp.einsum('bsh,hi->bsi', hn, lp["wu"], precision=P)
        d = jnp.einsum('bsi,ih->bsh', jax.nn.silu(g) * u, lp["wd"], precision=P)
        out = h1 + d

    hf = rms(out, params["ln_f"])
    return jnp.einsum('bsh,hv->bsv', hf, params["w_lm"], precision=P)


# ----------------------------- parameter init -----------------------------

def init_params(key, cfg):
    H = cfg["hidden_size"]
    I = cfg["intermediate_size"]
    V = cfg["vocab_size"]
    std = cfg["initializer_range"]
    n_layers = cfg["num_hidden_layers"]

    def normal(k, shape):
        return std * jax.random.normal(k, shape, dtype=jnp.float32)

    k_emb, k_lm, k_layers = jax.random.split(key, 3)
    layer_keys = jax.random.split(k_layers, n_layers)
    layers = []
    for lk in layer_keys:
        ks = jax.random.split(lk, 7)
        layers.append(dict(
            ln1=jnp.ones((1, H), jnp.float32),
            wq=normal(ks[0], (H, H)),
            wk=normal(ks[1], (H, H)),
            wv=normal(ks[2], (H, H)),
            wo=normal(ks[3], (H, H)),
            ln2=jnp.ones((1, H), jnp.float32),
            wg=normal(ks[4], (H, I)),
            wu=normal(ks[5], (H, I)),
            wd=normal(ks[6], (I, H)),
        ))
    return dict(
        emb=normal(k_emb, (V, H)),
        layers=layers,
        ln_f=jnp.ones((1, H), jnp.float32),
        w_lm=normal(k_lm, (H, V)),
    )


# ----------------------------- main -----------------------------

if __name__ == "__main__":
    cfg = dict(
        vocab_size=1024,
        hidden_size=256,
        intermediate_size=512,
        num_hidden_layers=2,
        num_attention_heads=2,     # head_dim = 128 = TPU lane width (as in real Llama)
        rms_norm_eps=1e-6,
        rope_theta=10000.0,
        initializer_range=0.02,
    )
    B, S = 2, 16

    key = jax.random.PRNGKey(0)
    k_params, k_ids = jax.random.split(key)
    params = init_params(k_params, cfg)
    input_ids = jax.random.randint(k_ids, (B, S), 0, cfg["vocab_size"],
                                   dtype=jnp.int32)

    forward = jax.jit(lambda p, ids: llama_forward(p, ids, cfg))
    logits = jax.block_until_ready(forward(params, input_ids))

    assert logits.shape == (B, S, cfg["vocab_size"])
    assert bool(jnp.all(jnp.isfinite(logits)))

    ref = ref_forward(params, input_ids, cfg)
    max_err = float(jnp.max(jnp.abs(logits - ref)))
    assert bool(jnp.allclose(logits, ref, atol=3e-2, rtol=3e-2)), \
        f"max abs err {max_err}"

    print("KERNEL_OK")
</pallas_src>

<mosaic_0001>
module attributes {stable_mosaic.version = 11 : i64} {
  func.func @llama_fused_kernel(%arg0: i32, %arg1: i32, %arg2: memref<1x16x256xf32, #tpu.memory_space<vmem>>, %arg3: memref<16x128xf32, #tpu.memory_space<vmem>>, %arg4: memref<16x128xf32, #tpu.memory_space<vmem>>, %arg5: memref<1x256xf32, #tpu.memory_space<vmem>>, %arg6: memref<256x768xbf16, #tpu.memory_space<vmem>>, %arg7: memref<2x128x256xbf16, #tpu.memory_space<vmem>>, %arg8: memref<1x256xf32, #tpu.memory_space<vmem>>, %arg9: memref<256x1024xbf16, #tpu.memory_space<vmem>>, %arg10: memref<512x256xbf16, #tpu.memory_space<vmem>>, %arg11: memref<1x256xf32, #tpu.memory_space<vmem>>, %arg12: memref<256x512xbf16, #tpu.memory_space<vmem>>, %arg13: memref<1x16x512xf32, #tpu.memory_space<vmem>>, %arg14: memref<16x256xbf16, #tpu.memory_space<vmem>>) attributes {dimension_semantics = [#tpu.dimension_semantics<parallel>, #tpu.dimension_semantics<arbitrary>], iteration_bounds = array<i64: 2, 2>, scalar_prefetch = 0 : i64, scratch_operands = 1 : i64, tpu.core_type = #tpu.core_type<tc>, window_params = [{transform_indices = @transform_0, window_bounds = array<i64: 1, 16, 256>}, {pipeline_mode = #tpu.pipeline_mode<synchronous>, transform_indices = @transform_1, window_bounds = array<i64: 16, 128>}, {pipeline_mode = #tpu.pipeline_mode<synchronous>, transform_indices = @transform_2, window_bounds = array<i64: 16, 128>}, {pipeline_mode = #tpu.pipeline_mode<synchronous>, transform_indices = @transform_3, window_bounds = array<i64: 1, 256>}, {pipeline_mode = #tpu.pipeline_mode<synchronous>, transform_indices = @transform_4, window_bounds = array<i64: 256, 768>}, {pipeline_mode = #tpu.pipeline_mode<synchronous>, transform_indices = @transform_5, window_bounds = array<i64: 2, 128, 256>}, {pipeline_mode = #tpu.pipeline_mode<synchronous>, transform_indices = @transform_6, window_bounds = array<i64: 1, 256>}, {pipeline_mode = #tpu.pipeline_mode<synchronous>, transform_indices = @transform_7, window_bounds = array<i64: 256, 1024>}, {pipeline_mode = #tpu.pipeline_mode<synchronous>, transform_indices = @transform_8, window_bounds = array<i64: 512, 256>}, {pipeline_mode = #tpu.pipeline_mode<synchronous>, transform_indices = @transform_9, window_bounds = array<i64: 1, 256>}, {transform_indices = @transform_10, window_bounds = array<i64: 256, 512>}, {transform_indices = @transform_11, window_bounds = array<i64: 1, 16, 512>}]} {
    %c0_i32 = arith.constant 0 : i32
    %0 = arith.cmpi eq, %arg1, %c0_i32 : i32
    %1 = arith.extui %0 : i1 to i32
    %c0_i32_0 = arith.constant 0 : i32
    %2 = arith.cmpi ne, %1, %c0_i32_0 : i32
    scf.if %2 {
      %c0_7 = arith.constant 0 : index
      %c0_8 = arith.constant 0 : index
      %c0_9 = arith.constant 0 : index
      %9 = vector.load %arg2[%c0_7, %c0_8, %c0_9] : memref<1x16x256xf32, #tpu.memory_space<vmem>>, vector<1x16x256xf32>
      %10 = vector.shape_cast %9 : vector<1x16x256xf32> to vector<16x256xf32>
      %c0_10 = arith.constant 0 : index
      %c0_11 = arith.constant 0 : index
      %11 = vector.load %arg3[%c0_10, %c0_11] : memref<16x128xf32, #tpu.memory_space<vmem>>, vector<16x128xf32>
      %12 = vector.shape_cast %11 : vector<16x128xf32> to vector<1x16x128xf32>
      %c0_12 = arith.constant 0 : index
      %c0_13 = arith.constant 0 : index
      %13 = vector.load %arg4[%c0_12, %c0_13] : memref<16x128xf32, #tpu.memory_space<vmem>>, vector<16x128xf32>
      %14 = vector.shape_cast %13 : vector<16x128xf32> to vector<1x16x128xf32>
      %c0_14 = arith.constant 0 : index
      %c0_15 = arith.constant 0 : index
      %15 = vector.load %arg5[%c0_14, %c0_15] : memref<1x256xf32, #tpu.memory_space<vmem>>, vector<1x256xf32>
      %16 = arith.mulf %10, %10 : vector<16x256xf32>
      %cst_16 = arith.constant dense<0.000000e+00> : vector<16xf32>
      %17 = vector.multi_reduction <add>, %16, %cst_16 [1] : vector<16x256xf32> to vector<16xf32>
      %18 = vector.shape_cast %17 : vector<16xf32> to vector<16x1xf32>
      %cst_17 = arith.constant 2.560000e+02 : f32
      %19 = vector.broadcast %cst_17 : f32 to vector<16x1xf32>
      %20 = arith.divf %18, %19 : vector<16x1xf32>
      %cst_18 = arith.constant 9.99999997E-7 : f32
      %21 = vector.broadcast %cst_18 : f32 to vector<16x1xf32>
      %22 = arith.addf %20, %21 : vector<16x1xf32>
      %23 = math.rsqrt %22 : vector<16x1xf32>
      %24 = vector.broadcast %23 : vector<16x1xf32> to vector<16x256xf32>
      %25 = arith.mulf %10, %24 : vector<16x256xf32>
      %26 = vector.broadcast %15 : vector<1x256xf32> to vector<16x256xf32>
      %27 = arith.mulf %25, %26 : vector<16x256xf32>
      %28 = arith.truncf %27 : vector<16x256xf32> to vector<16x256xbf16>
      %c0_19 = arith.constant 0 : index
      %c0_20 = arith.constant 0 : index
      %29 = vector.load %arg6[%c0_19, %c0_20] : memref<256x768xbf16, #tpu.memory_space<vmem>>, vector<256x768xbf16>
      %cst_21 = arith.constant dense<0.000000e+00> : vector<16x768xf32>
      %30 = tpu.matmul %28, %29, %cst_21 {dimension_numbers = #tpu.dot_dimension_numbers<[1], [0], [0], [1], [0, 0, 1, 1], [], []>} : vector<16x256xbf16>, vector<256x768xbf16>, vector<16x768xf32> -> vector<16x768xf32>
      %31 = vector.extract_strided_slice %30 {offsets = [0, 0], sizes = [16, 256], strides = [1, 1]} : vector<16x768xf32> to vector<16x256xf32>
      %32 = vector.extract_strided_slice %31 {offsets = [0, 0], sizes = [16, 128], strides = [1, 1]} : vector<16x256xf32> to vector<16x128xf32>
      %33 = vector.shape_cast %32 : vector<16x128xf32> to vector<1x16x128xf32>
      %34 = vector.extract_strided_slice %31 {offsets = [0, 128], sizes = [16, 128], strides = [1, 1]} : vector<16x256xf32> to vector<16x128xf32>
      %35 = vector.shape_cast %34 : vector<16x128xf32> to vector<1x16x128xf32>
      %36 = tpu.concatenate %33, %35 in 0 : vector<1x16x128xf32>, vector<1x16x128xf32> -> vector<2x16x128xf32>
      %37 = vector.extract_strided_slice %30 {offsets = [0, 256], sizes = [16, 256], strides = [1, 1]} : vector<16x768xf32> to vector<16x256xf32>
      %38 = vector.extract_strided_slice %37 {offsets = [0, 0], sizes = [16, 128], strides = [1, 1]} : vector<16x256xf32> to vector<16x128xf32>
      %39 = vector.shape_cast %38 : vector<16x128xf32> to vector<1x16x128xf32>
      %40 = vector.extract_strided_slice %37 {offsets = [0, 128], sizes = [16, 128], strides = [1, 1]} : vector<16x256xf32> to vector<16x128xf32>
      %41 = vector.shape_cast %40 : vector<16x128xf32> to vector<1x16x128xf32>
      %42 = tpu.concatenate %39, %41 in 0 : vector<1x16x128xf32>, vector<1x16x128xf32> -> vector<2x16x128xf32>
      %43 = vector.extract_strided_slice %30 {offsets = [0, 512], sizes = [16, 256], strides = [1, 1]} : vector<16x768xf32> to vector<16x256xf32>
      %44 = vector.extract_strided_slice %43 {offsets = [0, 0], sizes = [16, 128], strides = [1, 1]} : vector<16x256xf32> to vector<16x128xf32>
      %45 = vector.shape_cast %44 : vector<16x128xf32> to vector<1x16x128xf32>
      %46 = vector.extract_strided_slice %43 {offsets = [0, 128], sizes = [16, 128], strides = [1, 1]} : vector<16x256xf32> to vector<16x128xf32>
      %47 = vector.shape_cast %46 : vector<16x128xf32> to vector<1x16x128xf32>
      %48 = tpu.concatenate %45, %47 in 0 : vector<1x16x128xf32>, vector<1x16x128xf32> -> vector<2x16x128xf32>
      %49 = arith.truncf %48 : vector<2x16x128xf32> to vector<2x16x128xbf16>
      %50 = vector.broadcast %12 : vector<1x16x128xf32> to vector<2x16x128xf32>
      %51 = arith.mulf %36, %50 : vector<2x16x128xf32>
      %c64_i32 = arith.constant 64 : i32
      %52 = tpu.dynamic_rotate %36 by %c64_i32 dim 2 : vector<2x16x128xf32>, i32 -> vector<2x16x128xf32>
      %53 = vector.broadcast %14 : vector<1x16x128xf32> to vector<2x16x128xf32>
      %54 = arith.mulf %52, %53 : vector<2x16x128xf32>
      %55 = arith.addf %51, %54 : vector<2x16x128xf32>
      %56 = arith.truncf %55 : vector<2x16x128xf32> to vector<2x16x128xbf16>
      %57 = vector.broadcast %12 : vector<1x16x128xf32> to vector<2x16x128xf32>
      %58 = arith.mulf %42, %57 : vector<2x16x128xf32>
      %c64_i32_22 = arith.constant 64 : i32
      %59 = tpu.dynamic_rotate %42 by %c64_i32_22 dim 2 : vector<2x16x128xf32>, i32 -> vector<2x16x128xf32>
      %60 = vector.broadcast %14 : vector<1x16x128xf32> to vector<2x16x128xf32>
      %61 = arith.mulf %59, %60 : vector<2x16x128xf32>
      %62 = arith.addf %58, %61 : vector<2x16x128xf32>
      %63 = arith.truncf %62 : vector<2x16x128xf32> to vector<2x16x128xbf16>
      %cst_23 = arith.constant dense<0.000000e+00> : vector<2x16x16xf32>
      %64 = tpu.matmul %56, %63, %cst_23 {dimension_numbers = #tpu.dot_dimension_numbers<[2], [2], [1], [1], [0, 0, 0, 1, 1, 1], [0], [0]>} : vector<2x16x128xbf16>, vector<2x16x128xbf16>, vector<2x16x16xf32> -> vector<2x16x16xf32>
      %65 = tpu.iota {dimensions = array<i32: 1>} : vector<2x16x16xi32>
      %66 = tpu.iota {dimensions = array<i32: 2>} : vector<2x16x16xi32>
      %67 = arith.cmpi sle, %66, %65 : vector<2x16x16xi32>
      %cst_24 = arith.constant -1.000000e+30 : f32
      %68 = vector.broadcast %cst_24 : f32 to vector<2x16x16xf32>
      %69 = arith.select %67, %64, %68 : vector<2x16x16xi1>, vector<2x16x16xf32>
      %cst_25 = arith.constant dense<0xFF800000> : vector<2x16xf32>
      %70 = vector.multi_reduction <maximumf>, %69, %cst_25 [2] : vector<2x16x16xf32> to vector<2x16xf32>
      %71 = vector.shape_cast %70 : vector<2x16xf32> to vector<2x16x1xf32>
      %72 = vector.broadcast %71 : vector<2x16x1xf32> to vector<2x16x16xf32>
      %73 = arith.subf %69, %72 : vector<2x16x16xf32>
      %74 = math.exp %73 : vector<2x16x16xf32>
      %cst_26 = arith.constant dense<0.000000e+00> : vector<2x16xf32>
      %75 = vector.multi_reduction <add>, %74, %cst_26 [2] : vector<2x16x16xf32> to vector<2x16xf32>
      %76 = vector.shape_cast %75 : vector<2x16xf32> to vector<2x16x1xf32>
      %77 = tpu.reciprocal %76 {approx = true} : vector<2x16x1xf32> -> vector<2x16x1xf32>
      %78 = vector.broadcast %77 : vector<2x16x1xf32> to vector<2x16x16xf32>
      %79 = arith.mulf %74, %78 : vector<2x16x16xf32>
      %80 = arith.truncf %79 : vector<2x16x16xf32> to vector<2x16x16xbf16>
      %cst_27 = arith.constant dense<0.000000e+00> : vector<2x16x128xf32>
      %81 = tpu.matmul %80, %49, %cst_27 {dimension_numbers = #tpu.dot_dimension_numbers<[2], [1], [1], [2], [0, 0, 0, 1, 1, 2], [0], [0]>} : vector<2x16x16xbf16>, vector<2x16x128xbf16>, vector<2x16x128xf32> -> vector<2x16x128xf32>
      %82 = arith.truncf %81 : vector<2x16x128xf32> to vector<2x16x128xbf16>
      %c0_28 = arith.constant 0 : index
      %c0_29 = arith.constant 0 : index
      %c0_30 = arith.constant 0 : index
      %83 = vector.load %arg7[%c0_28, %c0_29, %c0_30] : memref<2x128x256xbf16, #tpu.memory_space<vmem>>, vector<2x128x256xbf16>
      %cst_31 = arith.constant dense<0.000000e+00> : vector<2x16x256xf32>
      %84 = tpu.matmul %82, %83, %cst_31 {dimension_numbers = #tpu.dot_dimension_numbers<[2], [1], [1], [2], [0, 0, 0, 1, 1, 2], [0], [0]>} : vector<2x16x128xbf16>, vector<2x128x256xbf16>, vector<2x16x256xf32> -> vector<2x16x256xf32>
      %85 = vector.extract_strided_slice %84 {offsets = [0, 0, 0], sizes = [1, 16, 256], strides = [1, 1, 1]} : vector<2x16x256xf32> to vector<1x16x256xf32>
      %86 = vector.shape_cast %85 : vector<1x16x256xf32> to vector<16x256xf32>
      %87 = vector.extract_strided_slice %84 {offsets = [1, 0, 0], sizes = [1, 16, 256], strides = [1, 1, 1]} : vector<2x16x256xf32> to vector<1x16x256xf32>
      %88 = vector.shape_cast %87 : vector<1x16x256xf32> to vector<16x256xf32>
      %89 = arith.addf %86, %88 : vector<16x256xf32>
      %90 = arith.addf %10, %89 : vector<16x256xf32>
      %c0_32 = arith.constant 0 : index
      %c0_33 = arith.constant 0 : index
      %91 = vector.load %arg8[%c0_32, %c0_33] : memref<1x256xf32, #tpu.memory_space<vmem>>, vector<1x256xf32>
      %92 = arith.mulf %90, %90 : vector<16x256xf32>
      %cst_34 = arith.constant dense<0.000000e+00> : vector<16xf32>
      %93 = vector.multi_reduction <add>, %92, %cst_34 [1] : vector<16x256xf32> to vector<16xf32>
      %94 = vector.shape_cast %93 : vector<16xf32> to vector<16x1xf32>
      %cst_35 = arith.constant 2.560000e+02 : f32
      %95 = vector.broadcast %cst_35 : f32 to vector<16x1xf32>
      %96 = arith.divf %94, %95 : vector<16x1xf32>
      %cst_36 = arith.constant 9.99999997E-7 : f32
      %97 = vector.broadcast %cst_36 : f32 to vector<16x1xf32>
      %98 = arith.addf %96, %97 : vector<16x1xf32>
      %99 = math.rsqrt %98 : vector<16x1xf32>
      %100 = vector.broadcast %99 : vector<16x1xf32> to vector<16x256xf32>
      %101 = arith.mulf %90, %100 : vector<16x256xf32>
      %102 = vector.broadcast %91 : vector<1x256xf32> to vector<16x256xf32>
      %103 = arith.mulf %101, %102 : vector<16x256xf32>
      %104 = arith.truncf %103 : vector<16x256xf32> to vector<16x256xbf16>
      %c0_37 = arith.constant 0 : index
      %c0_38 = arith.constant 0 : index
      %105 = vector.load %arg9[%c0_37, %c0_38] : memref<256x1024xbf16, #tpu.memory_space<vmem>>, vector<256x1024xbf16>
      %cst_39 = arith.constant dense<0.000000e+00> : vector<16x1024xf32>
      %106 = tpu.matmul %104, %105, %cst_39 {dimension_numbers = #tpu.dot_dimension_numbers<[1], [0], [0], [1], [0, 0, 1, 1], [], []>} : vector<16x256xbf16>, vector<256x1024xbf16>, vector<16x1024xf32> -> vector<16x1024xf32>
      %107 = vector.extract_strided_slice %106 {offsets = [0, 0], sizes = [16, 512], strides = [1, 1]} : vector<16x1024xf32> to vector<16x512xf32>
      %108 = vector.extract_strided_slice %106 {offsets = [0, 512], sizes = [16, 512], strides = [1, 1]} : vector<16x1024xf32> to vector<16x512xf32>
      %109 = arith.negf %107 : vector<16x512xf32>
      %110 = math.exp %109 : vector<16x512xf32>
      %cst_40 = arith.constant 1.000000e+00 : f32
      %111 = vector.broadcast %cst_40 : f32 to vector<16x512xf32>
      %112 = arith.addf %111, %110 : vector<16x512xf32>
      %113 = arith.divf %111, %112 : vector<16x512xf32>
      %114 = arith.mulf %107, %113 : vector<16x512xf32>
      %115 = arith.mulf %114, %108 : vector<16x512xf32>
      %116 = arith.truncf %115 : vector<16x512xf32> to vector<16x512xbf16>
      %c0_41 = arith.constant 0 : index
      %c0_42 = arith.constant 0 : index
      %117 = vector.load %arg10[%c0_41, %c0_42] : memref<512x256xbf16, #tpu.memory_space<vmem>>, vector<512x256xbf16>
      %cst_43 = arith.constant dense<0.000000e+00> : vector<16x256xf32>
      %118 = tpu.matmul %116, %117, %cst_43 {dimension_numbers = #tpu.dot_dimension_numbers<[1], [0], [0], [1], [0, 0, 1, 1], [], []>} : vector<16x512xbf16>, vector<512x256xbf16>, vector<16x256xf32> -> vector<16x256xf32>
      %119 = arith.addf %90, %118 : vector<16x256xf32>
      %c0_44 = arith.constant 0 : index
      %c0_45 = arith.constant 0 : index
      %120 = vector.load %arg11[%c0_44, %c0_45] : memref<1x256xf32, #tpu.memory_space<vmem>>, vector<1x256xf32>
      %121 = arith.mulf %119, %119 : vector<16x256xf32>
      %cst_46 = arith.constant dense<0.000000e+00> : vector<16xf32>
      %122 = vector.multi_reduction <add>, %121, %cst_46 [1] : vector<16x256xf32> to vector<16xf32>
      %123 = vector.shape_cast %122 : vector<16xf32> to vector<16x1xf32>
      %cst_47 = arith.constant 2.560000e+02 : f32
      %124 = vector.broadcast %cst_47 : f32 to vector<16x1xf32>
      %125 = arith.divf %123, %124 : vector<16x1xf32>
      %cst_48 = arith.constant 9.99999997E-7 : f32
      %126 = vector.broadcast %cst_48 : f32 to vector<16x1xf32>
      %127 = arith.addf %125, %126 : vector<16x1xf32>
      %128 = math.rsqrt %127 : vector<16x1xf32>
      %129 = vector.broadcast %128 : vector<16x1xf32> to vector<16x256xf32>
      %130 = arith.mulf %119, %129 : vector<16x256xf32>
      %131 = vector.broadcast %120 : vector<1x256xf32> to vector<16x256xf32>
      %132 = arith.mulf %130, %131 : vector<16x256xf32>
      %133 = arith.truncf %132 : vector<16x256xf32> to vector<16x256xbf16>
      %c0_49 = arith.constant 0 : index
      %c0_50 = arith.constant 0 : index
      %134 = vector.load %arg14[%c0_49, %c0_50] : memref<16x256xbf16, #tpu.memory_space<vmem>>, vector<16x256xbf16>
      tpu.vector_store %arg14[%c0_49, %c0_50], %133 {strides = array<i32>} : memref<16x256xbf16, #tpu.memory_space<vmem>>, vector<16x256xbf16>,
    } else {
    }
    %c0 = arith.constant 0 : index
    %c0_1 = arith.constant 0 : index
    %3 = vector.load %arg14[%c0, %c0_1] : memref<16x256xbf16, #tpu.memory_space<vmem>>, vector<16x256xbf16>
    %c0_2 = arith.constant 0 : index
    %c0_3 = arith.constant 0 : index
    %4 = vector.load %arg12[%c0_2, %c0_3] : memref<256x512xbf16, #tpu.memory_space<vmem>>, vector<256x512xbf16>
    %cst = arith.constant dense<0.000000e+00> : vector<16x512xf32>
    %5 = tpu.matmul %3, %4, %cst {dimension_numbers = #tpu.dot_dimension_numbers<[1], [0], [0], [1], [0, 0, 1, 1], [], []>} : vector<16x256xbf16>, vector<256x512xbf16>, vector<16x512xf32> -> vector<16x512xf32>
    %c0_4 = arith.constant 0 : index
    %c0_5 = arith.constant 0 : index
    %c0_6 = arith.constant 0 : index
    %6 = vector.load %arg13[%c0_4, %c0_5, %c0_6] : memref<1x16x512xf32, #tpu.memory_space<vmem>>, vector<1x16x512xf32>
    %7 = vector.shape_cast %6 : vector<1x16x512xf32> to vector<16x512xf32>
    %8 = vector.shape_cast %5 : vector<16x512xf32> to vector<1x16x512xf32>
    tpu.vector_store %arg13[%c0_4, %c0_5, %c0_6], %8 {strides = array<i32>} : memref<1x16x512xf32, #tpu.memory_space<vmem>>, vector<1x16x512xf32>,
    return
  }
  func.func @transform_0(%arg0: i32, %arg1: i32) -> (i32, i32, i32) {
    %c0_i32 = arith.constant 0 : i32
    %c0_i32_0 = arith.constant 0 : i32
    %c0_i32_1 = arith.constant 0 : i32
    return %arg0, %c0_i32, %c0_i32_0 : i32, i32, i32
  }
  func.func @transform_1(%arg0: i32, %arg1: i32) -> (i32, i32) {
    %c0_i32 = arith.constant 0 : i32
    %c0_i32_0 = arith.constant 0 : i32
    %c0_i32_1 = arith.constant 0 : i32
    return %c0_i32, %c0_i32_0 : i32, i32
  }
  func.func @transform_2(%arg0: i32, %arg1: i32) -> (i32, i32) {
    %c0_i32 = arith.constant 0 : i32
    %c0_i32_0 = arith.constant 0 : i32
    %c0_i32_1 = arith.constant 0 : i32
    return %c0_i32, %c0_i32_0 : i32, i32
  }
  func.func @transform_3(%arg0: i32, %arg1: i32) -> (i32, i32) {
    %c0_i32 = arith.constant 0 : i32
    %c0_i32_0 = arith.constant 0 : i32
    %c0_i32_1 = arith.constant 0 : i32
    return %c0_i32, %c0_i32_0 : i32, i32
  }
  func.func @transform_4(%arg0: i32, %arg1: i32) -> (i32, i32) {
    %c0_i32 = arith.constant 0 : i32
    %c0_i32_0 = arith.constant 0 : i32
    %c0_i32_1 = arith.constant 0 : i32
    return %c0_i32, %c0_i32_0 : i32, i32
  }
  func.func @transform_5(%arg0: i32, %arg1: i32) -> (i32, i32, i32) {
    %c0_i32 = arith.constant 0 : i32
    %c0_i32_0 = arith.constant 0 : i32
    %c0_i32_1 = arith.constant 0 : i32
    %c0_i32_2 = arith.constant 0 : i32
    return %c0_i32, %c0_i32_0, %c0_i32_1 : i32, i32, i32
  }
  func.func @transform_6(%arg0: i32, %arg1: i32) -> (i32, i32) {
    %c0_i32 = arith.constant 0 : i32
    %c0_i32_0 = arith.constant 0 : i32
    %c0_i32_1 = arith.constant 0 : i32
    return %c0_i32, %c0_i32_0 : i32, i32
  }
  func.func @transform_7(%arg0: i32, %arg1: i32) -> (i32, i32) {
    %c0_i32 = arith.constant 0 : i32
    %c0_i32_0 = arith.constant 0 : i32
    %c0_i32_1 = arith.constant 0 : i32
    return %c0_i32, %c0_i32_0 : i32, i32
  }
  func.func @transform_8(%arg0: i32, %arg1: i32) -> (i32, i32) {
    %c0_i32 = arith.constant 0 : i32
    %c0_i32_0 = arith.constant 0 : i32
    %c0_i32_1 = arith.constant 0 : i32
    return %c0_i32, %c0_i32_0 : i32, i32
  }
  func.func @transform_9(%arg0: i32, %arg1: i32) -> (i32, i32) {
    %c0_i32 = arith.constant 0 : i32
    %c0_i32_0 = arith.constant 0 : i32
    %c0_i32_1 = arith.constant 0 : i32
    return %c0_i32, %c0_i32_0 : i32, i32
  }
  func.func @transform_10(%arg0: i32, %arg1: i32) -> (i32, i32) {
    %c0_i32 = arith.constant 0 : i32
    %c0_i32_0 = arith.constant 0 : i32
    return %c0_i32, %arg1 : i32, i32
  }
  func.func @transform_11(%arg0: i32, %arg1: i32) -> (i32, i32, i32) {
    %c0_i32 = arith.constant 0 : i32
    %c0_i32_0 = arith.constant 0 : i32
    return %arg0, %c0_i32, %arg1 : i32, i32, i32
  }
}

</mosaic_0001>

<bundles_post_ra>
// kernel: _lambda_.1
= control target key start
LH: loop header
LB: loop body
LE: loop exit
PB: predicated region body
PF: predicated region fallthrough
CT: control target
= control target key end

     0   :  { %s9329_s0 = inlined_call_operand.vmem [shape: f32[2,16,256], index: 0, kind: input, shape index: {}]   ;;  %s9330_s1 = inlined_call_operand.vmem [shape: f32[16,128], index: 1, kind: input, shape index: {}]   ;;  %s9331_s2 = inlined_call_operand.vmem [shape: f32[16,128], index: 2, kind: input, shape index: {}]   ;;  %s9332_s3 = inlined_call_operand.vmem [shape: f32[1,256], index: 3, kind: input, shape index: {}]   ;;  %s9333_s4 = inlined_call_operand.vmem [shape: bf16[256,768], index: 4, kind: input, shape index: {}]   ;;  %s9334_s5 = inlined_call_operand.vmem [shape: bf16[2,128,256], index: 5, kind: input, shape index: {}]   ;;  %s9335_s6 = inlined_call_operand.vmem [shape: f32[1,256], index: 6, kind: input, shape index: {}]   ;;  %s9336_s7 = inlined_call_operand.vmem [shape: bf16[256,1024], index: 7, kind: input, shape index: {}]   ;;  %s9337_s8 = inlined_call_operand.vmem [shape: bf16[512,256], index: 8, kind: input, shape index: {}]   ;;  %s9338_s9 = inlined_call_operand.vmem [shape: f32[1,256], index: 9, kind: input, shape index: {}]   ;;  %s9339_s10 = inlined_call_operand.vmem [shape: bf16[256,1024], index: 10, kind: input, shape index: {}]   ;;  %s9340_s11 = inlined_call_operand.hbm [shape: f32[2,16,1024], index: 11, kind: output, shape index: {}]  }
   0x1   :  { %9348 = sst [smem:[#allocation12_spill]] %s9329_s0 }
   0x2   :  { %9349 = sst [smem:[#allocation13_spill]] %s9335_s6 }
   0x3   :  { %9350 = sst [smem:[#allocation14_spill]] %s9337_s8 }
   0x4   :  { %9351 = sst [smem:[#allocation15_spill]] %s9338_s9 }
   0x5   :  { %9352 = sst [smem:[#allocation16_spill]] %s9339_s10 }
   0x6   :  { %9353 = sst [smem:[#allocation17_spill]] %s9340_s11 }
   0x7   :  { %16 = vsyncpa [#allocation5], 0 }
   0x8   :  { %18 = vsyncpa [#allocation5 + $0x1], 0  ;;  %s6563_s17 = smov 0   ;;  %s6565_s18 = smov 0  }
   0x9   :  { %s6567_s19 = smov 0   ;;  %s6569_s20 = smov 0  }
   0xa   :  { %s6571_s21 = smov 0   ;;  %s6573_s22 = smov 0  }
   0xb   :  { %s6575_s23 = smov 0   ;;  %s6577_s24 = smov 0  }
   0xc   :  { %s6579_s25 = smov 0   ;;  %s6581_s26 = smov 0  }
   0xd LB: > { %9354 = sst [smem:[#allocation7_spill]] %s6488_s24  ;;  %s4267_s27 = sadd.s32 4294967295, %s6496_s26   ;;  %s6496_s26 = sphi %s6581_s26, %s24_s26   ;;  %s6492_s25 = sphi %s6579_s25, %s9391_s25   ;;  %s6488_s24 = sphi %s6577_s24, %s9390_s24   ;;  %s6484_s23 = sphi %s6575_s23, %s9389_s23   ;;  %s6480_s22 = sphi %s6573_s22, %s9388_s22   ;;  %s6476_s21 = sphi %s6571_s21, %s9396_s21   ;;  %s6472_s20 = sphi %s6569_s20, %s9395_s20   ;;  %s6468_s19 = sphi %s6567_s19, %s9394_s19   ;;  %s6464_s18 = sphi %s6565_s18, %s9393_s18   ;;  %s6460_s17 = sphi %s6563_s17, %s9392_s17  }
   0xe   : > { %9355 = sst [smem:[#allocation8_spill]] %s6492_s25  ;;  %s4268_s28 = sadd.s32 4294967294, %s6496_s26  }
   0xf   : > { %s33_s29 = sadd.s32 1, %s6488_s24  ;;  %s36_s30 = sadd.s32 1, %s6492_s25 }
  0x10   : > { %p34_p0 = scmp.ge.s32.totalorder %s33_s29, 2  ;;  %s258_s12 = sadd.s32 1, %s6476_s21 }
  0x11   : > { %p265_p1 = scmp.ne.s32.totalorder %s6476_s21, %s6472_s20  ;;  %p266_p2 = scmp.eq.s32.totalorder %s6496_s26, 0 }
  0x12   : > { %s9398_s29 = smov (%p34_p0, %s33_s29), 0  ;;  %s9400_s30 = smov (!%p34_p0, %s36_s30), %s6492_s25 }
  0x13   : > { %9356 = sst [smem:[#allocation9_spill]] %s9398_s29  ;;  %s255_s13 = ssub.s32 %s6488_s24, %s9398_s29 }
  0x14   : > { %p6626_p3 = por %p266_p2, %p265_p1  ;;  %p38_p4 = scmp.ge.s32.totalorder %s9400_s30, 2 }
  0x15   : > { %p256_p5 = scmp.eq.s32.totalorder %s255_s13, 0  ;;  %s286_s15 = sadd.s32 1, %s6468_s19 }
  0x16   : > { %p296_p6 = scmp.ne.s32.totalorder %s6468_s19, %s6464_s18  ;;  %s9402_s30 = smov (%p38_p4, %s9400_s30), 0 }
  0x17   : > { %9358 = sst [smem:[#allocation10_spill]] %s9402_s30  ;;  %s281_s11 = ssub.s32 %s6492_s25, %s9402_s30 }
  0x18   : > { %s6636_s16 = scalar_select %p256_p5, %s6476_s21, %s258_s12  }
  0x19   : > { %p297_p7 = scmp.eq.s32.totalorder %s4267_s27, 3  ;;  %s283_s9 = sor.u32 %s281_s11, %s255_s13 }
  0x1a   : > { %9359 = sst [smem:[#allocation11_spill]] %s6636_s16  ;;  %p302_p8 = scmp.ne.s32.totalorder %s6464_s18, %s6460_s17 }
  0x1b   : > { %p284_p9 = scmp.eq.s32.totalorder %s283_s9, 0  ;;  %p6642_p10 = por %p297_p7, %p296_p6 }
  0x1c   : > { %p303_p11 = scmp.eq.s32.totalorder %s4268_s28, 3  ;;  %p4270_p13 = scmp.ge.s32.totalorder %s6496_s26, 4 }
  0x1d   : > { %s6647_s8 = scalar_select %p284_p9, %s6468_s19, %s286_s15  }
  0x1e   : > { %p6649_p12 = por %p303_p11, %p302_p8  ;;  %346 = sbr.rel (%p4270_p13) target bundleno = 109 (0x6d), region = 52 }
  0x23   : > { %357 = sbr.rel (!%p6626_p3) target bundleno = 109 (0x6d), region = 60  ;;  %s359_s9 = sand.u32 (%p6626_p3), 1, %s6476_s21  }
  0x24   : > { %s5840_s11 = sshll.u32 (%p6626_p3), %s6488_s24, 4  ;;  %s4271_s27 = sshll.u32 (%p6626_p3), %s359_s9, 9 }
  0x25   : > { %s9362_s10 = sld [smem:[#allocation16_spill]] (%p6626_p3)  ;;  %s6666_s14 = scalar_lea.vmem (%p6626_p3), [#allocation3], %s4271_s27 }
  0x2b   : > { %s6661_s28 = scalar_lea.vmem %s9362_s10, %s5840_s11 }
  0x2c   : > { %v377_v0 = vld [vmem:[%s6661_s28] sm:$0xff]  ;;  %v379_v1 = vld [vmem:[%s6661_s28 + $0x8] sm:$0xff] }
  0x2d   : > { %v381_v2 = vld [vmem:[%s6661_s28 + $0x20] sm:$0xff]  ;;  %378 = vst [vmem:[%s6666_s14] sm:$0xff] %v377_v0  ;;  %v383_v3 = vld [vmem:[%s6661_s28 + $0x28] sm:$0xff] }
  0x2e   : > { %380 = vst [vmem:[%s6666_s14 + $0x8] sm:$0xff] %v379_v1  ;;  %v385_v4 = vld [vmem:[%s6661_s28 + $0x40] sm:$0xff]  ;;  %v387_v5 = vld [vmem:[%s6661_s28 + $0x48] sm:$0xff] }
  0x2f   : > { %382 = vst [vmem:[%s6666_s14 + $0x10] sm:$0xff] %v381_v2  ;;  %v389_v6 = vld [vmem:[%s6661_s28 + $0x60] sm:$0xff]  ;;  %v391_v7 = vld [vmem:[%s6661_s28 + $0x68] sm:$0xff] }
  0x30   : > { %384 = vst [vmem:[%s6666_s14 + $0x18] sm:$0xff] %v383_v3  ;;  %v393_v8 = vld [vmem:[%s6661_s28 + $0x80] sm:$0xff]  ;;  %v395_v9 = vld [vmem:[%s6661_s28 + $0x88] sm:$0xff] }
  0x31   : > { %386 = vst [vmem:[%s6666_s14 + $0x20] sm:$0xff] %v385_v4  ;;  %v397_v10 = vld [vmem:[%s6661_s28 + $0xa0] sm:$0xff]  ;;  %v399_v11 = vld [vmem:[%s6661_s28 + $0xa8] sm:$0xff] }
  0x32   : > { %388 = vst [vmem:[%s6666_s14 + $0x28] sm:$0xff] %v387_v5  ;;  %v401_v12 = vld [vmem:[%s6661_s28 + $0xc0] sm:$0xff]  ;;  %v403_v13 = vld [vmem:[%s6661_s28 + $0xc8] sm:$0xff] }
  0x33   : > { %390 = vst [vmem:[%s6666_s14 + $0x30] sm:$0xff] %v389_v6  ;;  %v405_v14 = vld [vmem:[%s6661_s28 + $0xe0] sm:$0xff]  ;;  %v407_v15 = vld [vmem:[%s6661_s28 + $0xe8] sm:$0xff] }
  0x34   : > { %392 = vst [vmem:[%s6666_s14 + $0x38] sm:$0xff] %v391_v7  ;;  %v409_v16 = vld [vmem:[%s6661_s28 + $0x100] sm:$0xff]  ;;  %v411_v17 = vld [vmem:[%s6661_s28 + $0x108] sm:$0xff] }
  0x35   : > { %394 = vst [vmem:[%s6666_s14 + $0x40] sm:$0xff] %v393_v8  ;;  %v413_v18 = vld [vmem:[%s6661_s28 + $0x120] sm:$0xff]  ;;  %v415_v19 = vld [vmem:[%s6661_s28 + $0x128] sm:$0xff] }
  0x36   : > { %396 = vst [vmem:[%s6666_s14 + $0x48] sm:$0xff] %v395_v9  ;;  %v417_v20 = vld [vmem:[%s6661_s28 + $0x140] sm:$0xff]  ;;  %v419_v21 = vld [vmem:[%s6661_s28 + $0x148] sm:$0xff] }
  0x37   : > { %398 = vst [vmem:[%s6666_s14 + $0x50] sm:$0xff] %v397_v10  ;;  %v421_v22 = vld [vmem:[%s6661_s28 + $0x160] sm:$0xff]  ;;  %v423_v23 = vld [vmem:[%s6661_s28 + $0x168] sm:$0xff] }
  0x38   : > { %400 = vst [vmem:[%s6666_s14 + $0x58] sm:$0xff] %v399_v11  ;;  %v425_v24 = vld [vmem:[%s6661_s28 + $0x180] sm:$0xff]  ;;  %v427_v25 = vld [vmem:[%s6661_s28 + $0x188] sm:$0xff] }
  0x39   : > { %402 = vst [vmem:[%s6666_s14 + $0x60] sm:$0xff] %v401_v12  ;;  %v429_v26 = vld [vmem:[%s6661_s28 + $0x1a0] sm:$0xff]  ;;  %v431_v27 = vld [vmem:[%s6661_s28 + $0x1a8] sm:$0xff] }
  0x3a   : > { %404 = vst [vmem:[%s6666_s14 + $0x68] sm:$0xff] %v403_v13  ;;  %v433_v28 = vld [vmem:[%s6661_s28 + $0x1c0] sm:$0xff]  ;;  %v435_v29 = vld [vmem:[%s6661_s28 + $0x1c8] sm:$0xff] }
  0x3b   : > { %406 = vst [vmem:[%s6666_s14 + $0x70] sm:$0xff] %v405_v14  ;;  %v437_v30 = vld [vmem:[%s6661_s28 + $0x1e0] sm:$0xff]  ;;  %v439_v31 = vld [vmem:[%s6661_s28 + $0x1e8] sm:$0xff] }
  0x3c   : > { %408 = vst [vmem:[%s6666_s14 + $0x78] sm:$0xff] %v407_v15  ;;  %v441_v32 = vld [vmem:[%s6661_s28 + $0x200] sm:$0xff]  ;;  %v443_v33 = vld [vmem:[%s6661_s28 + $0x208] sm:$0xff] }
  0x3d   : > { %410 = vst [vmem:[%s6666_s14 + $0x80] sm:$0xff] %v409_v16  ;;  %v445_v34 = vld [vmem:[%s6661_s28 + $0x220] sm:$0xff]  ;;  %v447_v35 = vld [vmem:[%s6661_s28 + $0x228] sm:$0xff] }
  0x3e   : > { %412 = vst [vmem:[%s6666_s14 + $0x88] sm:$0xff] %v411_v17  ;;  %v449_v36 = vld [vmem:[%s6661_s28 + $0x240] sm:$0xff]  ;;  %v451_v37 = vld [vmem:[%s6661_s28 + $0x248] sm:$0xff] }
  0x3f   : > { %414 = vst [vmem:[%s6666_s14 + $0x90] sm:$0xff] %v413_v18  ;;  %v453_v38 = vld [vmem:[%s6661_s28 + $0x260] sm:$0xff]  ;;  %v455_v39 = vld [vmem:[%s6661_s28 + $0x268] sm:$0xff] }
  0x40   : > { %416 = vst [vmem:[%s6666_s14 + $0x98] sm:$0xff] %v415_v19  ;;  %v457_v40 = vld [vmem:[%s6661_s28 + $0x280] sm:$0xff]  ;;  %v459_v41 = vld [vmem:[%s6661_s28 + $0x288] sm:$0xff] }
  0x41   : > { %418 = vst [vmem:[%s6666_s14 + $0xa0] sm:$0xff] %v417_v20  ;;  %v461_v42 = vld [vmem:[%s6661_s28 + $0x2a0] sm:$0xff]  ;;  %v463_v43 = vld [vmem:[%s6661_s28 + $0x2a8] sm:$0xff] }
  0x42   : > { %420 = vst [vmem:[%s6666_s14 + $0xa8] sm:$0xff] %v419_v21  ;;  %v465_v44 = vld [vmem:[%s6661_s28 + $0x2c0] sm:$0xff]  ;;  %v467_v45 = vld [vmem:[%s6661_s28 + $0x2c8] sm:$0xff] }
  0x43   : > { %422 = vst [vmem:[%s6666_s14 + $0xb0] sm:$0xff] %v421_v22  ;;  %v469_v46 = vld [vmem:[%s6661_s28 + $0x2e0] sm:$0xff]  ;;  %v471_v47 = vld [vmem:[%s6661_s28 + $0x2e8] sm:$0xff] }
  0x44   : > { %424 = vst [vmem:[%s6666_s14 + $0xb8] sm:$0xff] %v423_v23  ;;  %v473_v48 = vld [vmem:[%s6661_s28 + $0x300] sm:$0xff]  ;;  %v475_v49 = vld [vmem:[%s6661_s28 + $0x308] sm:$0xff] }
  0x45   : > { %426 = vst [vmem:[%s6666_s14 + $0xc0] sm:$0xff] %v425_v24  ;;  %v477_v50 = vld [vmem:[%s6661_s28 + $0x320] sm:$0xff]  ;;  %v479_v51 = vld [vmem:[%s6661_s28 + $0x328] sm:$0xff] }
  0x46   : > { %428 = vst [vmem:[%s6666_s14 + $0xc8] sm:$0xff] %v427_v25  ;;  %v481_v52 = vld [vmem:[%s6661_s28 + $0x340] sm:$0xff]  ;;  %v483_v53 = vld [vmem:[%s6661_s28 + $0x348] sm:$0xff] }
  0x47   : > { %430 = vst [vmem:[%s6666_s14 + $0xd0] sm:$0xff] %v429_v26  ;;  %v485_v54 = vld [vmem:[%s6661_s28 + $0x360] sm:$0xff]  ;;  %v487_v55 = vld [vmem:[%s6661_s28 + $0x368] sm:$0xff] }
  0x48   : > { %432 = vst [vmem:[%s6666_s14 + $0xd8] sm:$0xff] %v431_v27  ;;  %v489_v56 = vld [vmem:[%s6661_s28 + $0x380] sm:$0xff]  ;;  %v491_v57 = vld [vmem:[%s6661_s28 + $0x388] sm:$0xff] }
  0x49   : > { %434 = vst [vmem:[%s6666_s14 + $0xe0] sm:$0xff] %v433_v28  ;;  %v493_v58 = vld [vmem:[%s6661_s28 + $0x3a0] sm:$0xff]  ;;  %v495_v59 = vld [vmem:[%s6661_s28 + $0x3a8] sm:$0xff] }
  0x4a   : > { %436 = vst [vmem:[%s6666_s14 + $0xe8] sm:$0xff] %v435_v29  ;;  %v497_v60 = vld [vmem:[%s6661_s28 + $0x3c0] sm:$0xff]  ;;  %v499_v61 = vld [vmem:[%s6661_s28 + $0x3c8] sm:$0xff] }
  0x4b   : > { %438 = vst [vmem:[%s6666_s14 + $0xf0] sm:$0xff] %v437_v30  ;;  %v501_v62 = vld [vmem:[%s6661_s28 + $0x3e0] sm:$0xff]  ;;  %v503_v63 = vld [vmem:[%s6661_s28 + $0x3e8] sm:$0xff] }
  0x4c   : > { %440 = vst [vmem:[%s6666_s14 + $0xf8] sm:$0xff] %v439_v31 }
  0x4d   : > { %442 = vst [vmem:[%s6666_s14 + $0x100] sm:$0xff] %v441_v32 }
  0x4e   : > { %444 = vst [vmem:[%s6666_s14 + $0x108] sm:$0xff] %v443_v33 }
  0x4f   : > { %446 = vst [vmem:[%s6666_s14 + $0x110] sm:$0xff] %v445_v34 }
  0x50   : > { %448 = vst [vmem:[%s6666_s14 + $0x118] sm:$0xff] %v447_v35 }
  0x51   : > { %450 = vst [vmem:[%s6666_s14 + $0x120] sm:$0xff] %v449_v36 }
  0x52   : > { %452 = vst [vmem:[%s6666_s14 + $0x128] sm:$0xff] %v451_v37 }
  0x53   : > { %454 = vst [vmem:[%s6666_s14 + $0x130] sm:$0xff] %v453_v38 }
  0x54   : > { %456 = vst [vmem:[%s6666_s14 + $0x138] sm:$0xff] %v455_v39 }
  0x55   : > { %458 = vst [vmem:[%s6666_s14 + $0x140] sm:$0xff] %v457_v40 }
  0x56   : > { %460 = vst [vmem:[%s6666_s14 + $0x148] sm:$0xff] %v459_v41 }
  0x57   : > { %462 = vst [vmem:[%s6666_s14 + $0x150] sm:$0xff] %v461_v42 }
  0x58   : > { %464 = vst [vmem:[%s6666_s14 + $0x158] sm:$0xff] %v463_v43 }
  0x59   : > { %466 = vst [vmem:[%s6666_s14 + $0x160] sm:$0xff] %v465_v44 }
  0x5a   : > { %468 = vst [vmem:[%s6666_s14 + $0x168] sm:$0xff] %v467_v45 }
  0x5b   : > { %470 = vst [vmem:[%s6666_s14 + $0x170] sm:$0xff] %v469_v46 }
  0x5c   : > { %472 = vst [vmem:[%s6666_s14 + $0x178] sm:$0xff] %v471_v47 }
  0x5d   : > { %474 = vst [vmem:[%s6666_s14 + $0x180] sm:$0xff] %v473_v48 }
  0x5e   : > { %476 = vst [vmem:[%s6666_s14 + $0x188] sm:$0xff] %v475_v49 }
  0x5f   : > { %478 = vst [vmem:[%s6666_s14 + $0x190] sm:$0xff] %v477_v50 }
  0x60   : > { %480 = vst [vmem:[%s6666_s14 + $0x198] sm:$0xff] %v479_v51 }
  0x61   : > { %482 = vst [vmem:[%s6666_s14 + $0x1a0] sm:$0xff] %v481_v52 }
  0x62   : > { %484 = vst [vmem:[%s6666_s14 + $0x1a8] sm:$0xff] %v483_v53 }
  0x63   : > { %486 = vst [vmem:[%s6666_s14 + $0x1b0] sm:$0xff] %v485_v54 }
  0x64   : > { %488 = vst [vmem:[%s6666_s14 + $0x1b8] sm:$0xff] %v487_v55 }
  0x65   : > { %490 = vst [vmem:[%s6666_s14 + $0x1c0] sm:$0xff] %v489_v56 }
  0x66   : > { %492 = vst [vmem:[%s6666_s14 + $0x1c8] sm:$0xff] %v491_v57 }
  0x67   : > { %494 = vst [vmem:[%s6666_s14 + $0x1d0] sm:$0xff] %v493_v58 }
  0x68   : > { %496 = vst [vmem:[%s6666_s14 + $0x1d8] sm:$0xff] %v495_v59 }
  0x69   : > { %498 = vst [vmem:[%s6666_s14 + $0x1e0] sm:$0xff] %v497_v60 }
  0x6a   : > { %500 = vst [vmem:[%s6666_s14 + $0x1e8] sm:$0xff] %v499_v61 }
  0x6b   : > { %502 = vst [vmem:[%s6666_s14 + $0x1f0] sm:$0xff] %v501_v62 }
  0x6c   : > { %504 = vst [vmem:[%s6666_s14 + $0x1f8] sm:$0xff] %v503_v63 }
  0x6d PF: > { %p4274_p0 = scmp.ge.s32.totalorder %s6496_s26, 1  ;;  %p509_p1 = scmp.lt.s32.totalorder %s6496_s26, 5 }
  0x6f   : > { %p510_p2 = pnand %p4274_p0, %p509_p1 }
  0x70   : > { %s516_s15 = sand.u32 (!%p510_p2), 1, %s6472_s20   ;;  %s9346_s9 = sand.u32 (!%p510_p2), 1, %s6464_s18  }
  0x71   : > { %513 = sbr.rel (%p510_p2) target bundleno = 2144 (0x860), region = 83  ;;  %s4275_s11 = sshll.u32 (!%p510_p2), %s516_s15, 9 }
  0x72   : > { %s4276_s27 = sshll.u32 (!%p510_p2), %s9346_s9, 6  ;;  %p560_p3 = scmp.lt.s32.totalorder (!%p510_p2), %s6484_s23, 1 }
  0x73   : > { %s9363_s0 = sld [smem:[#allocation12_spill]] (!%p510_p2)  ;;  %s6806_s30 = scalar_lea.vmem (!%p510_p2), [#allocation3], %s4275_s11 }
  0x74   : > { %s6808_s25 = scalar_lea.vmem (!%p510_p2), [#allocation4], %s4276_s27  ;;  %p4279_p4 = scmp.ne.s32.totalorder (!%p510_p2), %s6480_s22, 0 }
  0x76   : > { %s561_s12 = scalar_select %p560_p3, %s6484_s23, 1 }
  0x77   : > { %571 = sbr.rel (%p4279_p4) target bundleno = 1929 (0x789), region = 91  ;;  %s6499_s9 = smov (!%p4279_p4), 64  }
  0x78   : > { %s5841_s13 = sshll.u32 %s561_s12, 5  ;;  %s9364_s28 = sld [smem:[#allocation13_spill]] (!%p4279_p4) }
  0x79   : > { %s6804_s10 = scalar_lea.vmem %s9363_s0, %s5841_s13  ;;  %s9384_s20 = sld [smem:[#allocation15_spill]] (!%p4279_p4) }
  0x7c   : > { %v6812_v0 = vld [vmem:[%s6804_s10] sm:$0xff]  ;;  %v6815_v1 = vld [vmem:[%s6804_s10 + $0x8] sm:$0xff]  ;;  %v6818_v2 = vld [vmem:[%s6804_s10 + $0x10] sm:$0xff]  ;;  %vm1496_vm8 = vcmask 130048  }
  0x7d   : > { %v581_v3 = vmul.f32 %v6812_v0, %v6812_v0  ;;  %v582_v4 = vmul.f32 %v6815_v1, %v6815_v1  ;;  %v6825_v5 = vld [vmem:[%s6804_s10 + $0x18] sm:$0xff]  ;;  %v4450_v6 = vld [vmem:[%s9333_s4 + $0x150] sm:$0xf]  ;;  %v5887_v7 = vld [vmem:[%s9333_s4 + $0x164] sm:$0xf0]  ;;  %v583_v22 = vmul.f32 %v6818_v2, %v6818_v2 }
  0x7e   : > { %v4451_v8 = vor.u32 %v5887_v7, %v4450_v6  ;;  %v4642_v9 = vld [vmem:[%s9333_s4 + $0x2d0] sm:$0xf]  ;;  %v5935_v10 = vld [vmem:[%s9333_s4 + $0x2e4] sm:$0xf0]  ;;  %v5884_v11 = vld [vmem:[%s9333_s4 + $0x154] sm:$0xf]  ;;  %v584_v23 = vmul.f32 %v6825_v5, %v6825_v5 }
  0x7f   : > { %v585_v12 = vadd.f32 %v582_v4, %v581_v3  ;;  %v4643_v13 = vor.u32 %v5935_v10, %v4642_v9  ;;  %v4452_v14 = vld [vmem:[%s9333_s4 + $0x168] sm:$0xf0]  ;;  %v5932_v15 = vld [vmem:[%s9333_s4 + $0x2d4] sm:$0xf]  ;;  %v4426_v19 = vld [vmem:[%s9333_s4 + $0x120] sm:$0xf] }
  0x80   : > { %v4644_v16 = vld [vmem:[%s9333_s4 + $0x2e8] sm:$0xf0]  ;;  %1213 = vmatpush.bf16.msra.mxu0 %v4451_v8  ;;  %v4455_v17 = vor.u32 %v5884_v11, %v4452_v14  ;;  %v5881_v20 = vld [vmem:[%s9333_s4 + $0x134] sm:$0xf0]  ;;  %v4618_v21 = vld [vmem:[%s9333_s4 + $0x2a0] sm:$0xf]  ;;  %v588_v41 = vadd.f32 %v584_v23, %v583_v22 }
  0x81   : > { %v4647_v18 = vor.u32 %v5932_v15, %v4644_v16  ;;  %586 = vadd.xlane.f32.xlu0 %v585_v12  ;;  %1227 = vmatpush.bf16.msra.mxu1 %v4643_v13  ;;  %v4427_v24 = vor.u32 %v5881_v20, %v4426_v19  ;;  %v5929_v25 = vld [vmem:[%s9333_s4 + $0x2b4] sm:$0xf0]  ;;  %v5878_v26 = vld [vmem:[%s9333_s4 + $0x124] sm:$0xf]  ;;  %v4428_v27 = vld [vmem:[%s9333_s4 + $0x138] sm:$0xf0] }
  0x82   : > { %1241 = vmatpush.bf16.msra.mxu2 %v4455_v17  ;;  %v4619_v28 = vor.u32 %v5929_v25, %v4618_v21  ;;  %v4431_v29 = vor.u32 %v5878_v26, %v4428_v27  ;;  %v5926_v30 = vld [vmem:[%s9333_s4 + $0x2a4] sm:$0xf]  ;;  %v4620_v31 = vld [vmem:[%s9333_s4 + $0x2b8] sm:$0xf0]  ;;  %v4402_v32 = vld [vmem:[%s9333_s4 + $0xf0] sm:$0xf] }
  0x83   : > { %1255 = vmatpush.bf16.msra.mxu3 %v4647_v18  ;;  %v4623_v33 = vor.u32 %v5926_v30, %v4620_v31  ;;  %v5875_v34 = vld [vmem:[%s9333_s4 + $0x104] sm:$0xf0]  ;;  %v4594_v35 = vld [vmem:[%s9333_s4 + $0x270] sm:$0xf]  ;;  %v5872_v38 = vld [vmem:[%s9333_s4 + $0xf4] sm:$0xf] }
  0x84   : > { %v5923_v36 = vld [vmem:[%s9333_s4 + $0x284] sm:$0xf0]  ;;  %1214 = vmatpush.bf16.msra.mxu0 %v4427_v24  ;;  %v4403_v37 = vor.u32 %v5875_v34, %v4402_v32  ;;  %v4404_v39 = vld [vmem:[%s9333_s4 + $0x108] sm:$0xf0]  ;;  %v5920_v40 = vld [vmem:[%s9333_s4 + $0x274] sm:$0xf] }
  0x85   : > { %1228 = vmatpush.bf16.msra.mxu1 %v4619_v28  ;;  %v4595_v42 = vor.u32 %v5923_v36, %v4594_v35  ;;  %v4596_v43 = vld [vmem:[%s9333_s4 + $0x288] sm:$0xf0]  ;;  %v4378_v44 = vld [vmem:[%s9333_s4 + $0xc0] sm:$0xf]  ;;  %v5869_v45 = vld [vmem:[%s9333_s4 + $0xd4] sm:$0xf0]  ;;  %v4407_v46 = vor.u32 %v5872_v38, %v4404_v39 }
  0x86   : > { %1242 = vmatpush.bf16.msra.mxu2 %v4431_v29  ;;  %v4599_v47 = vor.u32 %v5920_v40, %v4596_v43  ;;  %v4570_v48 = vld [vmem:[%s9333_s4 + $0x240] sm:$0xf]  ;;  %v5917_v49 = vld [vmem:[%s9333_s4 + $0x254] sm:$0xf0]  ;;  %v5866_v50 = vld [vmem:[%s9333_s4 + $0xc4] sm:$0xf]  ;;  %v4379_v54 = vor.u32 %v5869_v45, %v4378_v44 }
  0x87   : > { %1256 = vmatpush.bf16.msra.mxu3 %v4623_v33  ;;  %v4380_v51 = vld [vmem:[%s9333_s4 + $0xd8] sm:$0xf0]  ;;  %v5914_v52 = vld [vmem:[%s9333_s4 + $0x244] sm:$0xf]  ;;  %v4571_v55 = vor.u32 %v5917_v49, %v4570_v48  ;;  %v4354_v56 = vld [vmem:[%s9333_s4 + $0x90] sm:$0xf] }
  0x88   : > { %v4572_v53 = vld [vmem:[%s9333_s4 + $0x258] sm:$0xf0]  ;;  %1215 = vmatpush.bf16.msra.mxu0 %v4403_v37  ;;  %v5863_v57 = vld [vmem:[%s9333_s4 + $0xa4] sm:$0xf0]  ;;  %v4383_v58 = vor.u32 %v5866_v50, %v4380_v51  ;;  %v4546_v60 = vld [vmem:[%s9333_s4 + $0x210] sm:$0xf] }
  0x89   : > { %589 = vadd.xlane.f32.xlu0 %v588_v41  ;;  %1229 = vmatpush.bf16.msra.mxu1 %v4595_v42  ;;  %v4575_v59 = vor.u32 %v5914_v52, %v4572_v53  ;;  %v5911_v61 = vld [vmem:[%s9333_s4 + $0x224] sm:$0xf0]  ;;  %v5860_v62 = vld [vmem:[%s9333_s4 + $0x94] sm:$0xf]  ;;  %v4356_v63 = vld [vmem:[%s9333_s4 + $0xa8] sm:$0xf0]  ;;  %v4355_v6 = vor.u32 %v5863_v57, %v4354_v56 }
  0x8a   : > { %1243 = vmatpush.bf16.msra.mxu2 %v4407_v46  ;;  %v5908_v3 = vld [vmem:[%s9333_s4 + $0x214] sm:$0xf]  ;;  %v4548_v4 = vld [vmem:[%s9333_s4 + $0x228] sm:$0xf0]  ;;  %v4547_v7 = vor.u32 %v5911_v61, %v4546_v60  ;;  %v4330_v8 = vld [vmem:[%s9333_s4 + $0x60] sm:$0xf]  ;;  %v4359_v10 = vor.u32 %v5860_v62, %v4356_v63 }
  0x8b   : > { %1257 = vmatpush.bf16.msra.mxu3 %v4599_v47  ;;  %v5857_v9 = vld [vmem:[%s9333_s4 + $0x74] sm:$0xf0]  ;;  %v4551_v11 = vor.u32 %v5908_v3, %v4548_v4  ;;  %v4522_v12 = vld [vmem:[%s9333_s4 + $0x1e0] sm:$0xf]  ;;  %v5854_v14 = vld [vmem:[%s9333_s4 + $0x64] sm:$0xf] }
  0x8c   : > { %1216 = vmatpush.bf16.msra.mxu0 %v4379_v54  ;;  %v5905_v13 = vld [vmem:[%s9333_s4 + $0x1f4] sm:$0xf0]  ;;  %v4332_v15 = vld [vmem:[%s9333_s4 + $0x78] sm:$0xf0]  ;;  %v5902_v16 = vld [vmem:[%s9333_s4 + $0x1e4] sm:$0xf]  ;;  %v4331_v18 = vor.u32 %v5857_v9, %v4330_v8 }
  0x8d   : > { %1230 = vmatpush.bf16.msra.mxu1 %v4571_v55  ;;  %v4524_v17 = vld [vmem:[%s9333_s4 + $0x1f8] sm:$0xf0]  ;;  %v4523_v19 = vor.u32 %v5905_v13, %v4522_v12  ;;  %v4335_v20 = vor.u32 %v5854_v14, %v4332_v15  ;;  %v4306_v22 = vld [vmem:[%s9333_s4 + $0x30] sm:$0xf]  ;;  %v5851_v23 = vld [vmem:[%s9333_s4 + $0x44] sm:$0xf0] }
  0x8e   : > { %1244 = vmatpush.bf16.msra.mxu2 %v4383_v58  ;;  %v4527_v21 = vor.u32 %v5902_v16, %v4524_v17  ;;  %v4498_v24 = vld [vmem:[%s9333_s4 + $0x1b0] sm:$0xf]  ;;  %v4307_v25 = vor.u32 %v5851_v23, %v4306_v22  ;;  %v5899_v26 = vld [vmem:[%s9333_s4 + $0x1c4] sm:$0xf0]  ;;  %v5848_v27 = vld [vmem:[%s9333_s4 + $0x34] sm:$0xf] }
  0x8f   : > { %1258 = vmatpush.bf16.msra.mxu3 %v4575_v59  ;;  %v4308_v28 = vld [vmem:[%s9333_s4 + $0x48] sm:$0xf0]  ;;  %v4499_v29 = vor.u32 %v5899_v26, %v4498_v24  ;;  %v5896_v31 = vld [vmem:[%s9333_s4 + $0x1b4] sm:$0xf]  ;;  %v6498_v33 = vmov 256.0  }
  0x90   : > { %1217 = vmatpush.bf16.msra.mxu0 %v4355_v6  ;;  %v4311_v30 = vor.u32 %v5848_v27, %v4308_v28  ;;  %v4500_v32 = vld [vmem:[%s9333_s4 + $0x1c8] sm:$0xf0]  ;;  %6320 = vrcp.f32 %v6498_v33  ;;  %v4282_v35 = vld [vmem:[%s9333_s4] sm:$0xf]  ;;  %v5845_v36 = vld [vmem:[%s9333_s4 + $0x14] sm:$0xf0] }
  0x91   : > { %1231 = vmatpush.bf16.msra.mxu1 %v4547_v7  ;;  %v4503_v34 = vor.u32 %v5896_v31, %v4500_v32  ;;  %v4474_v37 = vld [vmem:[%s9333_s4 + $0x180] sm:$0xf]  ;;  %v4283_v38 = vor.u32 %v5845_v36, %v4282_v35  ;;  %v5893_v39 = vld [vmem:[%s9333_s4 + $0x194] sm:$0xf0]  ;;  %v5842_v40 = vld [vmem:[%s9333_s4 + $0x4] sm:$0xf] }
  0x92   : > { %1245 = vmatpush.bf16.msra.mxu2 %v4359_v10  ;;  %v4284_v41 = vld [vmem:[%s9333_s4 + $0x18] sm:$0xf0]  ;;  %v4475_v42 = vor.u32 %v5893_v39, %v4474_v37  ;;  %v5890_v44 = vld [vmem:[%s9333_s4 + $0x184] sm:$0xf]  ;;  %v4458_v46 = vld [vmem:[%s9333_s4 + $0x158] sm:$0xf] }
  0x93   : > { %1259 = vmatpush.bf16.msra.mxu3 %v4551_v11  ;;  %v4287_v43 = vor.u32 %v5842_v40, %v4284_v41  ;;  %v4476_v45 = vld [vmem:[%s9333_s4 + $0x198] sm:$0xf0]  ;;  %v5888_v48 = vld [vmem:[%s9333_s4 + $0x16c] sm:$0xf0]  ;;  %v4650_v49 = vld [vmem:[%s9333_s4 + $0x2d8] sm:$0xf] }
  0x94   : > { %1218 = vmatpush.bf16.msra.mxu0 %v4331_v18  ;;  %v4479_v47 = vor.u32 %v5890_v44, %v4476_v45  ;;  %v5936_v50 = vld [vmem:[%s9333_s4 + $0x2ec] sm:$0xf0]  ;;  %v4459_v51 = vor.u32 %v5888_v48, %v4458_v46  ;;  %v5885_v53 = vld [vmem:[%s9333_s4 + $0x15c] sm:$0xf]  ;;  %v4460_v54 = vld [vmem:[%s9333_s4 + $0x170] sm:$0xf0] }
  0x95   : > { %1232 = vmatpush.bf16.msra.mxu1 %v4523_v19  ;;  %v4651_v52 = vor.u32 %v5936_v50, %v4650_v49  ;;  %v5933_v55 = vld [vmem:[%s9333_s4 + $0x2dc] sm:$0xf]  ;;  %v4463_v57 = vor.u32 %v5885_v53, %v4460_v54  ;;  %v4652_v58 = vld [vmem:[%s9333_s4 + $0x2f0] sm:$0xf0]  ;;  %v4434_v59 = vld [vmem:[%s9333_s4 + $0x128] sm:$0xf] }
  0x96   : > { %1246 = vmatpush.bf16.msra.mxu2 %v4335_v20  ;;  %v7044_v56 = vpop.eup %6320  ;;  %v5882_v60 = vld [vmem:[%s9333_s4 + $0x13c] sm:$0xf0]  ;;  %v4655_v61 = vor.u32 %v5933_v55, %v4652_v58  ;;  %v4626_v63 = vld [vmem:[%s9333_s4 + $0x2a8] sm:$0xf]  ;;  %v5879_v4 = vld [vmem:[%s9333_s4 + $0x12c] sm:$0xf] }
  0x97   : > { %1260 = vmatpush.bf16.msra.mxu3 %v4527_v21  ;;  %v4435_v62 = vor.u32 %v5882_v60, %v4434_v59  ;;  %v5930_v3 = vld [vmem:[%s9333_s4 + $0x2bc] sm:$0xf0]  ;;  %v4436_v7 = vld [vmem:[%s9333_s4 + $0x140] sm:$0xf0]  ;;  %v5927_v8 = vld [vmem:[%s9333_s4 + $0x2ac] sm:$0xf]  ;;  %vm596_vm0 = vweird.f32 %v7044_v56 }
  0x98   : > { %1219 = vmatpush.bf16.msra.mxu0 %v4307_v25  ;;  %v4627_v6 = vor.u32 %v5930_v3, %v4626_v63  ;;  %v4628_v9 = vld [vmem:[%s9333_s4 + $0x2c0] sm:$0xf0]  ;;  %v592_v10 = vmul.f32 256.0, %v7044_v56  ;;  %v4439_v11 = vor.u32 %v5879_v4, %v4436_v7  ;;  %v4410_v13 = vld [vmem:[%s9333_s4 + $0xf8] sm:$0xf] }
  0x99   : > { %1233 = vmatpush.bf16.msra.mxu1 %v4499_v29  ;;  %v4631_v12 = vor.u32 %v5927_v8, %v4628_v9  ;;  %v5876_v14 = vld [vmem:[%s9333_s4 + $0x10c] sm:$0xf0]  ;;  %v4602_v15 = vld [vmem:[%s9333_s4 + $0x278] sm:$0xf]  ;;  %v5873_v18 = vld [vmem:[%s9333_s4 + $0xfc] sm:$0xf] }
  0x9a   : > { %1247 = vmatpush.bf16.msra.mxu2 %v4311_v30  ;;  %v4411_v16 = vor.u32 %v5876_v14, %v4410_v13  ;;  %v5924_v17 = vld [vmem:[%s9333_s4 + $0x28c] sm:$0xf0]  ;;  %v4412_v19 = vld [vmem:[%s9333_s4 + $0x110] sm:$0xf0]  ;;  %v5921_v22 = vld [vmem:[%s9333_s4 + $0x27c] sm:$0xf] }
  0x9b   : > { %1261 = vmatpush.bf16.msra.mxu3 %v4503_v34  ;;  %v4603_v20 = vor.u32 %v5924_v17, %v4602_v15  ;;  %v4415_v21 = vor.u32 %v5873_v18, %v4412_v19  ;;  %v4604_v23 = vld [vmem:[%s9333_s4 + $0x290] sm:$0xf0]  ;;  %v593_v24 = vsub.f32 1.0, %v592_v10  ;;  %v4386_v26 = vld [vmem:[%s9333_s4 + $0xc8] sm:$0xf] }
  0x9c   : > { %1220 = vmatpush.bf16.msra.mxu0 %v4283_v38  ;;  %v4607_v25 = vor.u32 %v5921_v22, %v4604_v23  ;;  %v5870_v27 = vld [vmem:[%s9333_s4 + $0xdc] sm:$0xf0]  ;;  %v4578_v28 = vld [vmem:[%s9333_s4 + $0x248] sm:$0xf]  ;;  %v5867_v31 = vld [vmem:[%s9333_s4 + $0xcc] sm:$0xf] }
  0x9d   : > { %1234 = vmatpush.bf16.msra.mxu1 %v4475_v42  ;;  %v4387_v29 = vor.u32 %v5870_v27, %v4386_v26  ;;  %v5918_v30 = vld [vmem:[%s9333_s4 + $0x25c] sm:$0xf0]  ;;  %v4388_v32 = vld [vmem:[%s9333_s4 + $0xe0] sm:$0xf0]  ;;  %v5915_v35 = vld [vmem:[%s9333_s4 + $0x24c] sm:$0xf]  ;;  %v594_v38 = vmul.f32 %v7044_v56, %v593_v24 }
  0x9e   : > { %1248 = vmatpush.bf16.msra.mxu2 %v4287_v43  ;;  %v4579_v33 = vor.u32 %v5918_v30, %v4578_v28  ;;  %v4391_v34 = vor.u32 %v5867_v31, %v4388_v32  ;;  %v4580_v36 = vld [vmem:[%s9333_s4 + $0x260] sm:$0xf0]  ;;  %v4362_v39 = vld [vmem:[%s9333_s4 + $0x98] sm:$0xf]  ;;  %v5864_v40 = vld [vmem:[%s9333_s4 + $0xac] sm:$0xf0] }
  0x9f   : > { %1262 = vmatpush.bf16.msra.mxu3 %v4479_v47  ;;  %v4583_v37 = vor.u32 %v5915_v35, %v4580_v36  ;;  %v4554_v41 = vld [vmem:[%s9333_s4 + $0x218] sm:$0xf]  ;;  %v4363_v42 = vor.u32 %v5864_v40, %v4362_v39  ;;  %v5912_v43 = vld [vmem:[%s9333_s4 + $0x22c] sm:$0xf0]  ;;  %v5861_v44 = vld [vmem:[%s9333_s4 + $0x9c] sm:$0xf] }
  0xa0   : > { %1269 = vmatpush.bf16.msrb.mxu0 %v4459_v51  ;;  %v4364_v45 = vld [vmem:[%s9333_s4 + $0xb0] sm:$0xf0]  ;;  %v4555_v46 = vor.u32 %v5912_v43, %v4554_v41  ;;  %v5909_v48 = vld [vmem:[%s9333_s4 + $0x21c] sm:$0xf]  ;;  %v595_v51 = vadd.f32 %v7044_v56, %v594_v38  ;;  %v5858_v53 = vld [vmem:[%s9333_s4 + $0x7c] sm:$0xf0] }
  0xa1   : > { %1283 = vmatpush.bf16.msrb.mxu1 %v4651_v52  ;;  %v4367_v47 = vor.u32 %v5861_v44, %v4364_v45  ;;  %v4556_v49 = vld [vmem:[%s9333_s4 + $0x230] sm:$0xf0]  ;;  %v4338_v52 = vld [vmem:[%s9333_s4 + $0x68] sm:$0xf]  ;;  %v5855_v58 = vld [vmem:[%s9333_s4 + $0x6c] sm:$0xf] }
  0xa2   : > { %1297 = vmatpush.bf16.msrb.mxu2 %v4463_v57  ;;  %v4559_v50 = vor.u32 %v5909_v48, %v4556_v49  ;;  %v4530_v54 = vld [vmem:[%s9333_s4 + $0x1e8] sm:$0xf]  ;;  %v4339_v55 = vor.u32 %v5858_v53, %v4338_v52  ;;  %v5906_v57 = vld [vmem:[%s9333_s4 + $0x1fc] sm:$0xf0]  ;;  %v4340_v59 = vld [vmem:[%s9333_s4 + $0x80] sm:$0xf0]  ;;  %v7174_v4 = vsel %vm596_vm0, %v7044_v56, %v595_v51 }
  0xa3   : > { %1311 = vmatpush.bf16.msrb.mxu3 %v4655_v61  ;;  %v4531_v60 = vor.u32 %v5906_v57, %v4530_v54  ;;  %v4343_v61 = vor.u32 %v5855_v58, %v4340_v59  ;;  %v4532_v63 = vld [vmem:[%s9333_s4 + $0x200] sm:$0xf0]  ;;  %v5852_v7 = vld [vmem:[%s9333_s4 + $0x4c] sm:$0xf0]  ;;  %v4506_v8 = vld [vmem:[%s9333_s4 + $0x1b8] sm:$0xf] }
  0xa4   : > { %1270 = vmatpush.bf16.msrb.mxu0 %v4435_v62  ;;  %v5903_v62 = vld [vmem:[%s9333_s4 + $0x1ec] sm:$0xf]  ;;  %v5900_v56 = vld [vmem:[%s9333_s4 + $0x1cc] sm:$0xf0]  ;;  %v5849_v10 = vld [vmem:[%s9333_s4 + $0x3c] sm:$0xf] }
  0xa5   : > { %1284 = vmatpush.bf16.msrb.mxu1 %v4627_v6  ;;  %v4535_v3 = vor.u32 %v5903_v62, %v4532_v63  ;;  %v4314_v6 = vld [vmem:[%s9333_s4 + $0x38] sm:$0xf]  ;;  %v4507_v13 = vor.u32 %v5900_v56, %v4506_v8  ;;  %v5897_v15 = vld [vmem:[%s9333_s4 + $0x1bc] sm:$0xf]  ;;  %v4482_v23 = vld [vmem:[%s9333_s4 + $0x188] sm:$0xf] }
  0xa6   : > { %1298 = vmatpush.bf16.msrb.mxu2 %v4439_v11  ;;  %v4315_v9 = vor.u32 %v5852_v7, %v4314_v6  ;;  %v4316_v11 = vld [vmem:[%s9333_s4 + $0x50] sm:$0xf0]  ;;  %v5894_v24 = vld [vmem:[%s9333_s4 + $0x19c] sm:$0xf0]  ;;  %v4292_v27 = vld [vmem:[%s9333_s4 + $0x20] sm:$0xf0] }
  0xa7   : > { %1312 = vmatpush.bf16.msrb.mxu3 %v4631_v12  ;;  %v4319_v14 = vor.u32 %v5849_v10, %v4316_v11  ;;  %v4483_v26 = vor.u32 %v5894_v24, %v4482_v23  ;;  %v5891_v28 = vld [vmem:[%s9333_s4 + $0x18c] sm:$0xf]  ;;  %v580_v45 = vld [vmem:[%s9332_s3] sm:$0x3]  ;;  %v5889_v58 = vld [vmem:[%s9333_s4 + $0x174] sm:$0xf0] }
  0xa8   : > { %1271 = vmatpush.bf16.msrb.mxu0 %v4411_v16  ;;  %v4508_v16 = vld [vmem:[%s9333_s4 + $0x1d0] sm:$0xf0]  ;;  %v627_v49 = vperm.slane %v580_v45, 0  ;;  %v4466_v57 = vld [vmem:[%s9333_s4 + $0x160] sm:$0xf] }
  0xa9   : > { %1285 = vmatpush.bf16.msrb.mxu1 %v4603_v20  ;;  %v4511_v18 = vor.u32 %v5897_v15, %v4508_v16  ;;  %v4290_v20 = vld [vmem:[%s9333_s4 + $0x8] sm:$0xf]  ;;  %v4468_v62 = vld [vmem:[%s9333_s4 + $0x178] sm:$0xf0]  ;;  %v5934_v63 = vld [vmem:[%s9333_s4 + $0x2e4] sm:$0xf]  ;;  %v4467_v8 = vor.u32 %v5889_v58, %v4466_v57 }
  0xaa   : > { %1299 = vmatpush.bf16.msrb.mxu2 %v4415_v21  ;;  %v5846_v21 = vld [vmem:[%s9333_s4 + $0x1c] sm:$0xf0]  ;;  %v4442_v56 = vld [vmem:[%s9333_s4 + $0x130] sm:$0xf]  ;;  %v5883_v10 = vld [vmem:[%s9333_s4 + $0x144] sm:$0xf0] }
  0xab   : > { %1313 = vmatpush.bf16.msrb.mxu3 %v4607_v25  ;;  %v4291_v22 = vor.u32 %v5846_v21, %v4290_v20  ;;  %v5843_v25 = vld [vmem:[%s9333_s4 + $0xc] sm:$0xf]  ;;  %v5880_v15 = vld [vmem:[%s9333_s4 + $0x134] sm:$0xf]  ;;  %v4418_v21 = vld [vmem:[%s9333_s4 + $0x100] sm:$0xf] }
  0xac   : > { %1272 = vmatpush.bf16.msrb.mxu0 %v4387_v29  ;;  %v4484_v29 = vld [vmem:[%s9333_s4 + $0x1a0] sm:$0xf0]  ;;  %v4295_v30 = vor.u32 %v5843_v25, %v4292_v27  ;;  %v4444_v16 = vld [vmem:[%s9333_s4 + $0x148] sm:$0xf0]  ;;  %v4610_v25 = vld [vmem:[%s9333_s4 + $0x280] sm:$0xf] }
  0xad   : > { %1286 = vmatpush.bf16.msrb.mxu1 %v4579_v33  ;;  %v4487_v31 = vor.u32 %v5891_v28, %v4484_v29  ;;  %v4447_v23 = vor.u32 %v5880_v15, %v4444_v16  ;;  %v5874_v27 = vld [vmem:[%s9333_s4 + $0x104] sm:$0xf]  ;;  %v4420_v28 = vld [vmem:[%s9333_s4 + $0x118] sm:$0xf0]  ;;  %v4346_v58 = vld [vmem:[%s9333_s4 + $0x70] sm:$0xf] }
  0xae   : > { %1300 = vmatpush.bf16.msrb.mxu2 %v4391_v34  ;;  %v5922_v29 = vld [vmem:[%s9333_s4 + $0x284] sm:$0xf]  ;;  %v4324_v15 = vld [vmem:[%s9333_s4 + $0x58] sm:$0xf0] }
  0xaf   : > { %1314 = vmatpush.bf16.msrb.mxu3 %v4583_v37  ;;  %v5898_v16 = vld [vmem:[%s9333_s4 + $0x1c4] sm:$0xf] }
  0xb0   : > { %1273 = vmatpush.bf16.msrb.mxu0 %v4363_v42 }
  0xb1   : > { %1287 = vmatpush.bf16.msrb.mxu1 %v4555_v46 }
  0xb2   : > { %1301 = vmatpush.bf16.msrb.mxu2 %v4367_v47 }
  0xb3   : > { %1315 = vmatpush.bf16.msrb.mxu3 %v4559_v50  ;;  %v628_v50 = vperm.slane %v580_v45, 1  ;;  %v4370_v45 = vld [vmem:[%s9333_s4 + $0xa0] sm:$0xf] }
  0xb4   : > { %1274 = vmatpush.bf16.msrb.mxu0 %v4339_v55 }
  0xb5   : > { %1288 = vmatpush.bf16.msrb.mxu1 %v4531_v60 }
  0xb6   : > { %1302 = vmatpush.bf16.msrb.mxu2 %v4343_v61 }
  0xb7   : > { %1316 = vmatpush.bf16.msrb.mxu3 %v4535_v3  ;;  %v4660_v3 = vld [vmem:[%s9333_s4 + $0x2f8] sm:$0xf0] }
  0xb8   : > { %1275 = vmatpush.bf16.msrb.mxu0 %v4315_v9 }
  0xb9   : > { %1289 = vmatpush.bf16.msrb.mxu1 %v4507_v13  ;;  %v4634_v13 = vld [vmem:[%s9333_s4 + $0x2b0] sm:$0xf] }
  0xba   : > { %1303 = vmatpush.bf16.msrb.mxu2 %v4319_v14  ;;  %v5931_v14 = vld [vmem:[%s9333_s4 + $0x2c4] sm:$0xf0] }
  0xbb   : > { %1317 = vmatpush.bf16.msrb.mxu3 %v4511_v18  ;;  %v4636_v18 = vld [vmem:[%s9333_s4 + $0x2c8] sm:$0xf0]  ;;  %v4635_v20 = vor.u32 %v5931_v14, %v4634_v13  ;;  %v5901_v13 = vld [vmem:[%s9333_s4 + $0x1d4] sm:$0xf0]  ;;  %v5850_v14 = vld [vmem:[%s9333_s4 + $0x44] sm:$0xf] }
  0xbc   : > { %1276 = vmatpush.bf16.msrb.mxu0 %v4291_v22  ;;  %v5877_v22 = vld [vmem:[%s9333_s4 + $0x114] sm:$0xf0] }
  0xbd   : > { %1290 = vmatpush.bf16.msrb.mxu1 %v4483_v26  ;;  %v5925_v26 = vld [vmem:[%s9333_s4 + $0x294] sm:$0xf0] }
  0xbe   : > { %1304 = vmatpush.bf16.msrb.mxu2 %v4295_v30  ;;  %v4612_v30 = vld [vmem:[%s9333_s4 + $0x298] sm:$0xf0] }
  0xbf   : > { %1318 = vmatpush.bf16.msrb.mxu3 %v4487_v31  ;;  %v4419_v31 = vor.u32 %v5877_v22, %v4418_v21  ;;  %v5847_v21 = vld [vmem:[%s9333_s4 + $0x24] sm:$0xf0]  ;;  %v4327_v22 = vor.u32 %v5850_v14, %v4324_v15 }
  0xf4   : > { %v587_v12 = vpop.xlane.xlu0 %586 }
  0xf5   : > { %v598_v17 = vmul.f32 %v7174_v4, %v587_v12  ;;  %v4663_v12 = vor.u32 %v5934_v63, %v4660_v3  ;;  %v4540_v63 = vld [vmem:[%s9333_s4 + $0x208] sm:$0xf0] }
  0xf7   : > { %v600_v19 = vadd.f32 1e-06, %v598_v17  ;;  %v5928_v17 = vld [vmem:[%s9333_s4 + $0x2b4] sm:$0xf] }
  0xf8   : > { %v4639_v24 = vor.u32 %v5928_v17, %v4636_v18  ;;  %v4516_v17 = vld [vmem:[%s9333_s4 + $0x1d8] sm:$0xf0] }
  0xf9   : > { %6322 = vrsqrt.f32 %v600_v19  ;;  %vm608_vm2 = vweird.f32 %v600_v19 }
  0xfc   : > { %v590_v32 = vpop.xlane.xlu0 %589 }
  0xfd   : > { %v599_v33 = vmul.f32 %v7174_v4, %v590_v32  ;;  %v4611_v32 = vor.u32 %v5925_v26, %v4610_v25  ;;  %v5895_v25 = vld [vmem:[%s9333_s4 + $0x1a4] sm:$0xf0]  ;;  %v5844_v26 = vld [vmem:[%s9333_s4 + $0x14] sm:$0xf] }
  0xff   : > { %v6323_v34 = vpop.eup %6322  ;;  %v601_v35 = vadd.f32 1e-06, %v599_v33  ;;  %v4394_v33 = vld [vmem:[%s9333_s4 + $0xd0] sm:$0xf] }
 0x100   : > { %v603_v36 = vmul.f32 %v6323_v34, %v600_v19  ;;  %vm609_vm1 = vweird.f32 %v6323_v34  ;;  %v4443_v19 = vor.u32 %v5883_v10, %v4442_v56  ;;  %v5853_v56 = vld [vmem:[%s9333_s4 + $0x54] sm:$0xf0] }
 0x101   : > { %6324 = vrsqrt.f32 %v601_v35  ;;  %vm610_vm3 = vmor %vm608_vm2, %vm609_vm1  ;;  %vm618_vm5 = vweird.f32 %v601_v35 }
 0x102   : > { %v604_v37 = vmul.f32 %v6323_v34, %v603_v36  ;;  %v4615_v36 = vor.u32 %v5922_v29, %v4612_v30  ;;  %v4492_v29 = vld [vmem:[%s9333_s4 + $0x1a8] sm:$0xf0] }
 0x104   : > { %v605_v38 = vmul.f32 0.5, %v604_v37  ;;  %v4586_v37 = vld [vmem:[%s9333_s4 + $0x250] sm:$0xf] }
 0x106   : > { %v606_v39 = vsub.f32 1.5, %v605_v38  ;;  %v5919_v38 = vld [vmem:[%s9333_s4 + $0x264] sm:$0xf0] }
 0x107   : > { %v6325_v40 = vpop.eup %6324 }
 0x108   : > { %v613_v41 = vmul.f32 %v6325_v40, %v601_v35  ;;  %v607_v42 = vmul.f32 %v6323_v34, %v606_v39  ;;  %vm619_vm4 = vweird.f32 %v6325_v40  ;;  %v4423_v35 = vor.u32 %v5874_v27, %v4420_v28  ;;  %v5868_v39 = vld [vmem:[%s9333_s4 + $0xd4] sm:$0xf]  ;;  %v4300_v27 = vld [vmem:[%s9333_s4 + $0x28] sm:$0xf0] }
 0x109   : > { %vm620_vm6 = vmor %vm618_vm5, %vm619_vm4  ;;  %v5892_v28 = vld [vmem:[%s9333_s4 + $0x194] sm:$0xf] }
 0x10a   : > { %v614_v43 = vmul.f32 %v6325_v40, %v613_v41  ;;  %v611_v46 = vsel %vm610_vm3, %v6323_v34, %v607_v42  ;;  %v5871_v34 = vld [vmem:[%s9333_s4 + $0xe4] sm:$0xf0]  ;;  %v5916_v41 = vld [vmem:[%s9333_s4 + $0x254] sm:$0xf]  ;;  %v4588_v42 = vld [vmem:[%s9333_s4 + $0x268] sm:$0xf0] }
 0x10b   : > { %v622_v51 = vmul.f32 %v611_v46, %v6812_v0  ;;  %v623_v52 = vmul.f32 %v611_v46, %v6815_v1  ;;  %v4658_v0 = vld [vmem:[%s9333_s4 + $0x2e0] sm:$0xf]  ;;  %v5937_v1 = vld [vmem:[%s9333_s4 + $0x2f4] sm:$0xf0] }
 0x10c   : > { %v615_v44 = vmul.f32 0.5, %v614_v43  ;;  %v4659_v9 = vor.u32 %v5937_v1, %v4658_v0  ;;  %v4395_v43 = vor.u32 %v5871_v34, %v4394_v33  ;;  %v5865_v46 = vld [vmem:[%s9333_s4 + $0xb4] sm:$0xf0]  ;;  %v5859_v0 = vld [vmem:[%s9333_s4 + $0x84] sm:$0xf0]  ;;  %v4495_v33 = vor.u32 %v5892_v28, %v4492_v29 }
 0x10d   : > { %v632_v59 = vmul.f32 %v628_v50, %v623_v52  ;;  %v4372_v52 = vld [vmem:[%s9333_s4 + $0xb8] sm:$0xf0]  ;;  %v4347_v3 = vor.u32 %v5859_v0, %v4346_v58 }
 0x10e   : > { %v616_v47 = vsub.f32 1.5, %v615_v44  ;;  %v4587_v44 = vor.u32 %v5919_v38, %v4586_v37 }
 0x110   : > { %v617_v48 = vmul.f32 %v6325_v40, %v616_v47 }
 0x112   : > { %v621_v53 = vsel %vm620_vm6, %v6325_v40, %v617_v48  ;;  %v4396_v40 = vld [vmem:[%s9333_s4 + $0xe8] sm:$0xf0]  ;;  %v4591_v48 = vor.u32 %v5916_v41, %v4588_v42 }
 0x113   : > { %v624_v54 = vmul.f32 %v621_v53, %v6818_v2  ;;  %v625_v55 = vmul.f32 %v621_v53, %v6825_v5  ;;  %v5886_v2 = vld [vmem:[%s9333_s4 + $0x164] sm:$0xf]  ;;  %v631_v5 = vmul.f32 %v627_v49, %v622_v51  ;;  %v4399_v47 = vor.u32 %v5868_v39, %v4396_v40 }
 0x114   : > { %v4471_v11 = vor.u32 %v5886_v2, %v4468_v62  ;;  %v5862_v51 = vld [vmem:[%s9333_s4 + $0xa4] sm:$0xf]  ;;  %v5904_v62 = vld [vmem:[%s9333_s4 + $0x1f4] sm:$0xf] }
 0x115   : > { %v633_v60 = vmul.f32 %v627_v49, %v624_v54  ;;  %v634_v61 = vmul.f32 %v628_v50, %v625_v55  ;;  %v4562_v49 = vld [vmem:[%s9333_s4 + $0x220] sm:$0xf]  ;;  %v5913_v50 = vld [vmem:[%s9333_s4 + $0x234] sm:$0xf0]  ;;  %v5910_v53 = vld [vmem:[%s9333_s4 + $0x224] sm:$0xf]  ;;  %v4371_v55 = vor.u32 %v5865_v46, %v4370_v45  ;;  %v4375_v1 = vor.u32 %v5862_v51, %v4372_v52 }
 0x116   : > { %v4564_v54 = vld [vmem:[%s9333_s4 + $0x238] sm:$0xf0]  ;;  %v4563_v57 = vor.u32 %v5913_v50, %v4562_v49 }
 0x117   : > { %v7257_v6 = vpack.c.bf16 %v633_v60, %v631_v5  ;;  %v7259_v7 = vpack.c.bf16 %v634_v61, %v632_v59  ;;  %v4567_v2 = vor.u32 %v5910_v53, %v4564_v54  ;;  %v4538_v5 = vld [vmem:[%s9333_s4 + $0x1f0] sm:$0xf]  ;;  %v5907_v59 = vld [vmem:[%s9333_s4 + $0x204] sm:$0xf0]  ;;  %v5856_v60 = vld [vmem:[%s9333_s4 + $0x74] sm:$0xf] }
 0x118   : > { %v4348_v61 = vld [vmem:[%s9333_s4 + $0x88] sm:$0xf0] }
 0x119   : > { %1221 = vmatmul.bf16.vlgmr.msra.gmra.mxu0 %v7257_v6  ;;  %1235 = vmatmul.bf16.vlgmr.msra.gmra.mxu1 %v7259_v7  ;;  %v4351_v10 = vor.u32 %v5856_v60, %v4348_v61 }
 0x11a   : > { %1249 = vmatmul.bf16.vlgmr.msra.gmra.mxu2 %v7257_v6  ;;  %1263 = vmatmul.bf16.vlgmr.msra.gmra.mxu3 %v7259_v7 }
 0x11b   : > { %1325 = vmatpush.bf16.msra.mxu0 %v4467_v8  ;;  %1339 = vmatpush.bf16.msra.mxu1 %v4659_v9  ;;  %v4539_v8 = vor.u32 %v5907_v59, %v4538_v5  ;;  %v4322_v9 = vld [vmem:[%s9333_s4 + $0x40] sm:$0xf] }
 0x11c   : > { %1353 = vmatpush.bf16.msra.mxu2 %v4471_v11  ;;  %1367 = vmatpush.bf16.msra.mxu3 %v4663_v12  ;;  %v4543_v11 = vor.u32 %v5904_v62, %v4540_v63  ;;  %v4514_v12 = vld [vmem:[%s9333_s4 + $0x1c0] sm:$0xf]  ;;  %v4323_v18 = vor.u32 %v5853_v56, %v4322_v9 }
 0x11f   : > { %1326 = vmatpush.bf16.msra.mxu0 %v4443_v19  ;;  %1340 = vmatpush.bf16.msra.mxu1 %v4635_v20  ;;  %v4515_v19 = vor.u32 %v5901_v13, %v4514_v12  ;;  %v4298_v20 = vld [vmem:[%s9333_s4 + $0x10] sm:$0xf] }
 0x120   : > { %1354 = vmatpush.bf16.msra.mxu2 %v4447_v23  ;;  %1368 = vmatpush.bf16.msra.mxu3 %v4639_v24  ;;  %v4519_v23 = vor.u32 %v5898_v16, %v4516_v17  ;;  %v4490_v24 = vld [vmem:[%s9333_s4 + $0x190] sm:$0xf]  ;;  %v4299_v30 = vor.u32 %v5847_v21, %v4298_v20  ;;  %v578_v17 = vld [vmem:[%s9331_s2] sm:$0xff] }
 0x121   : > { %v576_v20 = vld [vmem:[%s9330_s1] sm:$0xff] }
 0x123   : > { %1327 = vmatpush.bf16.msra.mxu0 %v4419_v31  ;;  %1341 = vmatpush.bf16.msra.mxu1 %v4611_v32  ;;  %v4491_v31 = vor.u32 %v5895_v25, %v4490_v24  ;;  %v4303_v32 = vor.u32 %v5844_v26, %v4300_v27  ;;  %v577_v24 = vld [vmem:[%s9330_s1 + $0x8] sm:$0xff] }
 0x124   : > { %1355 = vmatpush.bf16.msra.mxu2 %v4423_v35  ;;  %1369 = vmatpush.bf16.msra.mxu3 %v4615_v36 }
 0x127   : > { %1328 = vmatpush.bf16.msra.mxu0 %v4395_v43  ;;  %1342 = vmatpush.bf16.msra.mxu1 %v4587_v44 }
 0x128   : > { %1356 = vmatpush.bf16.msra.mxu2 %v4399_v47  ;;  %1370 = vmatpush.bf16.msra.mxu3 %v4591_v48 }
 0x129   : > { %1277 = vmatmul.bf16.vlgmr.msrb.gmra.mxu0 %v7257_v6  ;;  %1291 = vmatmul.bf16.vlgmr.msrb.gmra.mxu1 %v7259_v7 }
 0x12a   : > { %1305 = vmatmul.bf16.vlgmr.msrb.gmra.mxu2 %v7257_v6  ;;  %1319 = vmatmul.bf16.vlgmr.msrb.gmra.mxu3 %v7259_v7 }
 0x12b   : > { %1329 = vmatpush.bf16.msra.mxu0 %v4371_v55  ;;  %1343 = vmatpush.bf16.msra.mxu1 %v4563_v57 }
 0x12c   : > { %1357 = vmatpush.bf16.msra.mxu2 %v4375_v1  ;;  %1371 = vmatpush.bf16.msra.mxu3 %v4567_v2 }
 0x12f   : > { %1330 = vmatpush.bf16.msra.mxu0 %v4347_v3  ;;  %1344 = vmatpush.bf16.msra.mxu1 %v4539_v8 }
 0x130   : > { %1358 = vmatpush.bf16.msra.mxu2 %v4351_v10  ;;  %1372 = vmatpush.bf16.msra.mxu3 %v4543_v11 }
 0x133   : > { %1331 = vmatpush.bf16.msra.mxu0 %v4323_v18  ;;  %1345 = vmatpush.bf16.msra.mxu1 %v4515_v19 }
 0x134   : > { %1359 = vmatpush.bf16.msra.mxu2 %v4327_v22  ;;  %1373 = vmatpush.bf16.msra.mxu3 %v4519_v23  ;;  %v579_v22 = vld [vmem:[%s9331_s2 + $0x8] sm:$0xff] }
 0x137   : > { %1332 = vmatpush.bf16.msra.mxu0 %v4299_v30  ;;  %1346 = vmatpush.bf16.msra.mxu1 %v4491_v31 }
 0x138   : > { %1360 = vmatpush.bf16.msra.mxu2 %v4303_v32  ;;  %1374 = vmatpush.bf16.msra.mxu3 %v4495_v33 }
 0x13a   : > { %1333 = vmatmul.bf16.vlgmr.msra.gmra.mxu0 %v7257_v6  ;;  %1347 = vmatmul.bf16.vlgmr.msra.gmra.mxu1 %v7259_v7 }
 0x13b   : > { %1361 = vmatmul.bf16.vlgmr.msra.gmra.mxu2 %v7257_v6  ;;  %1375 = vmatmul.bf16.vlgmr.msra.gmra.mxu3 %v7259_v7 }
 0x196   : > { %v1222_v34 = vpop.f32.mrf.mxu0  ;;  %v1236_v35 = vpop.f32.mrf.mxu1 }
 0x197   : > { %v7448_v53 = vadd.f32 %v1236_v35, %v1222_v34 }
 0x19d   : > { %v1250_v36 = vpop.f32.mrf.mxu2  ;;  %v1264_v37 = vpop.f32.mrf.mxu3 }
 0x19e   : > { %v7441_v38 = vadd.f32 %v1264_v37, %v1250_v36  ;;  %v1224_v39 = vpop.f32.mrf.mxu0  ;;  %v1238_v40 = vpop.f32.mrf.mxu1 }
 0x19f   : > { %v1239_v8 = vadd.f32 %v1238_v40, %v1224_v39 }
 0x1a0   : > { %1393 = vrot.lane.b32.xlu0 %v7441_v38, %s6499_s9 }
 0x1a5   : > { %v1252_v41 = vpop.f32.mrf.mxu2  ;;  %v1266_v42 = vpop.f32.mrf.mxu3 }
 0x1a6   : > { %v1278_v43 = vpop.f32.mrf.mxu0  ;;  %v1292_v44 = vpop.f32.mrf.mxu1  ;;  %v1267_v58 = vadd.f32 %v1266_v42, %v1252_v41 }
 0x1a7   : > { %v1293_v45 = vadd.f32 %v1292_v44, %v1278_v43 }
 0x1a9   : > { %1413 = vrot.lane.b32.xlu2 %v1293_v45, %s6499_s9  ;;  %v1409_v21 = vmul.f32 %v1293_v45, %v576_v20 }
 0x1ad   : > { %v1306_v6 = vpop.f32.mrf.mxu2  ;;  %v1320_v7 = vpop.f32.mrf.mxu3 }
 0x1ae   : > { %v1321_v46 = vadd.f32 %v1320_v7, %v1306_v6  ;;  %v1280_v47 = vpop.f32.mrf.mxu0  ;;  %v1294_v48 = vpop.f32.mrf.mxu1  ;;  %v1387_v6 = vmul.f32 %v7441_v38, %v576_v20 }
 0x1af   : > { %v1295_v49 = vadd.f32 %v1294_v48, %v1280_v47 }
 0x1b0   : > { %1417 = vrot.lane.b32.xlu1 %v1321_v46, %s6499_s9  ;;  %v1411_v36 = vmul.f32 %v1321_v46, %v576_v20 }
 0x1b1   : > { %1415 = vrot.lane.b32.xlu2 %v1295_v49, %s6499_s9  ;;  %v1410_v26 = vmul.f32 %v1295_v49, %v577_v24 }
 0x1b5   : > { %v1308_v50 = vpop.f32.mrf.mxu2  ;;  %v1322_v51 = vpop.f32.mrf.mxu3 }
 0x1b6   : > { %v1323_v52 = vadd.f32 %v1322_v51, %v1308_v50 }
 0x1b7   : > { %v1334_v54 = vpop.f32.mrf.mxu0  ;;  %v1348_v55 = vpop.f32.mrf.mxu1 }
 0x1b8   : > { %1419 = vrot.lane.b32.xlu1 %v1323_v52, %s6499_s9  ;;  %v1349_v57 = vadd.f32 %v1348_v55, %v1334_v54  ;;  %v1412_v41 = vmul.f32 %v1323_v52, %v577_v24  ;;  %v1388_v54 = vmul.f32 %v1267_v58, %v577_v24  ;;  %v1385_v52 = vmul.f32 %v7448_v53, %v576_v20 }
 0x1b9   : > { %1389 = vrot.lane.b32.xlu2 %v7448_v53, %s6499_s9 }
 0x1ba   : > { %v1381_v59 = vpack.c.bf16 %v1349_v57, %v1349_v57 }
 0x1bc   : > { %v1552_v63 = vunpack.c.l.b16 %v1381_v59 }
 0x1be   : > { %v1362_v0 = vpop.f32.mrf.mxu2  ;;  %v1376_v1 = vpop.f32.mrf.mxu3 }
 0x1bf   : > { %v1336_v2 = vpop.f32.mrf.mxu0  ;;  %v1350_v5 = vpop.f32.mrf.mxu1  ;;  %v1377_v62 = vadd.f32 %v1376_v1, %v1362_v0 }
 0x1c0   : > { %v1351_v60 = vadd.f32 %v1350_v5, %v1336_v2  ;;  %1395 = vrot.lane.b32.xlu1 %v1267_v58, %s6499_s9 }
 0x1c1   : > { %v1383_v11 = vpack.c.bf16 %v1377_v62, %v1377_v62 }
 0x1c2   : > { %v1382_v61 = vpack.c.bf16 %v1351_v60, %v1351_v60 }
 0x1c3   : > { %v1580_v14 = vunpack.c.l.b16 %v1383_v11 }
 0x1c4   : > { %v1553_v3 = vunpack.c.l.b16 %v1382_v61  ;;  %v1386_v61 = vmul.f32 %v1239_v8, %v577_v24 }
 0x1c6   : > { %v1554_v9 = vpack.c.b16 %v1553_v3, %v1552_v63  ;;  %v1364_v56 = vpop.f32.mrf.mxu2  ;;  %v1378_v10 = vpop.f32.mrf.mxu3 }
 0x1c7   : > { %v1379_v12 = vadd.f32 %v1378_v10, %v1364_v56 }
 0x1c8   : > { %1566 = vmatpush.bf16.msrb.mxu2 %v1554_v9  ;;  %1391 = vrot.lane.b32.xlu1 %v1239_v8, %s6499_s9 }
 0x1c9   : > { %v1384_v13 = vpack.c.bf16 %v1379_v12, %v1379_v12  ;;  %v1485_v12 = vlaneseq }
 0x1cb   : > { %v1581_v15 = vunpack.c.l.b16 %v1384_v13  ;;  %v1486_v13 = vshrl.u32 %v1485_v12, 7 }
 0x1cd   : > { %v1582_v16 = vpack.c.b16 %v1581_v15, %v1580_v14  ;;  %v1489_v14 = vand.u32 127, %v1485_v12  ;;  %v1487_v8 = vadd.s32 8, %v1486_v13  ;;  %v4718_v12 = vld [vmem:[%s9334_s5 + $0x68] sm:$0xf0] }
 0x1cf   : > { %1594 = vmatpush.bf16.msrb.mxu3 %v1582_v16  ;;  %vm1490_vm7 = vcmp.le.s32.totalorder %v1489_v14, %v1486_v13  ;;  %vm1491_vm9 = vcmp.le.s32.totalorder %v1489_v14, %v1487_v8  ;;  %v5963_v8 = vld [vmem:[%s9334_s5 + $0xc4] sm:$0xf0] }
 0x203   : > { %v1414_v18 = vpop.permute.xlu2 %1413 }
 0x204   : > { %v1421_v19 = vmul.f32 %v1414_v18, %v578_v17 }
 0x206   : > { %v1425_v23 = vadd.f32 %v1421_v19, %v1409_v21 }
 0x208   : > { %v1429_v28 = vpack.c.bf16 %v1425_v23, %v1425_v23 }
 0x20a   : > { %v1441_v31 = vunpack.c.l.b16 %v1429_v28 }
 0x20b   : > { %v1416_v25 = vpop.permute.xlu2 %1415 }
 0x20c   : > { %v1422_v27 = vmul.f32 %v1416_v25, %v579_v22 }
 0x20e   : > { %v1426_v29 = vadd.f32 %v1422_v27, %v1410_v26 }
 0x210   : > { %v1430_v30 = vpack.c.bf16 %v1426_v29, %v1426_v29 }
 0x212   : > { %v1442_v32 = vunpack.c.l.b16 %v1430_v30  ;;  %v1394_v39 = vpop.permute.xlu0 %1393 }
 0x213   : > { %v1399_v43 = vmul.f32 %v1394_v39, %v578_v17  ;;  %v1390_v50 = vpop.permute.xlu2 %1389 }
 0x214   : > { %v1443_v33 = vpack.c.b16 %v1442_v32, %v1441_v31  ;;  %v1397_v0 = vmul.f32 %v1390_v50, %v578_v17 }
 0x215   : > { %v1403_v47 = vadd.f32 %v1399_v43, %v1387_v6 }
 0x216   : > { %1452 = vmatpush.bf16.xpose.msrb.mxu0 %v1443_v33  ;;  %v1401_v59 = vadd.f32 %v1397_v0, %v1385_v52  ;;  %v4782_v0 = vld [vmem:[%s9334_s5 + $0xe8] sm:$0xf0] }
 0x217   : > { %v1407_v46 = vpack.c.bf16 %v1403_v47, %v1403_v47  ;;  %v4788_v47 = vld [vmem:[%s9334_s5 + $0xf0] sm:$0xf] }
 0x218   : > { %v1405_v3 = vpack.c.bf16 %v1401_v59, %v1401_v59  ;;  %v4726_v59 = vld [vmem:[%s9334_s5 + $0x78] sm:$0xf0] }
 0x219   : > { %v1461_v5 = vunpack.c.l.b16 %v1407_v46  ;;  %v5966_v46 = vld [vmem:[%s9334_s5 + $0xe4] sm:$0xf] }
 0x21a   : > { %v1435_v56 = vunpack.c.l.b16 %v1405_v3  ;;  %v5964_v3 = vld [vmem:[%s9334_s5 + $0xd4] sm:$0xf] }
 0x222   : > { %v1418_v34 = vpop.permute.xlu1 %1417 }
 0x223   : > { %v1423_v35 = vmul.f32 %v1418_v34, %v578_v17 }
 0x225   : > { %v1427_v37 = vadd.f32 %v1423_v35, %v1411_v36 }
 0x227   : > { %v1431_v44 = vpack.c.bf16 %v1427_v37, %v1427_v37 }
 0x229   : > { %v1467_v48 = vunpack.c.l.b16 %v1431_v44 }
 0x22a   : > { %v1420_v40 = vpop.permute.xlu1 %1419 }
 0x22b   : > { %v1424_v42 = vmul.f32 %v1420_v40, %v579_v22 }
 0x22d   : > { %v1428_v45 = vadd.f32 %v1424_v42, %v1412_v41 }
 0x22f   : > { %v1432_v7 = vpack.c.bf16 %v1428_v45, %v1428_v45 }
 0x231   : > { %v1468_v49 = vunpack.c.l.b16 %v1432_v7 }
 0x232   : > { %v1396_v51 = vpop.permute.xlu1 %1395 }
 0x233   : > { %v1469_v55 = vpack.c.b16 %v1468_v49, %v1467_v48  ;;  %v1400_v57 = vmul.f32 %v1396_v51, %v579_v22  ;;  %v5969_v48 = vld [vmem:[%s9334_s5 + $0xf4] sm:$0xf0]  ;;  %v5968_v49 = vld [vmem:[%s9334_s5 + $0xf4] sm:$0xf]  ;;  %v4790_v51 = vld [vmem:[%s9334_s5 + $0xf8] sm:$0xf0] }
 0x234   : > { %v4789_v50 = vor.u32 %v5969_v48, %v4788_v47  ;;  %v5961_v47 = vld [vmem:[%s9334_s5 + $0xb4] sm:$0xf0] }
 0x235   : > { %v1404_v1 = vadd.f32 %v1400_v57, %v1388_v54  ;;  %1478 = vmatpush.bf16.xpose.msrb.mxu1 %v1469_v55  ;;  %v4780_v54 = vld [vmem:[%s9334_s5 + $0xe0] sm:$0xf]  ;;  %v5967_v55 = vld [vmem:[%s9334_s5 + $0xe4] sm:$0xf0]  ;;  %v4793_v57 = vor.u32 %v5968_v49, %v4790_v51  ;;  %v4758_v51 = vld [vmem:[%s9334_s5 + $0xb8] sm:$0xf0] }
 0x236   : > { %1837 = vmatpush.bf16.msra.mxu2 %v4789_v50  ;;  %v4781_v52 = vor.u32 %v5967_v55, %v4780_v54  ;;  %v5960_v50 = vld [vmem:[%s9334_s5 + $0xb4] sm:$0xf]  ;;  %v4700_v55 = vld [vmem:[%s9334_s5 + $0x40] sm:$0xf] }
 0x237   : > { %v1408_v2 = vpack.c.bf16 %v1404_v1, %v1404_v1  ;;  %v4724_v1 = vld [vmem:[%s9334_s5 + $0x70] sm:$0xf]  ;;  %1851 = vmatpush.bf16.msra.mxu3 %v4793_v57  ;;  %v4761_v54 = vor.u32 %v5960_v50, %v4758_v51  ;;  %v5947_v57 = vld [vmem:[%s9334_s5 + $0x44] sm:$0xf0] }
 0x239   : > { %v1462_v60 = vunpack.c.l.b16 %v1408_v2  ;;  %v5953_v2 = vld [vmem:[%s9334_s5 + $0x74] sm:$0xf0] }
 0x23a   : > { %v1392_v38 = vpop.permute.xlu1 %1391  ;;  %1838 = vmatpush.bf16.msra.mxu2 %v4781_v52  ;;  %v4748_v52 = vld [vmem:[%s9334_s5 + $0xa0] sm:$0xf] }
 0x23b   : > { %v1463_v62 = vpack.c.b16 %v1462_v60, %v1461_v5  ;;  %v1398_v63 = vmul.f32 %v1392_v38, %v579_v22  ;;  %v5952_v5 = vld [vmem:[%s9334_s5 + $0x74] sm:$0xf]  ;;  %v4785_v60 = vor.u32 %v5966_v46, %v4782_v0  ;;  %v4725_v38 = vor.u32 %v5953_v2, %v4724_v1  ;;  %v5946_v46 = vld [vmem:[%s9334_s5 + $0x44] sm:$0xf]  ;;  %v4702_v1 = vld [vmem:[%s9334_s5 + $0x48] sm:$0xf0] }
 0x23c   : > { %v4701_v0 = vor.u32 %v5947_v57, %v4700_v55  ;;  %v5959_v2 = vld [vmem:[%s9334_s5 + $0xa4] sm:$0xf0]  ;;  %v6030_v55 = vld [vmem:[%s9336_s7 + $0x1dc] sm:$0xf0] }
 0x23d   : > { %v1402_v9 = vadd.f32 %v1398_v63, %v1386_v61  ;;  %1479 = vmatmul.bf16.vlgmr.msrb.gmra.mxu1 %v1463_v62  ;;  %v4729_v61 = vor.u32 %v5952_v5, %v4726_v59  ;;  %v4772_v62 = vld [vmem:[%s9334_s5 + $0xd0] sm:$0xf]  ;;  %v5965_v63 = vld [vmem:[%s9334_s5 + $0xd4] sm:$0xf0]  ;;  %1723 = vmatpush.bf16.msra.mxu0 %v4725_v38  ;;  %v4705_v5 = vor.u32 %v5946_v46, %v4702_v1  ;;  %v4750_v38 = vld [vmem:[%s9334_s5 + $0xa8] sm:$0xf0] }
 0x23e   : > { %v4773_v13 = vor.u32 %v5965_v63, %v4772_v62  ;;  %1852 = vmatpush.bf16.msra.mxu3 %v4785_v60  ;;  %v4749_v59 = vor.u32 %v5959_v2, %v4748_v52  ;;  %v5958_v60 = vld [vmem:[%s9334_s5 + $0xa4] sm:$0xf]  ;;  %v4692_v62 = vld [vmem:[%s9334_s5 + $0x30] sm:$0xf]  ;;  %v5945_v63 = vld [vmem:[%s9334_s5 + $0x34] sm:$0xf0] }
 0x23f   : > { %v1406_v58 = vpack.c.bf16 %v1402_v9, %v1402_v9  ;;  %v4774_v9 = vld [vmem:[%s9334_s5 + $0xd8] sm:$0xf0]  ;;  %1737 = vmatpush.bf16.msra.mxu1 %v4729_v61  ;;  %v4753_v61 = vor.u32 %v5958_v60, %v4750_v38  ;;  %v5276_v57 = vld [vmem:[%s9336_s7 + $0x3c0] sm:$0xf]  ;;  %v6026_v1 = vld [vmem:[%s9336_s7 + $0x1c4] sm:$0xf] }
 0x240   : > { %1839 = vmatpush.bf16.msra.mxu2 %v4773_v13  ;;  %v5956_v13 = vld [vmem:[%s9334_s5 + $0x94] sm:$0xf]  ;;  %v5022_v52 = vld [vmem:[%s9336_s7 + $0x1e0] sm:$0xf0]  ;;  %v4988_v38 = vld [vmem:[%s9336_s7 + $0x180] sm:$0xf] }
 0x241   : > { %v1436_v10 = vunpack.c.l.b16 %v1406_v58  ;;  %v4716_v58 = vld [vmem:[%s9334_s5 + $0x60] sm:$0xf]  ;;  %v5278_v60 = vld [vmem:[%s9336_s7 + $0x3e0] sm:$0xf0] }
 0x243   : > { %v1437_v11 = vpack.c.b16 %v1436_v10, %v1435_v56  ;;  %v5951_v56 = vld [vmem:[%s9334_s5 + $0x64] sm:$0xf0] }
 0x244   : > { %v4717_v10 = vor.u32 %v5951_v56, %v4716_v58  ;;  %v4694_v58 = vld [vmem:[%s9334_s5 + $0x38] sm:$0xf0]  ;;  %v4740_v56 = vld [vmem:[%s9334_s5 + $0x90] sm:$0xf] }
 0x245   : > { %1453 = vmatmul.bf16.vlgmr.msrb.gmra.mxu0 %v1437_v11  ;;  %v5950_v11 = vld [vmem:[%s9334_s5 + $0x64] sm:$0xf] }
 0x246   : > { %v4721_v14 = vor.u32 %v5950_v11, %v4718_v12  ;;  %1724 = vmatpush.bf16.msra.mxu0 %v4717_v10  ;;  %v5957_v10 = vld [vmem:[%s9334_s5 + $0x94] sm:$0xf0] }
 0x247   : > { %v4741_v12 = vor.u32 %v5957_v10, %v4740_v56  ;;  %v6018_v56 = vld [vmem:[%s9336_s7 + $0x184] sm:$0xf] }
 0x248   : > { %1738 = vmatpush.bf16.msra.mxu1 %v4721_v14  ;;  %v4742_v14 = vld [vmem:[%s9334_s5 + $0x98] sm:$0xf0]  ;;  %v4990_v10 = vld [vmem:[%s9336_s7 + $0x1a0] sm:$0xf0] }
 0x2ba   : > { %v1480_v53 = vpop.f32.mrf.mxu1 }
 0x2bb   : > { %v1494_v15 = vsel %vm1490_vm7, %v1480_v53, -1e+30 }
 0x2bc   : > { %v1503_v16 = vsel %vm1496_vm8, %v1494_v15, -inf }
 0x2bd   : > { %1504 = vmax.xlane.f32.xlu2 %v1503_v16  ;;  %v4764_v16 = vld [vmem:[%s9334_s5 + $0xc0] sm:$0xf] }
 0x2c2   : > { %v1454_v17 = vpop.f32.mrf.mxu0  ;;  %v1482_v18 = vpop.f32.mrf.mxu1 }
 0x2c3   : > { %v1492_v19 = vsel %vm1490_vm7, %v1454_v17, -1e+30  ;;  %v1495_v20 = vsel %vm1491_vm9, %v1482_v18, -1e+30 }
 0x2c4   : > { %v1506_v21 = vsel %vm1496_vm8, %v1495_v20, -inf  ;;  %v1497_v22 = vsel %vm1496_vm8, %v1492_v19, -inf }
 0x2c5   : > { %1507 = vmax.xlane.f32.xlu1 %v1506_v21  ;;  %1498 = vmax.xlane.f32.xlu0 %v1497_v22  ;;  %v4765_v21 = vor.u32 %v5963_v8, %v4764_v16  ;;  %v5943_v16 = vld [vmem:[%s9334_s5 + $0x24] sm:$0xf0]  ;;  %v5942_v8 = vld [vmem:[%s9334_s5 + $0x24] sm:$0xf] }
 0x2c7   : > { %1840 = vmatpush.bf16.msra.mxu2 %v4765_v21 }
 0x2ca   : > { %v1456_v23 = vpop.f32.mrf.mxu0 }
 0x2cb   : > { %v1493_v24 = vsel %vm1491_vm9, %v1456_v23, -1e+30 }
 0x2cc   : > { %v1500_v25 = vsel %vm1496_vm8, %v1493_v24, -inf }
 0x2cd   : > { %1501 = vmax.xlane.f32.xlu2 %v1500_v25 }
 0x330   : > { %v1505_v26 = vpop.xlane.xlu2 %1504 }
 0x331   : > { %v1511_v27 = vsub.f32 %v1494_v15, %v1505_v26  ;;  %v4777_v15 = vor.u32 %v5964_v3, %v4774_v9  ;;  %v5944_v3 = vld [vmem:[%s9334_s5 + $0x34] sm:$0xf]  ;;  %v4693_v9 = vor.u32 %v5945_v63, %v4692_v62  ;;  %v6022_v62 = vld [vmem:[%s9336_s7 + $0x19c] sm:$0xf0] }
 0x332   : > { %v4697_v11 = vor.u32 %v5944_v3, %v4694_v58  ;;  %v5244_v63 = vld [vmem:[%s9336_s7 + $0x380] sm:$0xf] }
 0x333   : > { %v1517_v28 = vmul.f32 1.442695, %v1511_v27  ;;  %1853 = vmatpush.bf16.msra.mxu3 %v4777_v15  ;;  %v4684_v15 = vld [vmem:[%s9334_s5 + $0x20] sm:$0xf] }
 0x334   : > { %v6086_v3 = vld [vmem:[%s9336_s7 + $0x39c] sm:$0xf0] }
 0x335   : > { %6326 = vpow2.f32 %v1517_v28  ;;  %v5245_v58 = vor.u32 %v6086_v3, %v5244_v63  ;;  %v5118_v63 = vld [vmem:[%s9336_s7 + $0x2a0] sm:$0xf0] }
 0x338   : > { %v1508_v29 = vpop.xlane.xlu1 %1507  ;;  %v1499_v30 = vpop.xlane.xlu0 %1498 }
 0x339   : > { %v1512_v31 = vsub.f32 %v1495_v20, %v1508_v29  ;;  %v1509_v32 = vsub.f32 %v1492_v19, %v1499_v30  ;;  %v5962_v19 = vld [vmem:[%s9334_s5 + $0xc4] sm:$0xf]  ;;  %v4766_v20 = vld [vmem:[%s9334_s5 + $0xc8] sm:$0xf0] }
 0x33a   : > { %v4769_v23 = vor.u32 %v5962_v19, %v4766_v20  ;;  %v4732_v19 = vld [vmem:[%s9334_s5 + $0x80] sm:$0xf]  ;;  %v5955_v20 = vld [vmem:[%s9334_s5 + $0x84] sm:$0xf0] }
 0x33b   : > { %v7473_v33 = vpop.eup %6326  ;;  %v1519_v34 = vmul.f32 1.442695, %v1512_v31  ;;  %v1513_v35 = vmul.f32 1.442695, %v1509_v32 }
 0x33c   : > { %v1527_v36 = vsel %vm1496_vm8, %v7473_v33, 0.0  ;;  %1854 = vmatpush.bf16.msra.mxu3 %v4769_v23  ;;  %v5954_v23 = vld [vmem:[%s9334_s5 + $0x84] sm:$0xf] }
 0x33d   : > { %6328 = vpow2.f32 %v1519_v34  ;;  %1528 = vadd.xlane.f32.xlu2 %v1527_v36 }
 0x33e   : > { %6330 = vpow2.f32 %v1513_v35 }
 0x340   : > { %v1502_v37 = vpop.xlane.xlu2 %1501  ;;  %1855 = vmatpush.bf16.msra.mxu3 %v4761_v54  ;;  %v5020_v54 = vld [vmem:[%s9336_s7 + $0x1c0] sm:$0xf] }
 0x341   : > { %v1510_v39 = vsub.f32 %v1493_v24, %v1502_v37  ;;  %v5021_v46 = vor.u32 %v6030_v55, %v5020_v54 }
 0x343   : > { %v7477_v40 = vpop.eup %6328  ;;  %v1515_v41 = vmul.f32 1.442695, %v1510_v39 }
 0x344   : > { %v7479_v42 = vpop.eup %6330  ;;  %v1530_v43 = vsel %vm1496_vm8, %v7477_v40, 0.0  ;;  %1856 = vmatpush.bf16.msra.mxu3 %v4753_v61 }
 0x345   : > { %6332 = vpow2.f32 %v1515_v41  ;;  %1531 = vadd.xlane.f32.xlu1 %v1530_v43  ;;  %v1521_v44 = vsel %vm1496_vm8, %v7479_v42, 0.0  ;;  %v4708_v43 = vld [vmem:[%s9334_s5 + $0x50] sm:$0xf] }
 0x346   : > { %1522 = vadd.xlane.f32.xlu0 %v1521_v44  ;;  %v5948_v44 = vld [vmem:[%s9334_s5 + $0x54] sm:$0xf] }
 0x34b   : > { %v7485_v45 = vpop.eup %6332 }
 0x34c   : > { %v1524_v6 = vsel %vm1496_vm8, %v7485_v45, 0.0 }
 0x34d   : > { %1525 = vadd.xlane.f32.xlu2 %v1524_v6  ;;  %v4710_v6 = vld [vmem:[%s9334_s5 + $0x58] sm:$0xf0] }
 0x34e   : > { %v4713_v48 = vor.u32 %v5948_v44, %v4710_v6 }
 0x350   : > { %1739 = vmatpush.bf16.msra.mxu1 %v4713_v48 }
 0x354   : > { %1740 = vmatpush.bf16.msra.mxu1 %v4705_v5  ;;  %v5025_v5 = vor.u32 %v6026_v1, %v5022_v52  ;;  %v5116_v1 = vld [vmem:[%s9336_s7 + $0x280] sm:$0xf] }
 0x355   : > { %v6054_v52 = vld [vmem:[%s9336_s7 + $0x29c] sm:$0xf0] }
 0x358   : > { %1741 = vmatpush.bf16.msra.mxu1 %v4697_v11  ;;  %v6082_v11 = vld [vmem:[%s9336_s7 + $0x384] sm:$0xf] }
 0x3b0   : > { %v1529_v7 = vpop.xlane.xlu2 %1528 }
 0x3b1   : > { %6334 = vrcp.f32 %v1529_v7  ;;  %v4756_v7 = vld [vmem:[%s9334_s5 + $0xb0] sm:$0xf] }
 0x3b2   : > { %v4757_v49 = vor.u32 %v5961_v47, %v4756_v7 }
 0x3b4   : > { %1841 = vmatpush.bf16.msra.mxu2 %v4757_v49 }
 0x3b7   : > { %v6335_v17 = vpop.eup %6334 }
 0x3b8   : > { %v1532_v53 = vpop.xlane.xlu1 %1531  ;;  %v1539_v22 = vmul.f32 %v6335_v17, %v7473_v33  ;;  %1842 = vmatpush.bf16.msra.mxu2 %v4749_v59  ;;  %v4685_v17 = vor.u32 %v5943_v16, %v4684_v15  ;;  %v6090_v59 = vld [vmem:[%s9336_s7 + $0x3c4] sm:$0xf]  ;;  %v5212_v16 = vld [vmem:[%s9336_s7 + $0x340] sm:$0xf] }
 0x3b9   : > { %6336 = vrcp.f32 %v1532_v53  ;;  %v1523_v18 = vpop.xlane.xlu0 %1522  ;;  %v4745_v53 = vor.u32 %v5956_v13, %v4742_v14  ;;  %v5281_v61 = vor.u32 %v6090_v59, %v5278_v60  ;;  %v5246_v13 = vld [vmem:[%s9336_s7 + $0x3a0] sm:$0xf0]  ;;  %v4956_v14 = vld [vmem:[%s9336_s7 + $0x140] sm:$0xf]  ;;  %v6383_v60 = vld [vmem:[%s6804_s10 + $0x8] sm:$0xff] }
 0x3ba   : > { %6338 = vrcp.f32 %v1523_v18  ;;  %v1543_v25 = vpack.c.bf16 %v1539_v22, %v1539_v22  ;;  %v4686_v18 = vld [vmem:[%s9334_s5 + $0x28] sm:$0xf0]  ;;  %v4733_v22 = vor.u32 %v5955_v20, %v4732_v19  ;;  %v5249_v15 = vor.u32 %v6082_v11, %v5246_v13  ;;  %v4958_v19 = vld [vmem:[%s9336_s7 + $0x160] sm:$0xf0] }
 0x3bb   : > { %1857 = vmatpush.bf16.msra.mxu3 %v4745_v53  ;;  %v4689_v21 = vor.u32 %v5942_v8, %v4686_v18  ;;  %v6014_v53 = vld [vmem:[%s9336_s7 + $0x15c] sm:$0xf0]  ;;  %v6074_v20 = vld [vmem:[%s9336_s7 + $0x344] sm:$0xf] }
 0x3bc   : > { %v1575_v30 = vunpack.c.l.b16 %v1543_v25  ;;  %1843 = vmatpush.bf16.msra.mxu2 %v4741_v12  ;;  %v4993_v12 = vor.u32 %v6018_v56, %v4990_v10  ;;  %v6078_v8 = vld [vmem:[%s9336_s7 + $0x35c] sm:$0xf0]  ;;  %v4957_v18 = vor.u32 %v6014_v53, %v4956_v14  ;;  %v5117_v56 = vor.u32 %v6054_v52, %v5116_v1  ;;  %v5286_v52 = vld [vmem:[%s9336_s7 + $0x3e8] sm:$0xf0] }
 0x3bd   : > { %1742 = vmatpush.bf16.msra.mxu1 %v4689_v21  ;;  %v5214_v21 = vld [vmem:[%s9336_s7 + $0x360] sm:$0xf0] }
 0x3bf   : > { %v6337_v24 = vpop.eup %6336 }
 0x3c0   : > { %v1540_v26 = vmul.f32 %v6337_v24, %v7477_v40  ;;  %v1526_v27 = vpop.xlane.xlu2 %1525  ;;  %v6339_v28 = vpop.eup %6338  ;;  %v4734_v24 = vld [vmem:[%s9334_s5 + $0x88] sm:$0xf0]  ;;  %1844 = vmatpush.bf16.msra.mxu2 %v4733_v22  ;;  %v5213_v22 = vor.u32 %v6078_v8, %v5212_v16 }
 0x3c1   : > { %6340 = vrcp.f32 %v1526_v27  ;;  %v1537_v32 = vmul.f32 %v6339_v28, %v7479_v42  ;;  %v5949_v42 = vld [vmem:[%s9334_s5 + $0x54] sm:$0xf0]  ;;  %v4737_v25 = vor.u32 %v5954_v23, %v4734_v24  ;;  %v5940_v28 = vld [vmem:[%s9334_s5 + $0x14] sm:$0xf]  ;;  %v4924_v24 = vld [vmem:[%s9336_s7 + $0x100] sm:$0xf] }
 0x3c2   : > { %v1544_v29 = vpack.c.bf16 %v1540_v26, %v1540_v26  ;;  %v4676_v26 = vld [vmem:[%s9334_s5 + $0x10] sm:$0xf]  ;;  %v5941_v27 = vld [vmem:[%s9334_s5 + $0x14] sm:$0xf0] }
 0x3c3   : > { %v1541_v36 = vpack.c.bf16 %v1537_v32, %v1537_v32  ;;  %1858 = vmatpush.bf16.msra.mxu3 %v4737_v25  ;;  %v4668_v32 = vld [vmem:[%s9334_s5] sm:$0xf] }
 0x3c4   : > { %v1576_v31 = vunpack.c.l.b16 %v1544_v29  ;;  %v4677_v29 = vor.u32 %v5941_v27, %v4676_v26  ;;  %v6006_v25 = vld [vmem:[%s9336_s7 + $0x11c] sm:$0xf0]  ;;  %v5217_v27 = vor.u32 %v6074_v20, %v5214_v21 }
 0x3c5   : > { %v1547_v39 = vunpack.c.l.b16 %v1541_v36  ;;  %v5180_v26 = vld [vmem:[%s9336_s7 + $0x300] sm:$0xf] }
 0x3c6   : > { %v1577_v34 = vpack.c.b16 %v1576_v31, %v1575_v30  ;;  %v4678_v30 = vld [vmem:[%s9334_s5 + $0x18] sm:$0xf0] }
 0x3c7   : > { %v6341_v35 = vpop.eup %6340  ;;  %v4681_v31 = vor.u32 %v5940_v28, %v4678_v30  ;;  %v6070_v28 = vld [vmem:[%s9336_s7 + $0x31c] sm:$0xf0]  ;;  %v4926_v30 = vld [vmem:[%s9336_s7 + $0x120] sm:$0xf0] }
 0x3c8   : > { %v1538_v33 = vmul.f32 %v6341_v35, %v7485_v45  ;;  %4665 = vmatmul.msk.bf16.vlgmr.msrb.gmra.mxu3 %vm1496_vm8, %v1577_v34  ;;  %v4709_v45 = vor.u32 %v5949_v42, %v4708_v43  ;;  %v5939_v34 = vld [vmem:[%s9334_s5 + $0x4] sm:$0xf0]  ;;  %v5938_v35 = vld [vmem:[%s9334_s5 + $0x4] sm:$0xf] }
 0x3c9   : > { %1743 = vmatpush.bf16.msra.mxu1 %v4681_v31  ;;  %v4669_v36 = vor.u32 %v5939_v34, %v4668_v32  ;;  %2733 = vmatpush.bf16.msrb.mxu3 %v5281_v61  ;;  %v6066_v31 = vld [vmem:[%s9336_s7 + $0x304] sm:$0xf]  ;;  %v4925_v34 = vor.u32 %v6006_v25, %v4924_v24  ;;  %v4828_v24 = vld [vmem:[%s9336_s7 + $0x40] sm:$0xf] }
 0x3ca   : > { %v1542_v37 = vpack.c.bf16 %v1538_v33, %v1538_v33  ;;  %1725 = vmatpush.bf16.msra.mxu0 %v4709_v45  ;;  %v4670_v33 = vld [vmem:[%s9334_s5 + $0x8] sm:$0xf0]  ;;  %v5182_v32 = vld [vmem:[%s9336_s7 + $0x320] sm:$0xf0]  ;;  %v5982_v25 = vld [vmem:[%s9336_s7 + $0x5c] sm:$0xf0] }
 0x3cb   : > { %v4862_v61 = vld [vmem:[%s9336_s7 + $0xa0] sm:$0xf0] }
 0x3cc   : > { %v1548_v41 = vunpack.c.l.b16 %v1542_v37  ;;  %v4673_v37 = vor.u32 %v5938_v35, %v4670_v33  ;;  %v4892_v35 = vld [vmem:[%s9336_s7 + $0xc0] sm:$0xf] }
 0x3cd   : > { %2734 = vmatpush.bf16.msrb.mxu3 %v5249_v15 }
 0x3ce   : > { %v1549_v40 = vpack.c.b16 %v1548_v41, %v1547_v39  ;;  %1726 = vmatpush.bf16.msra.mxu0 %v4701_v0  ;;  %1744 = vmatpush.bf16.msra.mxu1 %v4673_v37  ;;  %v6094_v0 = vld [vmem:[%s9336_s7 + $0x3dc] sm:$0xf0] }
 0x3cf   : > { %v5277_v2 = vor.u32 %v6094_v0, %v5276_v57  ;;  %v5998_v37 = vld [vmem:[%s9336_s7 + $0xdc] sm:$0xf0] }
 0x3d0   : > { %4664 = vmatmul.msk.bf16.vlgmr.msrb.gmra.mxu2 %vm1496_vm8, %v1549_v40  ;;  %v4860_v57 = vld [vmem:[%s9336_s7 + $0x80] sm:$0xf] }
 0x3d1   : > { %2719 = vmatpush.bf16.msrb.mxu2 %v5025_v5  ;;  %2735 = vmatpush.bf16.msrb.mxu3 %v5217_v27  ;;  %v6382_v5 = vld [vmem:[%s6804_s10] sm:$0xff]  ;;  %v4829_v27 = vor.u32 %v5982_v25, %v4828_v24  ;;  %v4932_v25 = vld [vmem:[%s9336_s7 + $0x108] sm:$0xf] }
 0x3d2   : > { %1727 = vmatpush.bf16.msra.mxu0 %v4693_v9  ;;  %2705 = vmatpush.bf16.msrb.mxu1 %v5277_v2  ;;  %v4989_v9 = vor.u32 %v6022_v62, %v4988_v38  ;;  %v5986_v2 = vld [vmem:[%s9336_s7 + $0x84] sm:$0xf] }
 0x3d3   : > { %v6050_v62 = vld [vmem:[%s9336_s7 + $0x284] sm:$0xf]  ;;  %v4865_v10 = vor.u32 %v5986_v2, %v4862_v61  ;;  %v4996_v2 = vld [vmem:[%s9336_s7 + $0x188] sm:$0xf] }
 0x3d4   : > { %v5121_v11 = vor.u32 %v6050_v62, %v5118_v63  ;;  %v5252_v62 = vld [vmem:[%s9336_s7 + $0x388] sm:$0xf] }
 0x3d5   : > { %2720 = vmatpush.bf16.msrb.mxu2 %v4993_v12  ;;  %v6087_v63 = vld [vmem:[%s9336_s7 + $0x3a4] sm:$0xf0] }
 0x3d6   : > { %1728 = vmatpush.bf16.msra.mxu0 %v4685_v17  ;;  %v6010_v17 = vld [vmem:[%s9336_s7 + $0x144] sm:$0xf]  ;;  %2706 = vmatpush.bf16.msrb.mxu1 %v5245_v58 }
 0x3d7   : > { %v4961_v23 = vor.u32 %v6010_v17, %v4958_v19  ;;  %v6384_v17 = vld [vmem:[%s6804_s10 + $0x10] sm:$0xff]  ;;  %v6385_v19 = vld [vmem:[%s6804_s10 + $0x18] sm:$0xff]  ;;  %s9365_s10 = sld [smem:[#allocation14_spill]] }
 0x3d9   : > { %2721 = vmatpush.bf16.msrb.mxu2 %v4961_v23 }
 0x3da   : > { %1729 = vmatpush.bf16.msra.mxu0 %v4677_v29  ;;  %v6002_v29 = vld [vmem:[%s9336_s7 + $0x104] sm:$0xf]  ;;  %2707 = vmatpush.bf16.msrb.mxu1 %v5213_v22 }
 0x3db   : > { %v4929_v33 = vor.u32 %v6002_v29, %v4926_v30  ;;  %v5978_v29 = vld [vmem:[%s9336_s7 + $0x44] sm:$0xf] }
 0x3dc   : > { %v4830_v30 = vld [vmem:[%s9336_s7 + $0x60] sm:$0xf0] }
 0x3dd   : > { %2722 = vmatpush.bf16.msrb.mxu2 %v4929_v33  ;;  %v4796_v33 = vld [vmem:[%s9336_s7] sm:$0xf] }
 0x3de   : > { %1730 = vmatpush.bf16.msra.mxu0 %v4669_v36  ;;  %v5181_v36 = vor.u32 %v6070_v28, %v5180_v26  ;;  %v5084_v26 = vld [vmem:[%s9336_s7 + $0x240] sm:$0xf] }
 0x3df   : > { %v6046_v28 = vld [vmem:[%s9336_s7 + $0x25c] sm:$0xf0] }
 0x3e0   : > { %2708 = vmatpush.bf16.msrb.mxu1 %v5181_v36 }
 0x3e2   : > { %2691 = vmatpush.bf16.msrb.mxu0 %v5021_v46  ;;  %v5990_v46 = vld [vmem:[%s9336_s7 + $0x9c] sm:$0xf0] }
 0x3e3   : > { %v4861_v3 = vor.u32 %v5990_v46, %v4860_v57  ;;  %v6027_v57 = vld [vmem:[%s9336_s7 + $0x1cc] sm:$0xf] }
 0x3e4   : > { %v5030_v46 = vld [vmem:[%s9336_s7 + $0x1e8] sm:$0xf0] }
 0x3e5   : > { %v5033_v1 = vor.u32 %v6027_v57, %v5030_v46  ;;  %v5987_v57 = vld [vmem:[%s9336_s7 + $0x8c] sm:$0xf] }
 0x3e6   : > { %2692 = vmatpush.bf16.msrb.mxu0 %v4989_v9  ;;  %v4870_v46 = vld [vmem:[%s9336_s7 + $0xa8] sm:$0xf0] }
 0x3ea   : > { %2693 = vmatpush.bf16.msrb.mxu0 %v4957_v18 }
 0x3ee   : > { %2694 = vmatpush.bf16.msrb.mxu0 %v4925_v34  ;;  %v6042_v34 = vld [vmem:[%s9336_s7 + $0x244] sm:$0xf] }
 0x44b   : > { %v1596_v39 = vpop.f32.mrf.mxu3 }
 0x44c   : > { %v1603_v41 = vpack.c.bf16 %v1596_v39, %v1596_v39  ;;  %v5148_v39 = vld [vmem:[%s9336_s7 + $0x2c0] sm:$0xf] }
 0x44e   : > { %v1753_v44 = vunpack.c.l.b16 %v1603_v41  ;;  %v6062_v41 = vld [vmem:[%s9336_s7 + $0x2dc] sm:$0xf0] }
 0x453   : > { %v1568_v40 = vpop.f32.mrf.mxu2  ;;  %v1598_v43 = vpop.f32.mrf.mxu3 }
 0x454   : > { %v1604_v42 = vpack.c.bf16 %v1598_v43, %v1598_v43  ;;  %v1601_v7 = vpack.c.bf16 %v1568_v40, %v1568_v40 }
 0x456   : > { %v1754_v45 = vunpack.c.l.b16 %v1604_v42  ;;  %v1639_v49 = vunpack.c.l.b16 %v1601_v7  ;;  %v5185_v42 = vor.u32 %v6066_v31, %v5182_v32  ;;  %v5150_v7 = vld [vmem:[%s9336_s7 + $0x2e0] sm:$0xf0]  ;;  %v5085_v31 = vor.u32 %v6046_v28, %v5084_v26  ;;  %v6007_v26 = vld [vmem:[%s9336_s7 + $0x124] sm:$0xf0] }
 0x457   : > { %v4833_v32 = vor.u32 %v5978_v29, %v4830_v30  ;;  %v4933_v28 = vor.u32 %v6007_v26, %v4932_v25  ;;  %v6071_v29 = vld [vmem:[%s9336_s7 + $0x324] sm:$0xf0]  ;;  %v6003_v30 = vld [vmem:[%s9336_s7 + $0x10c] sm:$0xf] }
 0x458   : > { %v1755_v6 = vpack.c.b16 %v1754_v45, %v1753_v44  ;;  %v5994_v44 = vld [vmem:[%s9336_s7 + $0xc4] sm:$0xf]  ;;  %2736 = vmatpush.bf16.msrb.mxu3 %v5185_v42  ;;  %v6035_v25 = vld [vmem:[%s9336_s7 + $0x20c] sm:$0xf] }
 0x459   : > { %v4894_v45 = vld [vmem:[%s9336_s7 + $0xe0] sm:$0xf0]  ;;  %v5062_v26 = vld [vmem:[%s9336_s7 + $0x228] sm:$0xf0] }
 0x45a   : > { %1845 = vmatmul.bf16.vlgmr.msra.gmra.mxu2 %v1755_v6  ;;  %1859 = vmatmul.bf16.vlgmr.msra.gmra.mxu3 %v1755_v6  ;;  %v6058_v6 = vld [vmem:[%s9336_s7 + $0x2c4] sm:$0xf]  ;;  %v4897_v55 = vor.u32 %v5994_v44, %v4894_v45 }
 0x45b   : > { %v1570_v47 = vpop.f32.mrf.mxu2  ;;  %v5153_v0 = vor.u32 %v6058_v6, %v5150_v7  ;;  %v4798_v42 = vld [vmem:[%s9336_s7 + $0x20] sm:$0xf0] }
 0x45c   : > { %v1602_v48 = vpack.c.bf16 %v1570_v47, %v1570_v47  ;;  %2723 = vmatpush.bf16.msrb.mxu2 %v4897_v55  ;;  %v6034_v6 = vld [vmem:[%s9336_s7 + $0x204] sm:$0xf] }
 0x45d   : > { %2737 = vmatpush.bf16.msrb.mxu3 %v5153_v0  ;;  %v5054_v7 = vld [vmem:[%s9336_s7 + $0x220] sm:$0xf0]  ;;  %v6091_v0 = vld [vmem:[%s9336_s7 + $0x3cc] sm:$0xf] }
 0x45e   : > { %v1640_v50 = vunpack.c.l.b16 %v1602_v48 }
 0x460   : > { %v1641_v51 = vpack.c.b16 %v1640_v50, %v1639_v49  ;;  %v4893_v49 = vor.u32 %v5998_v37, %v4892_v35  ;;  %v5149_v50 = vor.u32 %v6062_v41, %v5148_v39  ;;  %2724 = vmatpush.bf16.msrb.mxu2 %v4865_v10  ;;  %v5086_v35 = vld [vmem:[%s9336_s7 + $0x260] sm:$0xf0]  ;;  %v5974_v37 = vld [vmem:[%s9336_s7 + $0x1c] sm:$0xf0]  ;;  %v5254_v10 = vld [vmem:[%s9336_s7 + $0x3a8] sm:$0xf0] }
 0x461   : > { %2738 = vmatpush.bf16.msrb.mxu3 %v5121_v11  ;;  %v5089_v36 = vor.u32 %v6042_v34, %v5086_v35  ;;  %v5052_v39 = vld [vmem:[%s9336_s7 + $0x200] sm:$0xf]  ;;  %v4797_v41 = vor.u32 %v5974_v37, %v4796_v33  ;;  %v6067_v35 = vld [vmem:[%s9336_s7 + $0x30c] sm:$0xf]  ;;  %v4900_v37 = vld [vmem:[%s9336_s7 + $0xc8] sm:$0xf] }
 0x462   : > { %1731 = vmatmul.bf16.vlgmr.msra.gmra.mxu0 %v1641_v51  ;;  %1745 = vmatmul.bf16.vlgmr.msra.gmra.mxu1 %v1641_v51 }
 0x463   : > { %2695 = vmatpush.bf16.msrb.mxu0 %v4893_v49  ;;  %2709 = vmatpush.bf16.msrb.mxu1 %v5149_v50  ;;  %v6031_v49 = vld [vmem:[%s9336_s7 + $0x1e4] sm:$0xf0] }
 0x464   : > { %2725 = vmatpush.bf16.msrb.mxu2 %v4833_v32  ;;  %v5284_v50 = vld [vmem:[%s9336_s7 + $0x3c8] sm:$0xf] }
 0x465   : > { %2739 = vmatpush.bf16.msrb.mxu3 %v5089_v36  ;;  %v5190_v36 = vld [vmem:[%s9336_s7 + $0x328] sm:$0xf0] }
 0x466   : > { %v5193_v33 = vor.u32 %v6067_v35, %v5190_v36 }
 0x467   : > { %2696 = vmatpush.bf16.msrb.mxu0 %v4861_v3  ;;  %2710 = vmatpush.bf16.msrb.mxu1 %v5117_v56  ;;  %v6019_v3 = vld [vmem:[%s9336_s7 + $0x18c] sm:$0xf] }
 0x468   : > { %v6083_v56 = vld [vmem:[%s9336_s7 + $0x38c] sm:$0xf] }
 0x46b   : > { %2697 = vmatpush.bf16.msrb.mxu0 %v4829_v27  ;;  %2711 = vmatpush.bf16.msrb.mxu1 %v5085_v31  ;;  %v5188_v27 = vld [vmem:[%s9336_s7 + $0x308] sm:$0xf]  ;;  %v4934_v31 = vld [vmem:[%s9336_s7 + $0x128] sm:$0xf0] }
 0x46c   : > { %v5189_v32 = vor.u32 %v6071_v29, %v5188_v27  ;;  %v4937_v34 = vor.u32 %v6003_v30, %v4934_v31 }
 0x46f   : > { %2698 = vmatpush.bf16.msrb.mxu0 %v4797_v41  ;;  %v5156_v41 = vld [vmem:[%s9336_s7 + $0x2c8] sm:$0xf] }
 0x4dd   : > { %v1846_v40 = vpop.f32.mrf.mxu2  ;;  %v1860_v43 = vpop.f32.mrf.mxu3 }
 0x4df   : > { %v1732_v47 = vpop.f32.mrf.mxu0  ;;  %v1746_v48 = vpop.f32.mrf.mxu1 }
 0x4e0   : > { %v1865_v51 = vadd.f32 %v1846_v40, %v1732_v47  ;;  %v1866_v54 = vadd.f32 %v1860_v43, %v1746_v48  ;;  %v6038_v40 = vld [vmem:[%s9336_s7 + $0x21c] sm:$0xf0]  ;;  %v5970_v43 = vld [vmem:[%s9336_s7 + $0x4] sm:$0xf]  ;;  %v5028_v47 = vld [vmem:[%s9336_s7 + $0x1c8] sm:$0xf]  ;;  %v5057_v48 = vor.u32 %v6034_v6, %v5054_v7 }
 0x4e1   : > { %v5053_v44 = vor.u32 %v6038_v40, %v5052_v39  ;;  %v4801_v45 = vor.u32 %v5970_v43, %v4798_v42  ;;  %v5999_v39 = vld [vmem:[%s9336_s7 + $0xe4] sm:$0xf0]  ;;  %v5995_v42 = vld [vmem:[%s9336_s7 + $0xcc] sm:$0xf] }
 0x4e2   : > { %v7823_v59 = vadd.f32 %v6382_v5, %v1865_v51  ;;  %v7826_v38 = vadd.f32 %v6383_v60, %v1866_v54  ;;  %v6095_v51 = vld [vmem:[%s9336_s7 + $0x3e4] sm:$0xf0]  ;;  %v5029_v54 = vor.u32 %v6031_v49, %v5028_v47  ;;  %2740 = vmatpush.bf16.msrb.mxu3 %v5057_v48  ;;  %v5289_v60 = vor.u32 %v6091_v0, %v5286_v52  ;;  %v6059_v7 = vld [vmem:[%s9336_s7 + $0x2cc] sm:$0xf] }
 0x4e3   : > { %2712 = vmatpush.bf16.msrb.mxu1 %v5053_v44  ;;  %2726 = vmatpush.bf16.msrb.mxu2 %v4801_v45  ;;  %v5285_v55 = vor.u32 %v6095_v51, %v5284_v50  ;;  %v6023_v5 = vld [vmem:[%s9336_s7 + $0x1a4] sm:$0xf0]  ;;  %v4901_v40 = vor.u32 %v5999_v39, %v4900_v37  ;;  %v4902_v44 = vld [vmem:[%s9336_s7 + $0xe8] sm:$0xf0] }
 0x4e4   : > { %v1874_v9 = vmul.f32 %v7823_v59, %v7823_v59  ;;  %v1875_v58 = vmul.f32 %v7826_v38, %v7826_v38  ;;  %2747 = vmatpush.bf16.msra.mxu0 %v5029_v54  ;;  %v4997_v61 = vor.u32 %v6023_v5, %v4996_v2  ;;  %v6063_v43 = vld [vmem:[%s9336_s7 + $0x2e4] sm:$0xf0]  ;;  %v4905_v6 = vor.u32 %v5995_v42, %v4902_v44  ;;  %v5158_v47 = vld [vmem:[%s9336_s7 + $0x2e8] sm:$0xf0]  ;;  %v1873_v42 = vld [vmem:[%s9364_s28] sm:$0x3] }
 0x4e5   : > { %v1848_v12 = vpop.f32.mrf.mxu2  ;;  %v1862_v13 = vpop.f32.mrf.mxu3  ;;  %v5157_v45 = vor.u32 %v6063_v43, %v5156_v41  ;;  %v5161_v48 = vor.u32 %v6059_v7, %v5158_v47  ;;  %v4868_v49 = vld [vmem:[%s9336_s7 + $0x88] sm:$0xf]  ;;  %v6051_v52 = vld [vmem:[%s9336_s7 + $0x28c] sm:$0xf]  ;;  %v1913_v7 = vperm.slane %v1873_v42, 0  ;;  %v1914_v47 = vperm.slane %v1873_v42, 1 }
 0x4e6   : > { %v1878_v14 = vadd.f32 %v1875_v58, %v1874_v9  ;;  %v5253_v9 = vor.u32 %v6087_v63, %v5252_v62  ;;  %v4998_v58 = vld [vmem:[%s9336_s7 + $0x1a8] sm:$0xf0]  ;;  %2789 = vmatpush.bf16.msra.mxu3 %v5289_v60  ;;  %v5991_v50 = vld [vmem:[%s9336_s7 + $0xa4] sm:$0xf0]  ;;  %v6068_v42 = vld [vmem:[%s9336_s7 + $0x314] sm:$0xf] }
 0x4e7   : > { %v1734_v53 = vpop.f32.mrf.mxu0  ;;  %v1748_v15 = vpop.f32.mrf.mxu1  ;;  %2761 = vmatpush.bf16.msra.mxu1 %v5285_v55  ;;  %2775 = vmatpush.bf16.msra.mxu2 %v5033_v1  ;;  %v5001_v11 = vor.u32 %v6019_v3, %v4998_v58  ;;  %v5124_v51 = vld [vmem:[%s9336_s7 + $0x288] sm:$0xf]  ;;  %v4869_v54 = vor.u32 %v5991_v50, %v4868_v49  ;;  %v4873_v1 = vor.u32 %v5987_v57, %v4870_v46  ;;  %v5126_v2 = vld [vmem:[%s9336_s7 + $0x2a8] sm:$0xf0]  ;;  %v6032_v57 = vld [vmem:[%s9336_s7 + $0x1ec] sm:$0xf0] }
 0x4e8   : > { %v1867_v16 = vadd.f32 %v1848_v12, %v1734_v53  ;;  %v1868_v8 = vadd.f32 %v1862_v13, %v1748_v15  ;;  %1879 = vadd.xlane.f32.xlu1 %v1878_v14  ;;  %v5257_v12 = vor.u32 %v6083_v56, %v5254_v10  ;;  %v4964_v13 = vld [vmem:[%s9336_s7 + $0x148] sm:$0xf]  ;;  %2748 = vmatpush.bf16.msra.mxu0 %v4997_v61  ;;  %v4838_v58 = vld [vmem:[%s9336_s7 + $0x68] sm:$0xf0]  ;;  %v5292_v46 = vld [vmem:[%s9336_s7 + $0x3d0] sm:$0xf] }
 0x4e9   : > { %v6015_v14 = vld [vmem:[%s9336_s7 + $0x164] sm:$0xf0]  ;;  %v5129_v5 = vor.u32 %v6051_v52, %v5126_v2 }
 0x4ea   : > { %v7842_v18 = vadd.f32 %v6384_v17, %v1867_v16  ;;  %v7845_v20 = vadd.f32 %v6385_v19, %v1868_v8  ;;  %v5220_v53 = vld [vmem:[%s9336_s7 + $0x348] sm:$0xf]  ;;  %v4965_v15 = vor.u32 %v6015_v14, %v4964_v13  ;;  %v6011_v8 = vld [vmem:[%s9336_s7 + $0x14c] sm:$0xf]  ;;  %2790 = vmatpush.bf16.msra.mxu3 %v5257_v12 }
 0x4eb   : > { %2762 = vmatpush.bf16.msra.mxu1 %v5253_v9  ;;  %v6079_v16 = vld [vmem:[%s9336_s7 + $0x364] sm:$0xf0]  ;;  %v4966_v17 = vld [vmem:[%s9336_s7 + $0x168] sm:$0xf0]  ;;  %2776 = vmatpush.bf16.msra.mxu2 %v5001_v11 }
 0x4ec   : > { %v1876_v21 = vmul.f32 %v7842_v18, %v7842_v18  ;;  %v1877_v22 = vmul.f32 %v7845_v20, %v7845_v20  ;;  %v5221_v19 = vor.u32 %v6079_v16, %v5220_v53  ;;  %2749 = vmatpush.bf16.msra.mxu0 %v4965_v15  ;;  %v6055_v55 = vld [vmem:[%s9336_s7 + $0x2a4] sm:$0xf0]  ;;  %v5979_v9 = vld [vmem:[%s9336_s7 + $0x4c] sm:$0xf] }
 0x4ed   : > { %v5125_v0 = vor.u32 %v6055_v55, %v5124_v51  ;;  %v4836_v60 = vld [vmem:[%s9336_s7 + $0x48] sm:$0xf]  ;;  %v4841_v11 = vor.u32 %v5979_v9, %v4838_v58  ;;  %v6043_v12 = vld [vmem:[%s9336_s7 + $0x24c] sm:$0xf]  ;;  %v5036_v55 = vld [vmem:[%s9336_s7 + $0x1d0] sm:$0xf] }
 0x4ee   : > { %v1881_v23 = vadd.f32 %v1877_v22, %v1876_v21  ;;  %v4969_v21 = vor.u32 %v6011_v8, %v4966_v17  ;;  %v6075_v22 = vld [vmem:[%s9336_s7 + $0x34c] sm:$0xf]  ;;  %v5983_v61 = vld [vmem:[%s9336_s7 + $0x64] sm:$0xf0]  ;;  %v5037_v58 = vor.u32 %v6032_v57, %v5036_v55  ;;  %v4910_v55 = vld [vmem:[%s9336_s7 + $0xf0] sm:$0xf0] }
 0x4ef   : > { %2763 = vmatpush.bf16.msra.mxu1 %v5221_v19  ;;  %v5092_v62 = vld [vmem:[%s9336_s7 + $0x248] sm:$0xf]  ;;  %v4837_v63 = vor.u32 %v5983_v61, %v4836_v60  ;;  %v5094_v13 = vld [vmem:[%s9336_s7 + $0x268] sm:$0xf0]  ;;  %v5038_v61 = vld [vmem:[%s9336_s7 + $0x1f0] sm:$0xf0] }
 0x4f0   : > { %1882 = vadd.xlane.f32.xlu0 %v1881_v23  ;;  %v5222_v23 = vld [vmem:[%s9336_s7 + $0x368] sm:$0xf0]  ;;  %2777 = vmatpush.bf16.msra.mxu2 %v4969_v21  ;;  %v6047_v3 = vld [vmem:[%s9336_s7 + $0x264] sm:$0xf0]  ;;  %v5097_v53 = vor.u32 %v6043_v12, %v5094_v13  ;;  %v6060_v57 = vld [vmem:[%s9336_s7 + $0x2d4] sm:$0xf] }
 0x4f1   : > { %v5225_v24 = vor.u32 %v6075_v22, %v5222_v23  ;;  %2750 = vmatpush.bf16.msra.mxu0 %v4933_v28  ;;  %v5093_v10 = vor.u32 %v6047_v3, %v5092_v62  ;;  %v4804_v15 = vld [vmem:[%s9336_s7 + $0x8] sm:$0xf]  ;;  %v5971_v22 = vld [vmem:[%s9336_s7 + $0xc] sm:$0xf]  ;;  %v5065_v28 = vor.u32 %v6035_v25, %v5062_v26  ;;  %v6092_v62 = vld [vmem:[%s9336_s7 + $0x3d4] sm:$0xf] }
 0x4f2   : > { %v5975_v16 = vld [vmem:[%s9336_s7 + $0x24] sm:$0xf0]  ;;  %v5228_v26 = vld [vmem:[%s9336_s7 + $0x350] sm:$0xf] }
 0x4f3   : > { %2791 = vmatpush.bf16.msra.mxu3 %v5225_v24  ;;  %2764 = vmatpush.bf16.msra.mxu1 %v5189_v32  ;;  %v5060_v8 = vld [vmem:[%s9336_s7 + $0x208] sm:$0xf]  ;;  %v4805_v19 = vor.u32 %v5975_v16, %v4804_v15  ;;  %v4806_v24 = vld [vmem:[%s9336_s7 + $0x28] sm:$0xf0]  ;;  %v6020_v15 = vld [vmem:[%s9336_s7 + $0x194] sm:$0xf] }
 0x4f4   : > { %2778 = vmatpush.bf16.msra.mxu2 %v4937_v34  ;;  %v6039_v21 = vld [vmem:[%s9336_s7 + $0x224] sm:$0xf0]  ;;  %v4809_v27 = vor.u32 %v5971_v22, %v4806_v24  ;;  %v5006_v16 = vld [vmem:[%s9336_s7 + $0x1b0] sm:$0xf0]  ;;  %v4972_v22 = vld [vmem:[%s9336_s7 + $0x150] sm:$0xf] }
 0x4f5   : > { %2751 = vmatpush.bf16.msra.mxu0 %v4901_v40  ;;  %v5061_v23 = vor.u32 %v6039_v21, %v5060_v8  ;;  %v6084_v8 = vld [vmem:[%s9336_s7 + $0x394] sm:$0xf]  ;;  %v5009_v24 = vor.u32 %v6020_v15, %v5006_v16  ;;  %v5100_v16 = vld [vmem:[%s9336_s7 + $0x250] sm:$0xf] }
 0x4f7   : > { %2792 = vmatpush.bf16.msra.mxu3 %v5193_v33  ;;  %2765 = vmatpush.bf16.msra.mxu1 %v5157_v45 }
 0x4f8   : > { %2779 = vmatpush.bf16.msra.mxu2 %v4905_v6 }
 0x4f9   : > { %2752 = vmatpush.bf16.msra.mxu0 %v4869_v54 }
 0x4fb   : > { %2793 = vmatpush.bf16.msra.mxu3 %v5161_v48  ;;  %2766 = vmatpush.bf16.msra.mxu1 %v5125_v0  ;;  %v6096_v0 = vld [vmem:[%s9336_s7 + $0x3ec] sm:$0xf0] }
 0x4fc   : > { %2780 = vmatpush.bf16.msra.mxu2 %v4873_v1  ;;  %v6028_v1 = vld [vmem:[%s9336_s7 + $0x1d4] sm:$0xf] }
 0x4fd   : > { %2753 = vmatpush.bf16.msra.mxu0 %v4837_v63  ;;  %v5294_v63 = vld [vmem:[%s9336_s7 + $0x3f0] sm:$0xf0]  ;;  %v5041_v12 = vor.u32 %v6028_v1, %v5038_v61  ;;  %v5132_v61 = vld [vmem:[%s9336_s7 + $0x290] sm:$0xf] }
 0x4fe   : > { %v5297_v13 = vor.u32 %v6092_v62, %v5294_v63  ;;  %v6056_v62 = vld [vmem:[%s9336_s7 + $0x2ac] sm:$0xf0]  ;;  %v5988_v63 = vld [vmem:[%s9336_s7 + $0x94] sm:$0xf] }
 0x4ff   : > { %2794 = vmatpush.bf16.msra.mxu3 %v5129_v5  ;;  %2767 = vmatpush.bf16.msra.mxu1 %v5093_v10  ;;  %v5004_v10 = vld [vmem:[%s9336_s7 + $0x190] sm:$0xf] }
 0x500   : > { %2781 = vmatpush.bf16.msra.mxu2 %v4841_v11  ;;  %v6024_v11 = vld [vmem:[%s9336_s7 + $0x1ac] sm:$0xf0] }
 0x501   : > { %2754 = vmatpush.bf16.msra.mxu0 %v4805_v19  ;;  %v5005_v19 = vor.u32 %v6024_v11, %v5004_v10  ;;  %v5134_v10 = vld [vmem:[%s9336_s7 + $0x2b0] sm:$0xf0] }
 0x503   : > { %2795 = vmatpush.bf16.msra.mxu3 %v5097_v53  ;;  %2768 = vmatpush.bf16.msra.mxu1 %v5061_v23  ;;  %v6088_v53 = vld [vmem:[%s9336_s7 + $0x3ac] sm:$0xf0] }
 0x504   : > { %2782 = vmatpush.bf16.msra.mxu2 %v4809_v27  ;;  %v6016_v23 = vld [vmem:[%s9336_s7 + $0x16c] sm:$0xf0] }
 0x505   : > { %v6080_v27 = vld [vmem:[%s9336_s7 + $0x36c] sm:$0xf0] }
 0x507   : > { %2796 = vmatpush.bf16.msra.mxu3 %v5065_v28  ;;  %v6012_v28 = vld [vmem:[%s9336_s7 + $0x154] sm:$0xf] }
 0x55b   : > { %v1880_v56 = vpop.xlane.xlu1 %1879 }
 0x55c   : > { %v1884_v14 = vmul.f32 %v1880_v56, %v7174_v4  ;;  %v5293_v56 = vor.u32 %v6096_v0, %v5292_v46  ;;  %v5166_v46 = vld [vmem:[%s9336_s7 + $0x2f0] sm:$0xf0] }
 0x55e   : > { %v1886_v17 = vadd.f32 1e-06, %v1884_v14  ;;  %v5260_v14 = vld [vmem:[%s9336_s7 + $0x390] sm:$0xf] }
 0x55f   : > { %v5261_v21 = vor.u32 %v6088_v53, %v5260_v14  ;;  %v5984_v14 = vld [vmem:[%s9336_s7 + $0x6c] sm:$0xf0] }
 0x560   : > { %6342 = vrsqrt.f32 %v1886_v17  ;;  %vm1894_vm11 = vweird.f32 %v1886_v17 }
 0x563   : > { %v1883_v29 = vpop.xlane.xlu0 %1882 }
 0x564   : > { %v1885_v30 = vmul.f32 %v1883_v29, %v7174_v4  ;;  %v4974_v29 = vld [vmem:[%s9336_s7 + $0x170] sm:$0xf0] }
 0x566   : > { %v6343_v31 = vpop.eup %6342  ;;  %v1887_v32 = vadd.f32 1e-06, %v1885_v30  ;;  %v6076_v30 = vld [vmem:[%s9336_s7 + $0x354] sm:$0xf] }
 0x567   : > { %v1889_v34 = vmul.f32 %v6343_v31, %v1886_v17  ;;  %vm1895_vm10 = vweird.f32 %v6343_v31  ;;  %v5262_v17 = vld [vmem:[%s9336_s7 + $0x3b0] sm:$0xf0] }
 0x568   : > { %6344 = vrsqrt.f32 %v1887_v32  ;;  %vm1896_vm12 = vmor %vm1894_vm11, %vm1895_vm10  ;;  %vm1904_vm14 = vweird.f32 %v1887_v32  ;;  %v5265_v25 = vor.u32 %v6084_v8, %v5262_v17  ;;  %v6048_v8 = vld [vmem:[%s9336_s7 + $0x26c] sm:$0xf0]  ;;  %v5980_v17 = vld [vmem:[%s9336_s7 + $0x54] sm:$0xf] }
 0x569   : > { %v1890_v35 = vmul.f32 %v6343_v31, %v1889_v34  ;;  %v5229_v34 = vor.u32 %v6080_v27, %v5228_v26  ;;  %v5976_v26 = vld [vmem:[%s9336_s7 + $0x2c] sm:$0xf0] }
 0x56a   : > { %v5068_v27 = vld [vmem:[%s9336_s7 + $0x210] sm:$0xf] }
 0x56b   : > { %v1891_v36 = vmul.f32 0.5, %v1890_v35  ;;  %v4940_v35 = vld [vmem:[%s9336_s7 + $0x110] sm:$0xf] }
 0x56d   : > { %v1892_v33 = vsub.f32 1.5, %v1891_v36  ;;  %v6008_v36 = vld [vmem:[%s9336_s7 + $0x12c] sm:$0xf0] }
 0x56e   : > { %v6345_v37 = vpop.eup %6344 }
 0x56f   : > { %v1899_v39 = vmul.f32 %v6345_v37, %v1887_v32  ;;  %v1893_v41 = vmul.f32 %v6343_v31, %v1892_v33  ;;  %vm1905_vm13 = vweird.f32 %v6345_v37  ;;  %v4973_v32 = vor.u32 %v6016_v23, %v4972_v22  ;;  %v5102_v22 = vld [vmem:[%s9336_s7 + $0x270] sm:$0xf0]  ;;  %v4812_v23 = vld [vmem:[%s9336_s7 + $0x10] sm:$0xf] }
 0x570   : > { %vm1906_vm15 = vmor %vm1904_vm14, %vm1905_vm13  ;;  %v4977_v33 = vor.u32 %v6012_v28, %v4974_v29  ;;  %v6040_v28 = vld [vmem:[%s9336_s7 + $0x22c] sm:$0xf0] }
 0x571   : > { %v1900_v40 = vmul.f32 %v6345_v37, %v1899_v39  ;;  %v1897_v44 = vsel %vm1896_vm12, %v6343_v31, %v1893_v41  ;;  %v5230_v31 = vld [vmem:[%s9336_s7 + $0x370] sm:$0xf0]  ;;  %v5196_v39 = vld [vmem:[%s9336_s7 + $0x310] sm:$0xf] }
 0x572   : > { %v1908_v48 = vmul.f32 %v1897_v44, %v7823_v59  ;;  %v1909_v49 = vmul.f32 %v1897_v44, %v7826_v38  ;;  %v6072_v41 = vld [vmem:[%s9336_s7 + $0x32c] sm:$0xf0]  ;;  %v5198_v44 = vld [vmem:[%s9336_s7 + $0x330] sm:$0xf0] }
 0x573   : > { %v1901_v43 = vmul.f32 0.5, %v1900_v40  ;;  %v6004_v40 = vld [vmem:[%s9336_s7 + $0x114] sm:$0xf] }
 0x574   : > { %v1917_v52 = vmul.f32 %v1913_v7, %v1908_v48  ;;  %v1918_v2 = vmul.f32 %v1914_v47, %v1909_v49  ;;  %v5201_v49 = vor.u32 %v6068_v42, %v5198_v44  ;;  %v5046_v42 = vld [vmem:[%s9336_s7 + $0x1f8] sm:$0xf0] }
 0x575   : > { %v1902_v45 = vsub.f32 1.5, %v1901_v43  ;;  %v4942_v43 = vld [vmem:[%s9336_s7 + $0x130] sm:$0xf0]  ;;  %v6093_v44 = vld [vmem:[%s9336_s7 + $0x3dc] sm:$0xf] }
 0x576   : > { %v4945_v48 = vor.u32 %v6004_v40, %v4942_v43  ;;  %v4813_v40 = vor.u32 %v5976_v26, %v4812_v23  ;;  %v5069_v43 = vor.u32 %v6040_v28, %v5068_v27  ;;  %v4950_v23 = vld [vmem:[%s9336_s7 + $0x138] sm:$0xf0]  ;;  %v4916_v28 = vld [vmem:[%s9336_s7 + $0xd8] sm:$0xf] }
 0x577   : > { %v1903_v6 = vmul.f32 %v6345_v37, %v1902_v45  ;;  %v4941_v45 = vor.u32 %v6008_v36, %v4940_v35  ;;  %v5070_v35 = vld [vmem:[%s9336_s7 + $0x230] sm:$0xf0]  ;;  %v5044_v36 = vld [vmem:[%s9336_s7 + $0x1d8] sm:$0xf] }
 0x579   : > { %v1907_v50 = vsel %vm1906_vm15, %v6345_v37, %v1903_v6  ;;  %v5233_v37 = vor.u32 %v6076_v30, %v5230_v31  ;;  %v5197_v6 = vor.u32 %v6072_v41, %v5196_v39  ;;  %v5972_v31 = vld [vmem:[%s9336_s7 + $0x14] sm:$0xf]  ;;  %v6097_v39 = vld [vmem:[%s9336_s7 + $0x3f4] sm:$0xf0]  ;;  %v6029_v41 = vld [vmem:[%s9336_s7 + $0x1dc] sm:$0xf] }
 0x57a   : > { %v1910_v51 = vmul.f32 %v1907_v50, %v7842_v18  ;;  %v1911_v54 = vmul.f32 %v1907_v50, %v7845_v20  ;;  %v5164_v50 = vld [vmem:[%s9336_s7 + $0x2d0] sm:$0xf] }
 0x57c   : > { %v1919_v5 = vmul.f32 %v1913_v7, %v1910_v51  ;;  %v1920_v60 = vmul.f32 %v1914_v47, %v1911_v54  ;;  %v4908_v7 = vld [vmem:[%s9336_s7 + $0xd0] sm:$0xf]  ;;  %v5996_v54 = vld [vmem:[%s9336_s7 + $0xd4] sm:$0xf] }
 0x57d   : > { %v6000_v47 = vld [vmem:[%s9336_s7 + $0xec] sm:$0xf0] }
 0x57e   : > { %v8124_v3 = vpack.c.bf16 %v1919_v5, %v1917_v52  ;;  %v8126_v9 = vpack.c.bf16 %v1920_v60, %v1918_v2  ;;  %v6064_v51 = vld [vmem:[%s9336_s7 + $0x2ec] sm:$0xf0]  ;;  %v4909_v0 = vor.u32 %v6000_v47, %v4908_v7  ;;  %v4913_v5 = vor.u32 %v5996_v54, %v4910_v55  ;;  %v5268_v55 = vld [vmem:[%s9336_s7 + $0x398] sm:$0xf] }
 0x57f   : > { %v5165_v1 = vor.u32 %v6064_v51, %v5164_v50  ;;  %v4876_v52 = vld [vmem:[%s9336_s7 + $0x90] sm:$0xf]  ;;  %v5169_v60 = vor.u32 %v6060_v57, %v5166_v46  ;;  %v6025_v50 = vld [vmem:[%s9336_s7 + $0x1b4] sm:$0xf0]  ;;  %v5049_v51 = vor.u32 %v6029_v41, %v5046_v42  ;;  %v6021_v46 = vld [vmem:[%s9336_s7 + $0x19c] sm:$0xf] }
 0x580   : > { %2699 = vmatmul.bf16.vlgmr.msrb.gmra.mxu0 %v8124_v3  ;;  %2713 = vmatmul.bf16.vlgmr.msrb.gmra.mxu1 %v8126_v9  ;;  %v5992_v2 = vld [vmem:[%s9336_s7 + $0xac] sm:$0xf0]  ;;  %v6089_v57 = vld [vmem:[%s9336_s7 + $0x3b4] sm:$0xf0] }
 0x581   : > { %2727 = vmatmul.bf16.vlgmr.msrb.gmra.mxu2 %v8124_v3  ;;  %2741 = vmatmul.bf16.vlgmr.msrb.gmra.mxu3 %v8126_v9  ;;  %v4877_v11 = vor.u32 %v5992_v2, %v4876_v52  ;;  %v5270_v52 = vld [vmem:[%s9336_s7 + $0x3b8] sm:$0xf0] }
 0x582   : > { %2803 = vmatpush.bf16.msrb.mxu0 %v5037_v58  ;;  %2817 = vmatpush.bf16.msrb.mxu1 %v5293_v56  ;;  %v4878_v58 = vld [vmem:[%s9336_s7 + $0xb0] sm:$0xf0] }
 0x583   : > { %2831 = vmatpush.bf16.msrb.mxu2 %v5041_v12  ;;  %2845 = vmatpush.bf16.msrb.mxu3 %v5297_v13  ;;  %v6052_v56 = vld [vmem:[%s9336_s7 + $0x294] sm:$0xf]  ;;  %v5133_v12 = vor.u32 %v6056_v62, %v5132_v61  ;;  %v4844_v13 = vld [vmem:[%s9336_s7 + $0x50] sm:$0xf]  ;;  %v4881_v53 = vor.u32 %v5988_v63, %v4878_v58  ;;  %v6017_v61 = vld [vmem:[%s9336_s7 + $0x174] sm:$0xf0] }
 0x584   : > { %v5137_v15 = vor.u32 %v6052_v56, %v5134_v10  ;;  %v5236_v58 = vld [vmem:[%s9336_s7 + $0x358] sm:$0xf]  ;;  %v6013_v10 = vld [vmem:[%s9336_s7 + $0x15c] sm:$0xf] }
 0x585   : > { %v6081_v56 = vld [vmem:[%s9336_s7 + $0x374] sm:$0xf0] }
 0x586   : > { %2804 = vmatpush.bf16.msrb.mxu0 %v5005_v19  ;;  %2818 = vmatpush.bf16.msrb.mxu1 %v5261_v21  ;;  %v4846_v19 = vld [vmem:[%s9336_s7 + $0x70] sm:$0xf0] }
 0x587   : > { %2832 = vmatpush.bf16.msrb.mxu2 %v5009_v24  ;;  %2846 = vmatpush.bf16.msrb.mxu3 %v5265_v25  ;;  %v6044_v21 = vld [vmem:[%s9336_s7 + $0x254] sm:$0xf]  ;;  %v4845_v24 = vor.u32 %v5984_v14, %v4844_v13  ;;  %v5101_v25 = vor.u32 %v6048_v8, %v5100_v16  ;;  %v4849_v29 = vor.u32 %v5980_v17, %v4846_v19  ;;  %v5238_v13 = vld [vmem:[%s9336_s7 + $0x378] sm:$0xf0]  ;;  %v6009_v16 = vld [vmem:[%s9336_s7 + $0x134] sm:$0xf0] }
 0x588   : > { %v5105_v30 = vor.u32 %v6044_v21, %v5102_v22  ;;  %v5204_v19 = vld [vmem:[%s9336_s7 + $0x318] sm:$0xf]  ;;  %v6005_v22 = vld [vmem:[%s9336_s7 + $0x11c] sm:$0xf] }
 0x589   : > { %v6073_v21 = vld [vmem:[%s9336_s7 + $0x334] sm:$0xf0] }
 0x58a   : > { %2805 = vmatpush.bf16.msrb.mxu0 %v4973_v32  ;;  %2819 = vmatpush.bf16.msrb.mxu1 %v5229_v34  ;;  %v4814_v32 = vld [vmem:[%s9336_s7 + $0x30] sm:$0xf0]  ;;  %v5205_v27 = vor.u32 %v6073_v21, %v5204_v19  ;;  %v5372_v21 = vld [vmem:[%s9365_s10 + $0x70] sm:$0xf] }
 0x58b   : > { %2833 = vmatpush.bf16.msrb.mxu2 %v4977_v33  ;;  %2847 = vmatpush.bf16.msrb.mxu3 %v5233_v37  ;;  %v6036_v34 = vld [vmem:[%s9336_s7 + $0x214] sm:$0xf]  ;;  %v6033_v33 = vld [vmem:[%s9336_s7 + $0x1f4] sm:$0xf0] }
 0x58c   : > { %v5300_v37 = vld [vmem:[%s9336_s7 + $0x3d8] sm:$0xf]  ;;  %v5073_v7 = vor.u32 %v6036_v34, %v5070_v35  ;;  %v5045_v47 = vor.u32 %v6033_v33, %v5044_v36  ;;  %v5997_v35 = vld [vmem:[%s9336_s7 + $0xdc] sm:$0xf] }
 0x58d   : > { %v6065_v34 = vld [vmem:[%s9336_s7 + $0x2f4] sm:$0xf0]  ;;  %v4918_v36 = vld [vmem:[%s9336_s7 + $0xf8] sm:$0xf0] }
 0x58e   : > { %2806 = vmatpush.bf16.msrb.mxu0 %v4941_v45  ;;  %2820 = vmatpush.bf16.msrb.mxu1 %v5197_v6  ;;  %v5302_v45 = vld [vmem:[%s9336_s7 + $0x3f8] sm:$0xf0]  ;;  %v4817_v6 = vor.u32 %v5972_v31, %v4814_v32  ;;  %v5172_v32 = vld [vmem:[%s9336_s7 + $0x2d8] sm:$0xf]  ;;  %v4921_v42 = vor.u32 %v5997_v35, %v4918_v36  ;;  %v5348_v35 = vld [vmem:[%s9365_s10 + $0x40] sm:$0xf] }
 0x58f   : > { %2834 = vmatpush.bf16.msrb.mxu2 %v4945_v48  ;;  %2848 = vmatpush.bf16.msrb.mxu3 %v5201_v49  ;;  %v5301_v48 = vor.u32 %v6097_v39, %v5300_v37  ;;  %v5012_v49 = vld [vmem:[%s9336_s7 + $0x198] sm:$0xf]  ;;  %v5305_v54 = vor.u32 %v6093_v44, %v5302_v45  ;;  %v6061_v33 = vld [vmem:[%s9336_s7 + $0x2dc] sm:$0xf]  ;;  %v5173_v41 = vor.u32 %v6065_v34, %v5172_v32  ;;  %v6127_v32 = vld [vmem:[%s9365_s10 + $0xe4] sm:$0xf0] }
 0x590   : > { %2755 = vmatmul.bf16.vlgmr.msra.gmra.mxu0 %v8124_v3  ;;  %2769 = vmatmul.bf16.vlgmr.msra.gmra.mxu1 %v8126_v9  ;;  %v5013_v2 = vor.u32 %v6025_v50, %v5012_v49  ;;  %v5174_v37 = vld [vmem:[%s9336_s7 + $0x2f8] sm:$0xf0]  ;;  %v5140_v45 = vld [vmem:[%s9336_s7 + $0x298] sm:$0xf]  ;;  %v6107_v36 = vld [vmem:[%s9365_s10 + $0x44] sm:$0xf0] }
 0x591   : > { %2783 = vmatmul.bf16.vlgmr.msra.gmra.mxu2 %v8124_v3  ;;  %2797 = vmatmul.bf16.vlgmr.msra.gmra.mxu3 %v8126_v9  ;;  %v5177_v44 = vor.u32 %v6061_v33, %v5174_v37  ;;  %v5142_v49 = vld [vmem:[%s9336_s7 + $0x2b8] sm:$0xf0]  ;;  %v5349_v33 = vor.u32 %v6107_v36, %v5348_v35  ;;  %v5420_v37 = vld [vmem:[%s9365_s10 + $0xd0] sm:$0xf]  ;;  %v6161_v35 = vld [vmem:[%s9365_s10 + $0x1f4] sm:$0xf0] }
 0x592   : > { %2807 = vmatpush.bf16.msrb.mxu0 %v4909_v0  ;;  %2821 = vmatpush.bf16.msrb.mxu1 %v5165_v1  ;;  %v5014_v0 = vld [vmem:[%s9336_s7 + $0x1b8] sm:$0xf0] }
 0x593   : > { %2835 = vmatpush.bf16.msrb.mxu2 %v4913_v5  ;;  %2849 = vmatpush.bf16.msrb.mxu3 %v5169_v60  ;;  %v6085_v1 = vld [vmem:[%s9336_s7 + $0x39c] sm:$0xf]  ;;  %v5269_v5 = vor.u32 %v6089_v57, %v5268_v55  ;;  %v4980_v60 = vld [vmem:[%s9336_s7 + $0x158] sm:$0xf]  ;;  %v5017_v62 = vor.u32 %v6021_v46, %v5014_v0 }
 0x594   : > { %v5273_v63 = vor.u32 %v6085_v1, %v5270_v52  ;;  %v4981_v14 = vor.u32 %v6017_v61, %v4980_v60  ;;  %v5985_v55 = vld [vmem:[%s9336_s7 + $0x74] sm:$0xf0]  ;;  %v5981_v52 = vld [vmem:[%s9336_s7 + $0x5c] sm:$0xf] }
 0x595   : > { %v5108_v0 = vld [vmem:[%s9336_s7 + $0x258] sm:$0xf]  ;;  %v5110_v60 = vld [vmem:[%s9336_s7 + $0x278] sm:$0xf0] }
 0x596   : > { %2808 = vmatpush.bf16.msrb.mxu0 %v4877_v11  ;;  %2822 = vmatpush.bf16.msrb.mxu1 %v5133_v12  ;;  %v4982_v11 = vld [vmem:[%s9336_s7 + $0x178] sm:$0xf0]  ;;  %v6049_v1 = vld [vmem:[%s9336_s7 + $0x274] sm:$0xf0] }
 0x597   : > { %2836 = vmatpush.bf16.msrb.mxu2 %v4881_v53  ;;  %2850 = vmatpush.bf16.msrb.mxu3 %v5137_v15  ;;  %v6077_v12 = vld [vmem:[%s9336_s7 + $0x35c] sm:$0xf]  ;;  %v5237_v53 = vor.u32 %v6081_v56, %v5236_v58  ;;  %v4948_v15 = vld [vmem:[%s9336_s7 + $0x118] sm:$0xf]  ;;  %v4985_v8 = vor.u32 %v6013_v10, %v4982_v11 }
 0x598   : > { %v5241_v17 = vor.u32 %v6077_v12, %v5238_v13  ;;  %v4949_v26 = vor.u32 %v6009_v16, %v4948_v15  ;;  %v5977_v58 = vld [vmem:[%s9336_s7 + $0x34] sm:$0xf0]  ;;  %v5973_v13 = vld [vmem:[%s9336_s7 + $0x1c] sm:$0xf] }
 0x599   : > { %v5076_v11 = vld [vmem:[%s9336_s7 + $0x218] sm:$0xf]  ;;  %v5078_v15 = vld [vmem:[%s9336_s7 + $0x238] sm:$0xf0] }
 0x59a   : > { %2809 = vmatpush.bf16.msrb.mxu0 %v4845_v24  ;;  %2823 = vmatpush.bf16.msrb.mxu1 %v5101_v25  ;;  %v6069_v24 = vld [vmem:[%s9336_s7 + $0x31c] sm:$0xf]  ;;  %v6041_v12 = vld [vmem:[%s9336_s7 + $0x234] sm:$0xf0] }
 0x59b   : > { %2837 = vmatpush.bf16.msrb.mxu2 %v4849_v29  ;;  %2851 = vmatpush.bf16.msrb.mxu3 %v5105_v30  ;;  %v5206_v25 = vld [vmem:[%s9336_s7 + $0x338] sm:$0xf0]  ;;  %v6001_v29 = vld [vmem:[%s9336_s7 + $0xf4] sm:$0xf0]  ;;  %v4953_v30 = vor.u32 %v6005_v22, %v4950_v23 }
 0x59c   : > { %v5209_v31 = vor.u32 %v6069_v24, %v5206_v25  ;;  %v4917_v39 = vor.u32 %v6001_v29, %v4916_v28  ;;  %v6113_v22 = vld [vmem:[%s9365_s10 + $0x74] sm:$0xf0]  ;;  %v5364_v24 = vld [vmem:[%s9365_s10 + $0x60] sm:$0xf]  ;;  %v5356_v28 = vld [vmem:[%s9365_s10 + $0x50] sm:$0xf] }
 0x59d   : > { %v5373_v23 = vor.u32 %v6113_v22, %v5372_v21  ;;  %v6109_v29 = vld [vmem:[%s9365_s10 + $0x54] sm:$0xf0]  ;;  %v5492_v22 = vld [vmem:[%s9365_s10 + $0x160] sm:$0xf] }
 0x59e   : > { %2810 = vmatpush.bf16.msrb.mxu0 %v4813_v40  ;;  %2824 = vmatpush.bf16.msrb.mxu1 %v5069_v43  ;;  %v4884_v40 = vld [vmem:[%s9336_s7 + $0x98] sm:$0xf] }
 0x59f   : > { %2838 = vmatpush.bf16.msrb.mxu2 %v4817_v6  ;;  %2852 = vmatpush.bf16.msrb.mxu3 %v5073_v7  ;;  %v5993_v43 = vld [vmem:[%s9336_s7 + $0xb4] sm:$0xf0]  ;;  %v5989_v7 = vld [vmem:[%s9336_s7 + $0x9c] sm:$0xf] }
 0x5a0   : > { %v6057_v6 = vld [vmem:[%s9336_s7 + $0x2b4] sm:$0xf0]  ;;  %v4885_v50 = vor.u32 %v5993_v43, %v4884_v40  ;;  %v5340_v40 = vld [vmem:[%s9365_s10 + $0x30] sm:$0xf] }
 0x5a1   : > { %2811 = vmatmul.bf16.vlgmr.msrb.gmra.mxu0 %v8124_v3  ;;  %2825 = vmatmul.bf16.vlgmr.msrb.gmra.mxu1 %v8126_v9  ;;  %v6105_v43 = vld [vmem:[%s9365_s10 + $0x34] sm:$0xf0] }
 0x5a2   : > { %2859 = vmatpush.bf16.msra.mxu0 %v5045_v47  ;;  %2873 = vmatpush.bf16.msra.mxu1 %v5301_v48  ;;  %v4886_v47 = vld [vmem:[%s9336_s7 + $0xb8] sm:$0xf0] }
 0x5a3   : > { %2887 = vmatpush.bf16.msra.mxu2 %v5049_v51  ;;  %2901 = vmatpush.bf16.msra.mxu3 %v5305_v54  ;;  %v6053_v48 = vld [vmem:[%s9336_s7 + $0x29c] sm:$0xf]  ;;  %v5141_v51 = vor.u32 %v6057_v6, %v5140_v45  ;;  %v4852_v54 = vld [vmem:[%s9336_s7 + $0x58] sm:$0xf]  ;;  %v4889_v57 = vor.u32 %v5989_v7, %v4886_v47  ;;  %v6123_v45 = vld [vmem:[%s9365_s10 + $0xc4] sm:$0xf0] }
 0x5a4   : > { %2839 = vmatmul.bf16.vlgmr.msrb.gmra.mxu2 %v8124_v3  ;;  %2853 = vmatmul.bf16.vlgmr.msrb.gmra.mxu3 %v8126_v9  ;;  %v5145_v46 = vor.u32 %v6053_v48, %v5142_v49  ;;  %v4853_v61 = vor.u32 %v5985_v55, %v4852_v54  ;;  %v5332_v7 = vld [vmem:[%s9365_s10 + $0x20] sm:$0xf]  ;;  %v6103_v47 = vld [vmem:[%s9365_s10 + $0x24] sm:$0xf0]  ;;  %v5404_v49 = vld [vmem:[%s9365_s10 + $0xb0] sm:$0xf] }
 0x5a5   : > { %v5333_v48 = vor.u32 %v6103_v47, %v5332_v7  ;;  %v5324_v54 = vld [vmem:[%s9365_s10 + $0x10] sm:$0xf]  ;;  %v6101_v55 = vld [vmem:[%s9365_s10 + $0x14] sm:$0xf0] }
 0x5a6   : > { %2860 = vmatpush.bf16.msra.mxu0 %v5013_v2  ;;  %2874 = vmatpush.bf16.msra.mxu1 %v5269_v5  ;;  %v4854_v2 = vld [vmem:[%s9336_s7 + $0x78] sm:$0xf0] }
 0x5a7   : > { %2888 = vmatpush.bf16.msra.mxu2 %v5017_v62  ;;  %2902 = vmatpush.bf16.msra.mxu3 %v5273_v63  ;;  %v6045_v5 = vld [vmem:[%s9336_s7 + $0x25c] sm:$0xf]  ;;  %v5109_v62 = vor.u32 %v6049_v1, %v5108_v0  ;;  %v4820_v63 = vld [vmem:[%s9336_s7 + $0x18] sm:$0xf]  ;;  %v4857_v56 = vor.u32 %v5981_v52, %v4854_v2  ;;  %v6119_v0 = vld [vmem:[%s9365_s10 + $0xa4] sm:$0xf0] }
 0x5a8   : > { %v5113_v10 = vor.u32 %v6045_v5, %v5110_v60  ;;  %v4821_v16 = vor.u32 %v5977_v58, %v4820_v63  ;;  %v5316_v60 = vld [vmem:[%s9365_s10] sm:$0xf] }
 0x5aa   : > { %2861 = vmatpush.bf16.msra.mxu0 %v4981_v14  ;;  %2875 = vmatpush.bf16.msra.mxu1 %v5237_v53  ;;  %v4822_v14 = vld [vmem:[%s9336_s7 + $0x38] sm:$0xf0] }
 0x5ab   : > { %2889 = vmatpush.bf16.msra.mxu2 %v4985_v8  ;;  %2903 = vmatpush.bf16.msra.mxu3 %v5241_v17  ;;  %v6037_v53 = vld [vmem:[%s9336_s7 + $0x21c] sm:$0xf]  ;;  %v5077_v8 = vor.u32 %v6041_v12, %v5076_v11  ;;  %v4825_v17 = vor.u32 %v5973_v13, %v4822_v14  ;;  %v6112_v11 = vld [vmem:[%s9365_s10 + $0x74] sm:$0xf]  ;;  %v5388_v14 = vld [vmem:[%s9365_s10 + $0x90] sm:$0xf] }
 0x5ac   : > { %v5081_v19 = vor.u32 %v6037_v53, %v5078_v15  ;;  %v5374_v12 = vld [vmem:[%s9365_s10 + $0x78] sm:$0xf0]  ;;  %v6117_v53 = vld [vmem:[%s9365_s10 + $0x94] sm:$0xf0] }
 0x5ad   : > { %v5377_v13 = vor.u32 %v6112_v11, %v5374_v12  ;;  %v6157_v11 = vld [vmem:[%s9365_s10 + $0x1d4] sm:$0xf0] }
 0x5ae   : > { %2862 = vmatpush.bf16.msra.mxu0 %v4949_v26  ;;  %2876 = vmatpush.bf16.msra.mxu1 %v5205_v27  ;;  %v6129_v26 = vld [vmem:[%s9365_s10 + $0xf4] sm:$0xf0] }
 0x5af   : > { %2890 = vmatpush.bf16.msra.mxu2 %v4953_v30  ;;  %2904 = vmatpush.bf16.msra.mxu3 %v5209_v31  ;;  %v5357_v30 = vor.u32 %v6109_v29, %v5356_v28  ;;  %v5428_v31 = vld [vmem:[%s9365_s10 + $0xe0] sm:$0xf]  ;;  %v6115_v29 = vld [vmem:[%s9365_s10 + $0x84] sm:$0xf0] }
 0x5b0   : > { %v5429_v34 = vor.u32 %v6127_v32, %v5428_v31  ;;  %v5380_v28 = vld [vmem:[%s9365_s10 + $0x80] sm:$0xf] }
 0x5b1   : > { %v5381_v32 = vor.u32 %v6115_v29, %v5380_v28  ;;  %v6155_v28 = vld [vmem:[%s9365_s10 + $0x1c4] sm:$0xf0] }
 0x5b2   : > { %2863 = vmatpush.bf16.msra.mxu0 %v4917_v39  ;;  %2877 = vmatpush.bf16.msra.mxu1 %v5173_v41  ;;  %v6125_v39 = vld [vmem:[%s9365_s10 + $0xd4] sm:$0xf0] }
 0x5b3   : > { %2891 = vmatpush.bf16.msra.mxu2 %v4921_v42  ;;  %2905 = vmatpush.bf16.msra.mxu3 %v5177_v44  ;;  %v5421_v41 = vor.u32 %v6125_v39, %v5420_v37  ;;  %v5341_v42 = vor.u32 %v6105_v43, %v5340_v40  ;;  %v5412_v44 = vld [vmem:[%s9365_s10 + $0xc0] sm:$0xf]  ;;  %v6128_v37 = vld [vmem:[%s9365_s10 + $0xf4] sm:$0xf]  ;;  %v5438_v39 = vld [vmem:[%s9365_s10 + $0xf8] sm:$0xf0] }
 0x5b4   : > { %v5413_v6 = vor.u32 %v6123_v45, %v5412_v44  ;;  %v5484_v40 = vld [vmem:[%s9365_s10 + $0x150] sm:$0xf]  ;;  %v6141_v43 = vld [vmem:[%s9365_s10 + $0x154] sm:$0xf0]  ;;  %v5358_v44 = vld [vmem:[%s9365_s10 + $0x58] sm:$0xf0] }
 0x5b5   : > { %v5485_v7 = vor.u32 %v6141_v43, %v5484_v40 }
 0x5b6   : > { %2864 = vmatpush.bf16.msra.mxu0 %v4885_v50  ;;  %2878 = vmatpush.bf16.msra.mxu1 %v5141_v51  ;;  %v6121_v50 = vld [vmem:[%s9365_s10 + $0xb4] sm:$0xf0] }
 0x5b7   : > { %2892 = vmatpush.bf16.msra.mxu2 %v4889_v57  ;;  %2906 = vmatpush.bf16.msra.mxu3 %v5145_v46  ;;  %v5405_v51 = vor.u32 %v6121_v50, %v5404_v49  ;;  %v5325_v57 = vor.u32 %v6101_v55, %v5324_v54  ;;  %v5396_v46 = vld [vmem:[%s9365_s10 + $0xa0] sm:$0xf]  ;;  %v6159_v49 = vld [vmem:[%s9365_s10 + $0x1e4] sm:$0xf0]  ;;  %v6126_v50 = vld [vmem:[%s9365_s10 + $0xe4] sm:$0xf] }
 0x5b8   : > { %v5397_v2 = vor.u32 %v6119_v0, %v5396_v46  ;;  %v5430_v46 = vld [vmem:[%s9365_s10 + $0xe8] sm:$0xf0]  ;;  %v5476_v0 = vld [vmem:[%s9365_s10 + $0x140] sm:$0xf] }
 0x5ba   : > { %2865 = vmatpush.bf16.msra.mxu0 %v4853_v61  ;;  %2879 = vmatpush.bf16.msra.mxu1 %v5109_v62  ;;  %v6099_v61 = vld [vmem:[%s9365_s10 + $0x4] sm:$0xf0]  ;;  %v5500_v62 = vld [vmem:[%s9365_s10 + $0x170] sm:$0xf] }
 0x5bb   : > { %2893 = vmatpush.bf16.msra.mxu2 %v4857_v56  ;;  %2907 = vmatpush.bf16.msra.mxu3 %v5113_v10  ;;  %v5317_v58 = vor.u32 %v6099_v61, %v5316_v60  ;;  %v6145_v56 = vld [vmem:[%s9365_s10 + $0x174] sm:$0xf0]  ;;  %v6106_v60 = vld [vmem:[%s9365_s10 + $0x44] sm:$0xf]  ;;  %v5350_v61 = vld [vmem:[%s9365_s10 + $0x48] sm:$0xf0] }
 0x5bc   : > { %v5501_v10 = vor.u32 %v6145_v56, %v5500_v62  ;;  %v5353_v56 = vor.u32 %v6106_v60, %v5350_v61 }
 0x5be   : > { %2866 = vmatpush.bf16.msra.mxu0 %v4821_v16  ;;  %2880 = vmatpush.bf16.msra.mxu1 %v5077_v8  ;;  %v5389_v8 = vor.u32 %v6117_v53, %v5388_v14 }
 0x5bf   : > { %2894 = vmatpush.bf16.msra.mxu2 %v4825_v17  ;;  %2908 = vmatpush.bf16.msra.mxu3 %v5081_v19 }
 0x5c1   : > { %2867 = vmatmul.bf16.vlgmr.msra.gmra.mxu0 %v8124_v3  ;;  %2881 = vmatmul.bf16.vlgmr.msra.gmra.mxu1 %v8126_v9 }
 0x5c2   : > { %2895 = vmatmul.bf16.vlgmr.msra.gmra.mxu2 %v8124_v3  ;;  %2909 = vmatmul.bf16.vlgmr.msra.gmra.mxu3 %v8126_v9  ;;  %v6111_v3 = vld [vmem:[%s9365_s10 + $0x64] sm:$0xf0]  ;;  %v5436_v9 = vld [vmem:[%s9365_s10 + $0xf0] sm:$0xf] }
 0x5c3   : > { %3471 = vmatpush.bf16.msrb.mxu0 %v5373_v23  ;;  %v5365_v25 = vor.u32 %v6111_v3, %v5364_v24  ;;  %v5437_v27 = vor.u32 %v6129_v26, %v5436_v9  ;;  %3499 = vmatpush.bf16.msrb.mxu2 %v5501_v10  ;;  %v6143_v23 = vld [vmem:[%s9365_s10 + $0x164] sm:$0xf0]  ;;  %v5366_v9 = vld [vmem:[%s9365_s10 + $0x68] sm:$0xf0]  ;;  %v5548_v10 = vld [vmem:[%s9365_s10 + $0x1d0] sm:$0xf] }
 0x5c4   : > { %v5493_v3 = vor.u32 %v6143_v23, %v5492_v22  ;;  %v5549_v14 = vor.u32 %v6157_v11, %v5548_v10  ;;  %v5468_v22 = vld [vmem:[%s9365_s10 + $0x130] sm:$0xf]  ;;  %v6137_v23 = vld [vmem:[%s9365_s10 + $0x134] sm:$0xf0] }
 0x5c5   : > { %3485 = vmatpush.bf16.msrb.mxu1 %v5437_v27  ;;  %v5469_v43 = vor.u32 %v6137_v23, %v5468_v22 }
 0x5c7   : > { %3472 = vmatpush.bf16.msrb.mxu0 %v5365_v25  ;;  %v6110_v25 = vld [vmem:[%s9365_s10 + $0x64] sm:$0xf]  ;;  %3500 = vmatpush.bf16.msrb.mxu2 %v5493_v3  ;;  %v6104_v3 = vld [vmem:[%s9365_s10 + $0x34] sm:$0xf] }
 0x5c8   : > { %v5369_v27 = vor.u32 %v6110_v25, %v5366_v9 }
 0x5c9   : > { %3486 = vmatpush.bf16.msrb.mxu1 %v5429_v34  ;;  %v5564_v34 = vld [vmem:[%s9365_s10 + $0x1f0] sm:$0xf] }
 0x5cb   : > { %3473 = vmatpush.bf16.msrb.mxu0 %v5357_v30  ;;  %3501 = vmatpush.bf16.msrb.mxu2 %v5485_v7 }
 0x5cd   : > { %3487 = vmatpush.bf16.msrb.mxu1 %v5421_v41  ;;  %v5441_v41 = vor.u32 %v6128_v37, %v5438_v39  ;;  %v5460_v37 = vld [vmem:[%s9365_s10 + $0x120] sm:$0xf]  ;;  %v6135_v39 = vld [vmem:[%s9365_s10 + $0x124] sm:$0xf0] }
 0x5cf   : > { %3474 = vmatpush.bf16.msrb.mxu0 %v5349_v33  ;;  %v5565_v33 = vor.u32 %v6161_v35, %v5564_v34  ;;  %v5414_v34 = vld [vmem:[%s9365_s10 + $0xc8] sm:$0xf0] }
 0x5d1   : > { %3488 = vmatpush.bf16.msrb.mxu1 %v5413_v6  ;;  %3513 = vmatpush.bf16.msrb.mxu3 %v5565_v33 }
 0x5d3   : > { %3475 = vmatpush.bf16.msrb.mxu0 %v5341_v42  ;;  %v6108_v42 = vld [vmem:[%s9365_s10 + $0x54] sm:$0xf] }
 0x5d4   : > { %v5361_v47 = vor.u32 %v6108_v42, %v5358_v44 }
 0x5d5   : > { %3489 = vmatpush.bf16.msrb.mxu1 %v5405_v51 }
 0x5d7   : > { %3476 = vmatpush.bf16.msrb.mxu0 %v5333_v48  ;;  %v5556_v48 = vld [vmem:[%s9365_s10 + $0x1e0] sm:$0xf] }
 0x5d9   : > { %3490 = vmatpush.bf16.msrb.mxu1 %v5397_v2  ;;  %v6139_v2 = vld [vmem:[%s9365_s10 + $0x144] sm:$0xf0] }
 0x5db   : > { %3477 = vmatpush.bf16.msrb.mxu0 %v5325_v57  ;;  %v5557_v57 = vor.u32 %v6159_v49, %v5556_v48 }
 0x5dd   : > { %3491 = vmatpush.bf16.msrb.mxu1 %v5389_v8  ;;  %3514 = vmatpush.bf16.msrb.mxu3 %v5557_v57 }
 0x5df   : > { %3478 = vmatpush.bf16.msrb.mxu0 %v5317_v58  ;;  %v5477_v58 = vor.u32 %v6139_v2, %v5476_v0 }
 0x5e1   : > { %3492 = vmatpush.bf16.msrb.mxu1 %v5381_v32  ;;  %3502 = vmatpush.bf16.msrb.mxu2 %v5477_v58  ;;  %v6122_v32 = vld [vmem:[%s9365_s10 + $0xc4] sm:$0xf] }
 0x5e2   : > { %3515 = vmatpush.bf16.msrb.mxu3 %v5549_v14  ;;  %v5417_v7 = vor.u32 %v6122_v32, %v5414_v34 }
 0x5e3   : > { %3527 = vmatpush.bf16.msra.mxu0 %v5377_v13 }
 0x5e5   : > { %3541 = vmatpush.bf16.msra.mxu1 %v5441_v41  ;;  %3503 = vmatpush.bf16.msrb.mxu2 %v5469_v43  ;;  %v5532_v43 = vld [vmem:[%s9365_s10 + $0x1b0] sm:$0xf] }
 0x5e7   : > { %3528 = vmatpush.bf16.msra.mxu0 %v5369_v27  ;;  %v5540_v27 = vld [vmem:[%s9365_s10 + $0x1c0] sm:$0xf] }
 0x5e8   : > { %v5541_v44 = vor.u32 %v6155_v28, %v5540_v27 }
 0x5ea   : > { %3516 = vmatpush.bf16.msrb.mxu3 %v5541_v44 }
 0x5eb   : > { %3529 = vmatpush.bf16.msra.mxu0 %v5361_v47 }
 0x5ef   : > { %3530 = vmatpush.bf16.msra.mxu0 %v5353_v56 }
 0x5fd   : > { %v2700_v1 = vpop.f32.mrf.mxu0  ;;  %v2714_v52 = vpop.f32.mrf.mxu1 }
 0x5fe   : > { %v8582_v5 = vadd.f32 %v2714_v52, %v2700_v1  ;;  %v5433_v52 = vor.u32 %v6126_v50, %v5430_v46  ;;  %v5461_v50 = vor.u32 %v6135_v39, %v5460_v37 }
 0x600   : > { %v5306_v63 = vmul.f32 -1.442695, %v8582_v5  ;;  %3542 = vmatpush.bf16.msra.mxu1 %v5433_v52  ;;  %3504 = vmatpush.bf16.msrb.mxu2 %v5461_v50 }
 0x602   : > { %6346 = vpow2.f32 %v5306_v63 }
 0x604   : > { %v2728_v15 = vpop.f32.mrf.mxu2  ;;  %v2742_v16 = vpop.f32.mrf.mxu3 }
 0x605   : > { %v8609_v17 = vadd.f32 %v2742_v16, %v2728_v15  ;;  %v2702_v19 = vpop.f32.mrf.mxu0  ;;  %v2716_v21 = vpop.f32.mrf.mxu1 }
 0x606   : > { %v8617_v24 = vadd.f32 %v2716_v21, %v2702_v19  ;;  %v6124_v19 = vld [vmem:[%s9365_s10 + $0xd4] sm:$0xf]  ;;  %v5422_v21 = vld [vmem:[%s9365_s10 + $0xd8] sm:$0xf0] }
 0x607   : > { %v5307_v26 = vmul.f32 -1.442695, %v8609_v17 }
 0x608   : > { %v6347_v30 = vpop.eup %6346  ;;  %v5310_v31 = vmul.f32 -1.442695, %v8617_v24 }
 0x609   : > { %v8639_v36 = vadd.f32 1.0, %v6347_v30  ;;  %6348 = vpow2.f32 %v5307_v26  ;;  %v5342_v26 = vld [vmem:[%s9365_s10 + $0x38] sm:$0xf0] }
 0x60a   : > { %6350 = vpow2.f32 %v5310_v31  ;;  %v5425_v31 = vor.u32 %v6124_v19, %v5422_v21  ;;  %v5345_v42 = vor.u32 %v6104_v3, %v5342_v26 }
 0x60b   : > { %6352 = vrcp.f32 %v8639_v36  ;;  %v2956_v58 = vand.u32 2147483647, %v8639_v36  ;;  %v2958_v56 = vand.u32 2147483648, %v8639_v36  ;;  %vm2952_vm3 = vweird.f32 %v8639_v36 }
 0x60c   : > { %v2730_v45 = vpop.f32.mrf.mxu2  ;;  %v2744_v6 = vpop.f32.mrf.mxu3  ;;  %3543 = vmatpush.bf16.msra.mxu1 %v5425_v31  ;;  %3531 = vmatpush.bf16.msra.mxu0 %v5345_v42 }
 0x60d   : > { %v8669_v51 = vadd.f32 %v2744_v6, %v2730_v45  ;;  %v2756_v54 = vpop.f32.mrf.mxu0  ;;  %v2770_v55 = vpop.f32.mrf.mxu1  ;;  %vm8791_vm4 = vcmp.eq.f32.partialorder %v2956_v58, 8.507059e+37  ;;  %v2959_v27 = vor.u32 1.1754944e-38, %v2958_v56 }
 0x60e   : > { %v8677_v1 = vadd.f32 %v2770_v55, %v2756_v54 }
 0x60f   : > { %v6349_v62 = vpop.eup %6348  ;;  %v5311_v63 = vmul.f32 -1.442695, %v8669_v51 }
 0x610   : > { %v6351_v12 = vpop.eup %6350  ;;  %v8695_v13 = vadd.f32 1.0, %v6349_v62  ;;  %v5308_v8 = vmul.f32 -1.442695, %v8677_v1  ;;  %3544 = vmatpush.bf16.msra.mxu1 %v5417_v7  ;;  %v6102_v62 = vld [vmem:[%s9365_s10 + $0x24] sm:$0xf] }
 0x611   : > { %v8697_v53 = vpop.eup %6352  ;;  %v8699_v15 = vadd.f32 1.0, %v6351_v12  ;;  %6354 = vpow2.f32 %v5311_v63  ;;  %v5334_v63 = vld [vmem:[%s9365_s10 + $0x28] sm:$0xf0] }
 0x612   : > { %v2948_v16 = vmul.f32 %v8697_v53, %v8639_v36  ;;  %6356 = vrcp.f32 %v8695_v13  ;;  %vm2953_vm0 = vweird.f32 %v8697_v53  ;;  %v5337_v23 = vor.u32 %v6102_v62, %v5334_v63  ;;  %v5452_v62 = vld [vmem:[%s9365_s10 + $0x110] sm:$0xf]  ;;  %v6133_v63 = vld [vmem:[%s9365_s10 + $0x114] sm:$0xf0] }
 0x613   : > { %6358 = vrcp.f32 %v8699_v15  ;;  %v3018_v12 = vand.u32 2147483648, %v8699_v15  ;;  %vm3012_vm2 = vweird.f32 %v8699_v15  ;;  %v3016_v3 = vand.u32 2147483647, %v8699_v15  ;;  %vm8804_vm7 = vmor %vm2952_vm3, %vm2953_vm0 }
 0x614   : > { %v2784_v25 = vpop.f32.mrf.mxu2  ;;  %v2798_v9 = vpop.f32.mrf.mxu3  ;;  %v2949_v35 = vsub.f32 1.0, %v2948_v16  ;;  %6360 = vpow2.f32 %v5308_v8  ;;  %vm2967_vm5 = vweird.f32 %v8695_v13  ;;  %3532 = vmatpush.bf16.msra.mxu0 %v5337_v23  ;;  %v2973_v39 = vand.u32 2147483648, %v8695_v13 }
 0x615   : > { %v2758_v29 = vpop.f32.mrf.mxu0  ;;  %v2772_v30 = vpop.f32.mrf.mxu1  ;;  %v8744_v40 = vadd.f32 %v2798_v9, %v2784_v25  ;;  %vm3017_vm9 = vcmp.eq.f32.partialorder %v3016_v3, 8.507059e+37  ;;  %v2971_v42 = vand.u32 2147483647, %v8695_v13 }
 0x616   : > { %v8736_v33 = vadd.f32 %v2772_v30, %v2758_v29  ;;  %v2950_v55 = vmul.f32 %v8697_v53, %v2949_v35  ;;  %v3019_v30 = vor.u32 1.1754944e-38, %v3018_v12  ;;  %v2974_v58 = vor.u32 1.1754944e-38, %v2973_v39  ;;  %v5444_v39 = vld [vmem:[%s9365_s10 + $0x100] sm:$0xf] }
 0x617   : > { %v6355_v41 = vpop.eup %6354  ;;  %v5309_v57 = vmul.f32 -1.442695, %v8744_v40  ;;  %vm2972_vm14 = vcmp.eq.f32.partialorder %v2971_v42, 8.507059e+37  ;;  %v6098_v42 = vld [vmem:[%s9365_s10 + $0x4] sm:$0xf] }
 0x618   : > { %v8746_v45 = vpop.eup %6356  ;;  %v8748_v6 = vadd.f32 1.0, %v6355_v41  ;;  %v5312_v49 = vmul.f32 -1.442695, %v8736_v33  ;;  %v2951_v11 = vadd.f32 %v8697_v53, %v2950_v55 }
 0x619   : > { %v8750_v47 = vpop.eup %6358  ;;  %v2963_v48 = vmul.f32 %v8746_v45, %v8695_v13  ;;  %vm2968_vm8 = vweird.f32 %v8746_v45 }
 0x61a   : > { %v3008_v54 = vmul.f32 %v8750_v47, %v8699_v15  ;;  %6362 = vrcp.f32 %v8748_v6  ;;  %v6361_v46 = vpop.eup %6360  ;;  %vm3013_vm1 = vweird.f32 %v8750_v47  ;;  %v2955_v32 = vsel %vm8804_vm7, %v8697_v53, %v2951_v11  ;;  %v6153_v53 = vld [vmem:[%s9365_s10 + $0x1b4] sm:$0xf0]  ;;  %vm8836_vm11 = vmor %vm2967_vm5, %vm2968_vm8  ;;  %v5326_v11 = vld [vmem:[%s9365_s10 + $0x18] sm:$0xf0] }
 0x61b   : > { %v2964_v0 = vsub.f32 1.0, %v2963_v48  ;;  %6364 = vpow2.f32 %v5312_v49  ;;  %v8783_v22 = vadd.f32 1.0, %v6361_v46  ;;  %vm8798_vm6 = vmor %vm3012_vm2, %vm3013_vm1  ;;  %v2960_v48 = vsel %vm8791_vm4, %v2959_v27, %v2955_v32 }
 0x61c   : > { %v3009_v52 = vsub.f32 1.0, %v3008_v54  ;;  %v2786_v2 = vpop.f32.mrf.mxu2  ;;  %v2800_v60 = vpop.f32.mrf.mxu3  ;;  %6366 = vpow2.f32 %v5309_v57  ;;  %v3031_v54 = vand.u32 2147483647, %v8748_v6  ;;  %v3033_v55 = vand.u32 2147483648, %v8748_v6 }
 0x61d   : > { %v8760_v61 = vadd.f32 %v2800_v60, %v2786_v2  ;;  %v2965_v19 = vmul.f32 %v8746_v45, %v2964_v0  ;;  %6368 = vrcp.f32 %v8783_v22  ;;  %v6120_v0 = vld [vmem:[%s9365_s10 + $0xb4] sm:$0xf]  ;;  %vm3027_vm12 = vweird.f32 %v8748_v6  ;;  %v5406_v60 = vld [vmem:[%s9365_s10 + $0xb8] sm:$0xf0] }
 0x61e   : > { %v3010_v10 = vmul.f32 %v8750_v47, %v3009_v52  ;;  %v8775_v14 = vpop.f32.mrf.mxu0  ;;  %v8777_v16 = vpop.f32.mrf.mxu1  ;;  %v5533_v2 = vor.u32 %v6153_v53, %v5532_v43  ;;  %vm3032_vm15 = vcmp.eq.f32.partialorder %v3031_v54, 8.507059e+37  ;;  %v5409_v28 = vor.u32 %v6120_v0, %v5406_v60  ;;  %v5516_v54 = vld [vmem:[%s9365_s10 + $0x190] sm:$0xf]  ;;  %v5390_v0 = vld [vmem:[%s9365_s10 + $0x98] sm:$0xf0] }
 0x61f   : > { %v5313_v9 = vmul.f32 -1.442695, %v8760_v61  ;;  %v2966_v34 = vadd.f32 %v8746_v45, %v2965_v19  ;;  %v6142_v60 = vld [vmem:[%s9365_s10 + $0x164] sm:$0xf]  ;;  %vm2982_vm2 = vweird.f32 %v8783_v22 }
 0x620   : > { %v8779_v8 = vpop.eup %6362  ;;  %v3011_v21 = vadd.f32 %v8750_v47, %v3010_v10  ;;  %v6100_v10 = vld [vmem:[%s9365_s10 + $0x14] sm:$0xf]  ;;  %3517 = vmatpush.bf16.msrb.mxu3 %v5533_v2  ;;  %3545 = vmatpush.bf16.msra.mxu1 %v5409_v28  ;;  %v5566_v28 = vld [vmem:[%s9365_s10 + $0x1f8] sm:$0xf0] }
 0x621   : > { %v3023_v25 = vmul.f32 %v8779_v8, %v8748_v6  ;;  %v6365_v15 = vpop.eup %6364  ;;  %6370 = vpow2.f32 %v5313_v9  ;;  %vm3028_vm10 = vweird.f32 %v8779_v8  ;;  %v2970_v13 = vsel %vm8836_vm11, %v8746_v45, %v2966_v34 }
 0x622   : > { %v3015_v36 = vsel %vm8798_vm6, %v8750_v47, %v3011_v21  ;;  %v8817_v35 = vadd.f32 1.0, %v6365_v15  ;;  %v6367_v37 = vpop.eup %6366  ;;  %vm8862_vm13 = vmor %vm3027_vm12, %vm3028_vm10  ;;  %v2827_v21 = vadd.f32 %v8777_v16, %v8775_v14  ;;  %v2975_v3 = vsel %vm2972_vm14, %v2974_v58, %v2970_v13  ;;  %v5524_v14 = vld [vmem:[%s9365_s10 + $0x1a0] sm:$0xf]  ;;  %v6151_v16 = vld [vmem:[%s9365_s10 + $0x1a4] sm:$0xf0] }
 0x623   : > { %v3024_v31 = vsub.f32 1.0, %v3023_v25  ;;  %v3020_v44 = vsel %vm3017_vm9, %v3019_v30, %v3015_v36  ;;  %v8866_v6 = vadd.f32 1.0, %v6367_v37  ;;  %v8874_v12 = vpop.eup %6368  ;;  %v3034_v25 = vor.u32 1.1754944e-38, %v3033_v55  ;;  %v6118_v36 = vld [vmem:[%s9365_s10 + $0xa4] sm:$0xf] }
 0x624   : > { %6372 = vrcp.f32 %v8817_v35  ;;  %v3071_v56 = vmul.f32 %v3020_v44, %v8617_v24  ;;  %v3067_v24 = vmul.f32 %v2960_v48, %v8582_v5  ;;  %v5453_v5 = vor.u32 %v6133_v63, %v5452_v62  ;;  %v5398_v37 = vld [vmem:[%s9365_s10 + $0xa8] sm:$0xf0]  ;;  %v6149_v55 = vld [vmem:[%s9365_s10 + $0x194] sm:$0xf0]  ;;  %v5508_v63 = vld [vmem:[%s9365_s10 + $0x180] sm:$0xf] }
 0x625   : > { %v3025_v41 = vmul.f32 %v8779_v8, %v3024_v31  ;;  %v5329_v15 = vor.u32 %v6100_v10, %v5326_v11  ;;  %6374 = vrcp.f32 %v8866_v6  ;;  %v3068_v43 = vmul.f32 %v2975_v3, %v8609_v17  ;;  %v5318_v44 = vld [vmem:[%s9365_s10 + $0x8] sm:$0xf0]  ;;  %v6147_v11 = vld [vmem:[%s9365_s10 + $0x184] sm:$0xf0] }
 0x626   : > { %v2814_v57 = vpop.f32.mrf.mxu0  ;;  %v2828_v46 = vpop.f32.mrf.mxu1  ;;  %v3075_v30 = vmul.f32 %v3067_v24, %v2827_v21  ;;  %3505 = vmatpush.bf16.msrb.mxu2 %v5453_v5  ;;  %v5525_v49 = vor.u32 %v6151_v16, %v5524_v14  ;;  %v5494_v62 = vld [vmem:[%s9365_s10 + $0x168] sm:$0xf0]  ;;  %v5321_v45 = vor.u32 %v6098_v42, %v5318_v44  ;;  %v6114_v24 = vld [vmem:[%s9365_s10 + $0x84] sm:$0xf]  ;;  %v5509_v14 = vor.u32 %v6147_v11, %v5508_v63  ;;  %v6140_v16 = vld [vmem:[%s9365_s10 + $0x154] sm:$0xf] }
 0x627   : > { %v2840_v7 = vpop.f32.mrf.mxu2  ;;  %v2854_v47 = vpop.f32.mrf.mxu3  ;;  %v3026_v50 = vadd.f32 %v8779_v8, %v3025_v41  ;;  %v2829_v52 = vadd.f32 %v2828_v46, %v2814_v57  ;;  %v6131_v41 = vld [vmem:[%s9365_s10 + $0x104] sm:$0xf0]  ;;  %3533 = vmatpush.bf16.msra.mxu0 %v5329_v15  ;;  %v5401_v46 = vor.u32 %v6118_v36, %v5398_v37  ;;  %v5497_v15 = vor.u32 %v6142_v60, %v5494_v62  ;;  %v5486_v36 = vld [vmem:[%s9365_s10 + $0x158] sm:$0xf0]  ;;  %v5558_v37 = vld [vmem:[%s9365_s10 + $0x1e8] sm:$0xf0] }
 0x628   : > { %v6371_v23 = vpop.eup %6370  ;;  %v2855_v31 = vadd.f32 %v2854_v47, %v2840_v7  ;;  %v6144_v7 = vld [vmem:[%s9365_s10 + $0x174] sm:$0xf]  ;;  %3518 = vmatpush.bf16.msrb.mxu3 %v5525_v49  ;;  %v5445_v2 = vor.u32 %v6131_v41, %v5444_v39  ;;  %v2986_v39 = vand.u32 2147483647, %v8783_v22  ;;  %v5489_v41 = vor.u32 %v6140_v16, %v5486_v36  ;;  %v6138_v44 = vld [vmem:[%s9365_s10 + $0x144] sm:$0xf] }
 0x629   : > { %v3030_v19 = vsel %vm8862_vm13, %v8779_v8, %v3026_v50  ;;  %v3079_v9 = vmul.f32 %v3071_v56, %v2829_v52  ;;  %v8884_v27 = vadd.f32 1.0, %v6371_v23  ;;  %v2978_v8 = vmul.f32 %v8874_v12, %v8783_v22  ;;  %v5502_v50 = vld [vmem:[%s9365_s10 + $0x178] sm:$0xf0]  ;;  %3546 = vmatpush.bf16.msra.mxu1 %v5401_v46  ;;  %v6154_v11 = vld [vmem:[%s9365_s10 + $0x1c4] sm:$0xf] }
 0x62a   : > { %v8882_v26 = vpop.eup %6372  ;;  %v3035_v29 = vsel %vm3032_vm15, %v3034_v25, %v3030_v19  ;;  %v3076_v13 = vmul.f32 %v3068_v43, %v2855_v31  ;;  %v5505_v10 = vor.u32 %v6144_v7, %v5502_v50  ;;  %3506 = vmatpush.bf16.msrb.mxu2 %v5445_v2  ;;  %v5517_v23 = vor.u32 %v6149_v55, %v5516_v54  ;;  %v5382_v25 = vld [vmem:[%s9365_s10 + $0x88] sm:$0xf0]  ;;  %v5550_v46 = vld [vmem:[%s9365_s10 + $0x1d8] sm:$0xf0] }
 0x62b   : > { %6376 = vrcp.f32 %v8884_v27  ;;  %v3038_v53 = vmul.f32 %v8882_v26, %v8817_v35  ;;  %v3072_v47 = vmul.f32 %v3035_v29, %v8669_v51  ;;  %v8921_v48 = vpack.c.bf16 %v3079_v9, %v3075_v30  ;;  %v6116_v51 = vld [vmem:[%s9365_s10 + $0x94] sm:$0xf]  ;;  %v8948_v58 = vpop.eup %6374  ;;  %3534 = vmatpush.bf16.msra.mxu0 %v5321_v45  ;;  %v5478_v7 = vld [vmem:[%s9365_s10 + $0x148] sm:$0xf0]  ;;  %v5470_v62 = vld [vmem:[%s9365_s10 + $0x138] sm:$0xf0] }
 0x62c   : > { %v2979_v57 = vsub.f32 1.0, %v2978_v8  ;;  %v5393_v3 = vor.u32 %v6116_v51, %v5390_v0  ;;  %v6160_v9 = vld [vmem:[%s9365_s10 + $0x1f4] sm:$0xf]  ;;  %v2993_v29 = vmul.f32 %v8948_v58, %v8866_v6  ;;  %3519 = vmatpush.bf16.msrb.mxu3 %v5517_v23  ;;  %v5385_v31 = vor.u32 %v6114_v24, %v5382_v25  ;;  %v5542_v24 = vld [vmem:[%s9365_s10 + $0x1c8] sm:$0xf0] }
 0x62d   : > { %3479 = vmatmul.bf16.vlgmr.msrb.gmra.mxu0 %v8921_v48  ;;  %v3039_v56 = vsub.f32 1.0, %v3038_v53  ;;  %vm2983_vm0 = vweird.f32 %v8874_v12  ;;  %vm3043_vm1 = vweird.f32 %v8882_v26  ;;  %v3048_v50 = vand.u32 2147483648, %v8817_v35  ;;  %v5446_v51 = vld [vmem:[%s9365_s10 + $0x108] sm:$0xf0] }
 0x62e   : > { %v2980_v5 = vmul.f32 %v8874_v12, %v2979_v57  ;;  %3555 = vmatpush.bf16.msra.mxu2 %v5505_v10  ;;  %3547 = vmatpush.bf16.msra.mxu1 %v5393_v3  ;;  %v2994_v53 = vsub.f32 1.0, %v2993_v29  ;;  %v6156_v57 = vld [vmem:[%s9365_s10 + $0x1d4] sm:$0xf]  ;;  %vm9010_vm3 = vmor %vm2982_vm2, %vm2983_vm0  ;;  %vm3042_vm4 = vweird.f32 %v8817_v35  ;;  %v5481_v0 = vor.u32 %v6138_v44, %v5478_v7  ;;  %v5454_v44 = vld [vmem:[%s9365_s10 + $0x118] sm:$0xf0] }
 0x62f   : > { %v2842_v32 = vpop.f32.mrf.mxu2  ;;  %v2856_v34 = vpop.f32.mrf.mxu3  ;;  %v3040_v30 = vmul.f32 %v8882_v26, %v3039_v56  ;;  %vm9022_vm5 = vmor %vm3042_vm4, %vm3043_vm1  ;;  %vm2987_vm6 = vcmp.eq.f32.partialorder %v2986_v39, 8.507059e+37  ;;  %v5553_v56 = vor.u32 %v6156_v57, %v5550_v46  ;;  %vm2997_vm7 = vweird.f32 %v8866_v6  ;;  %v6130_v46 = vld [vmem:[%s9365_s10 + $0x104] sm:$0xf] }
 0x630   : > { %v2857_v17 = vadd.f32 %v2856_v34, %v2842_v32  ;;  %v5569_v32 = vor.u32 %v6160_v9, %v5566_v28  ;;  %v6158_v34 = vld [vmem:[%s9365_s10 + $0x1e4] sm:$0xf]  ;;  %v2981_v43 = vadd.f32 %v8874_v12, %v2980_v5  ;;  %3520 = vmatpush.bf16.msrb.mxu3 %v5509_v14  ;;  %v3003_v45 = vand.u32 2147483648, %v8866_v6  ;;  %v5462_v5 = vld [vmem:[%s9365_s10 + $0x128] sm:$0xf0] }
 0x631   : > { %v8956_v19 = vpop.eup %6376  ;;  %v5561_v49 = vor.u32 %v6158_v34, %v5558_v37  ;;  %v3049_v10 = vor.u32 1.1754944e-38, %v3048_v50  ;;  %vm2998_vm8 = vweird.f32 %v8948_v58  ;;  %v6134_v28 = vld [vmem:[%s9365_s10 + $0x124] sm:$0xf]  ;;  %v3063_v29 = vand.u32 2147483648, %v8884_v27  ;;  %v6152_v34 = vld [vmem:[%s9365_s10 + $0x1b4] sm:$0xf] }
 0x632   : > { %v3080_v52 = vmul.f32 %v3072_v47, %v2857_v17  ;;  %v3053_v8 = vmul.f32 %v8956_v19, %v8884_v27  ;;  %3556 = vmatpush.bf16.msra.mxu2 %v5497_v15  ;;  %v2988_v47 = vand.u32 2147483648, %v8783_v22  ;;  %v3041_v17 = vadd.f32 %v8882_v26, %v3040_v30  ;;  %3548 = vmatpush.bf16.msra.mxu1 %v5385_v31  ;;  %vm9061_vm11 = vmor %vm2997_vm7, %vm2998_vm8  ;;  %v5534_v37 = vld [vmem:[%s9365_s10 + $0x1b8] sm:$0xf0] }
 0x633   : > { %v3046_v22 = vand.u32 2147483647, %v8817_v35  ;;  %v6136_v35 = vld [vmem:[%s9365_s10 + $0x134] sm:$0xf]  ;;  %vm3058_vm10 = vweird.f32 %v8956_v19  ;;  %v3001_v15 = vand.u32 2147483647, %v8866_v6  ;;  %v5545_v36 = vor.u32 %v6154_v11, %v5542_v24 }
 0x634   : > { %v8958_v21 = vpack.c.bf16 %v3080_v52, %v3076_v13  ;;  %v3054_v42 = vsub.f32 1.0, %v3053_v8  ;;  %3569 = vmatpush.bf16.msra.mxu3 %v5569_v32  ;;  %v2985_v13 = vsel %vm9010_vm3, %v8874_v12, %v2981_v43  ;;  %v2995_v52 = vmul.f32 %v8948_v58, %v2994_v53 }
 0x635   : > { %v2989_v12 = vor.u32 1.1754944e-38, %v2988_v47  ;;  %v3045_v63 = vsel %vm9022_vm5, %v8882_v26, %v3041_v17  ;;  %vm3047_vm9 = vcmp.eq.f32.partialorder %v3046_v22, 8.507059e+37  ;;  %v5473_v26 = vor.u32 %v6136_v35, %v5470_v62  ;;  %v6148_v35 = vld [vmem:[%s9365_s10 + $0x194] sm:$0xf]  ;;  %v5518_v62 = vld [vmem:[%s9365_s10 + $0x198] sm:$0xf0] }
 0x636   : > { %3493 = vmatmul.bf16.vlgmr.msrb.gmra.mxu1 %v8958_v21  ;;  %3557 = vmatpush.bf16.msra.mxu2 %v5489_v41  ;;  %v3055_v60 = vmul.f32 %v8956_v19, %v3054_v42  ;;  %v2996_v3 = vadd.f32 %v8948_v58, %v2995_v52  ;;  %v3050_v25 = vsel %vm3047_vm9, %v3049_v10, %v3045_v63  ;;  %vm3057_vm12 = vweird.f32 %v8884_v27 }
 0x637   : > { %v2990_v23 = vsel %vm2987_vm6, %v2989_v12, %v2985_v13  ;;  %v3061_v30 = vand.u32 2147483647, %v8884_v27  ;;  %v3073_v39 = vmul.f32 %v3050_v25, %v8736_v33  ;;  %vm9077_vm13 = vmor %vm3057_vm12, %vm3058_vm10  ;;  %v5465_v43 = vor.u32 %v6134_v28, %v5462_v5  ;;  %v6132_v33 = vld [vmem:[%s9365_s10 + $0x114] sm:$0xf] }
 0x638   : > { %3570 = vmatpush.bf16.msra.mxu3 %v5561_v49  ;;  %v3056_v9 = vadd.f32 %v8956_v19, %v3055_v60  ;;  %v3069_v6 = vmul.f32 %v2990_v23, %v8677_v1  ;;  %v3000_v53 = vsel %vm9061_vm11, %v8948_v58, %v2996_v3  ;;  %v3004_v42 = vor.u32 1.1754944e-38, %v3003_v45 }
 0x639   : > { %v3064_v7 = vor.u32 1.1754944e-38, %v3063_v29  ;;  %v5537_v58 = vor.u32 %v6152_v34, %v5534_v37  ;;  %vm3002_vm14 = vcmp.eq.f32.partialorder %v3001_v15, 8.507059e+37  ;;  %vm3062_vm15 = vcmp.eq.f32.partialorder %v3061_v30, 8.507059e+37 }
 0x63a   : > { %3558 = vmatpush.bf16.msra.mxu2 %v5481_v0  ;;  %v3060_v1 = vsel %vm9077_vm13, %v8956_v19, %v3056_v9  ;;  %v6150_v19 = vld [vmem:[%s9365_s10 + $0x1a4] sm:$0xf]  ;;  %v3005_v49 = vsel %vm3002_vm14, %v3004_v42, %v3000_v53  ;;  %v5449_v12 = vor.u32 %v6130_v46, %v5446_v51  ;;  %v5521_v45 = vor.u32 %v6148_v35, %v5518_v62 }
 0x63b   : > { %v3065_v50 = vsel %vm3062_vm15, %v3064_v7, %v3060_v1  ;;  %v3070_v52 = vmul.f32 %v3005_v49, %v8744_v40  ;;  %v6146_v40 = vld [vmem:[%s9365_s10 + $0x184] sm:$0xf] }
 0x63c   : > { %3571 = vmatpush.bf16.msra.mxu3 %v5553_v56  ;;  %v3074_v2 = vmul.f32 %v3065_v50, %v8760_v61  ;;  %v5510_v61 = vld [vmem:[%s9365_s10 + $0x188] sm:$0xf0] }
 0x63d   : > { %3535 = vmatmul.bf16.vlgmr.msra.gmra.mxu0 %v8921_v48  ;;  %v5513_v11 = vor.u32 %v6146_v40, %v5510_v61 }
 0x63e   : > { %v2868_v54 = vpop.f32.mrf.mxu0  ;;  %v2882_v55 = vpop.f32.mrf.mxu1  ;;  %3559 = vmatpush.bf16.msra.mxu2 %v5473_v26 }
 0x63f   : > { %v2883_v8 = vadd.f32 %v2882_v55, %v2868_v54  ;;  %v5457_v55 = vor.u32 %v6132_v33, %v5454_v44 }
 0x640   : > { %3572 = vmatpush.bf16.msra.mxu3 %v5545_v36 }
 0x641   : > { %v3077_v47 = vmul.f32 %v3069_v6, %v2883_v8 }
 0x642   : > { %3560 = vmatpush.bf16.msra.mxu2 %v5465_v43 }
 0x644   : > { %3573 = vmatpush.bf16.msra.mxu3 %v5537_v58 }
 0x645   : > { %v2896_v14 = vpop.f32.mrf.mxu2  ;;  %v2910_v16 = vpop.f32.mrf.mxu3 }
 0x646   : > { %v2870_v31 = vpop.f32.mrf.mxu0  ;;  %v2884_v32 = vpop.f32.mrf.mxu1  ;;  %3549 = vmatmul.bf16.vlgmr.msra.gmra.mxu1 %v8958_v21  ;;  %v5526_v21 = vld [vmem:[%s9365_s10 + $0x1a8] sm:$0xf0]  ;;  %v2911_v57 = vadd.f32 %v2910_v16, %v2896_v14  ;;  %3561 = vmatpush.bf16.msra.mxu2 %v5457_v55 }
 0x647   : > { %v2885_v27 = vadd.f32 %v2884_v32, %v2870_v31  ;;  %v5529_v13 = vor.u32 %v6150_v19, %v5526_v21 }
 0x648   : > { %v3078_v63 = vmul.f32 %v3070_v52, %v2911_v57 }
 0x649   : > { %v3081_v17 = vmul.f32 %v3073_v39, %v2885_v27  ;;  %3574 = vmatpush.bf16.msra.mxu3 %v5529_v13 }
 0x64a   : > { %3562 = vmatpush.bf16.msra.mxu2 %v5449_v12 }
 0x64b   : > { %v3085_v54 = vpack.c.bf16 %v3081_v17, %v3077_v47 }
 0x64d   : > { %v2898_v22 = vpop.f32.mrf.mxu2  ;;  %v2912_v0 = vpop.f32.mrf.mxu3  ;;  %3507 = vmatmul.bf16.vlgmr.msrb.gmra.mxu2 %v3085_v54  ;;  %3575 = vmatpush.bf16.msra.mxu3 %v5521_v45 }
 0x64e   : > { %v2913_v60 = vadd.f32 %v2912_v0, %v2898_v22 }
 0x650   : > { %v3082_v56 = vmul.f32 %v3074_v2, %v2913_v60 }
 0x651   : > { %3576 = vmatpush.bf16.msra.mxu3 %v5513_v11 }
 0x652   : > { %v3086_v10 = vpack.c.bf16 %v3082_v56, %v3078_v63 }
 0x654   : > { %3521 = vmatmul.bf16.vlgmr.msrb.gmra.mxu3 %v3086_v10 }
 0x65d   : > { %3563 = vmatmul.bf16.vlgmr.msra.gmra.mxu2 %v3085_v54 }
 0x664   : > { %3577 = vmatmul.bf16.vlgmr.msra.gmra.mxu3 %v3086_v10 }
 0x6aa   : > { %v3480_v23 = vpop.f32.mrf.mxu0 }
 0x6b2   : > { %v3482_v25 = vpop.f32.mrf.mxu0 }
 0x6b3   : > { %v3494_v24 = vpop.f32.mrf.mxu1 }
 0x6b4   : > { %v3495_v29 = vadd.f32 %v3494_v24, %v3480_v23 }
 0x6ba   : > { %v3536_v8 = vpop.f32.mrf.mxu0 }
 0x6bb   : > { %v3496_v3 = vpop.f32.mrf.mxu1 }
 0x6bc   : > { %v3497_v32 = vadd.f32 %v3496_v3, %v3482_v25 }
 0x6c2   : > { %v3538_v27 = vpop.f32.mrf.mxu0 }
 0x6c3   : > { %v3550_v5 = vpop.f32.mrf.mxu1 }
 0x6c4   : > { %v3551_v36 = vadd.f32 %v3550_v5, %v3536_v8 }
 0x6cb   : > { %v3552_v6 = vpop.f32.mrf.mxu1 }
 0x6cc   : > { %v3553_v53 = vadd.f32 %v3552_v6, %v3538_v27 }
 0x6d0   : > { %v3508_v26 = vpop.f32.mrf.mxu2 }
 0x6d1   : > { %v3509_v16 = vadd.f32 %v3508_v26, %v3495_v29 }
 0x6d7   : > { %v3522_v9 = vpop.f32.mrf.mxu3 }
 0x6d8   : > { %v3510_v28 = vpop.f32.mrf.mxu2  ;;  %v3523_v48 = vadd.f32 %v3522_v9, %v3509_v16 }
 0x6d9   : > { %v3511_v39 = vadd.f32 %v3510_v28, %v3497_v32 }
 0x6da   : > { %v3583_v34 = vadd.f32 %v3523_v48, %v7823_v59 }
 0x6dc   : > { %v3588_v1 = vmul.f32 %v3583_v34, %v3583_v34 }
 0x6df   : > { %v3524_v15 = vpop.f32.mrf.mxu3 }
 0x6e0   : > { %v3564_v14 = vpop.f32.mrf.mxu2  ;;  %v3525_v42 = vadd.f32 %v3524_v15, %v3511_v39 }
 0x6e1   : > { %v3565_v30 = vadd.f32 %v3564_v14, %v3551_v36 }
 0x6e2   : > { %v3585_v17 = vadd.f32 %v3525_v42, %v7842_v18 }
 0x6e4   : > { %v3590_v19 = vmul.f32 %v3585_v17, %v3585_v17 }
 0x6e7   : > { %v3578_v31 = vpop.f32.mrf.mxu3 }
 0x6e8   : > { %v3579_v37 = vadd.f32 %v3578_v31, %v3565_v30  ;;  %v3566_v43 = vpop.f32.mrf.mxu2 }
 0x6e9   : > { %v3567_v44 = vadd.f32 %v3566_v43, %v3553_v53 }
 0x6ea   : > { %v3584_v41 = vadd.f32 %v3579_v37, %v7826_v38 }
 0x6ec   : > { %v3589_v33 = vmul.f32 %v3584_v41, %v3584_v41 }
 0x6ee   : > { %v3592_v7 = vadd.f32 %v3589_v33, %v3588_v1 }
 0x6ef   : > { %v3580_v47 = vpop.f32.mrf.mxu3 }
 0x6f0   : > { %v3581_v58 = vadd.f32 %v3580_v47, %v3567_v44  ;;  %3593 = vadd.xlane.f32.xlu2 %v3592_v7 }
 0x6f2   : > { %v3586_v59 = vadd.f32 %v3581_v58, %v7845_v20  ;;  %v3587_v20 = vld [vmem:[%s9384_s20] sm:$0x3] }
 0x6f3   : > { %v3627_v35 = vperm.slane %v3587_v20, 0  ;;  %v3628_v62 = vperm.slane %v3587_v20, 1 }
 0x6f4   : > { %v3591_v21 = vmul.f32 %v3586_v59, %v3586_v59 }
 0x6f6   : > { %v3595_v49 = vadd.f32 %v3591_v21, %v3590_v19 }
 0x6f8   : > { %3596 = vadd.xlane.f32.xlu1 %v3595_v49 }
 0x763   : > { %v3594_v38 = vpop.xlane.xlu2 %3593 }
 0x764   : > { %v3598_v50 = vmul.f32 %v3594_v38, %v7174_v4 }
 0x766   : > { %v3600_v54 = vadd.f32 1e-06, %v3598_v50 }
 0x768   : > { %6378 = vrsqrt.f32 %v3600_v54  ;;  %vm3608_vm1 = vweird.f32 %v3600_v54 }
 0x76b   : > { %v3597_v55 = vpop.xlane.xlu1 %3596 }
 0x76c   : > { %v3599_v57 = vmul.f32 %v3597_v55, %v7174_v4 }
 0x76e   : > { %v6379_v46 = vpop.eup %6378  ;;  %v3601_v51 = vadd.f32 1e-06, %v3599_v57 }
 0x76f   : > { %v3603_v22 = vmul.f32 %v6379_v46, %v3600_v54  ;;  %vm3609_vm0 = vweird.f32 %v6379_v46 }
 0x770   : > { %6380 = vrsqrt.f32 %v3601_v51  ;;  %vm3610_vm2 = vmor %vm3608_vm1, %vm3609_vm0  ;;  %vm3618_vm4 = vweird.f32 %v3601_v51 }
 0x771   : > { %v3604_v18 = vmul.f32 %v6379_v46, %v3603_v22 }
 0x773   : > { %v3605_v0 = vmul.f32 0.5, %v3604_v18 }
 0x775   : > { %v3606_v13 = vsub.f32 1.5, %v3605_v0 }
 0x776   : > { %v6381_v52 = vpop.eup %6380 }
 0x777   : > { %v3607_v2 = vmul.f32 %v6379_v46, %v3606_v13  ;;  %v3613_v60 = vmul.f32 %v6381_v52, %v3601_v51  ;;  %vm3619_vm3 = vweird.f32 %v6381_v52 }
 0x778   : > { %vm3620_vm5 = vmor %vm3618_vm4, %vm3619_vm3 }
 0x779   : > { %v3611_v4 = vsel %vm3610_vm2, %v6379_v46, %v3607_v2  ;;  %v3614_v12 = vmul.f32 %v6381_v52, %v3613_v60 }
 0x77a   : > { %v3622_v63 = vmul.f32 %v3611_v4, %v3583_v34  ;;  %v3623_v56 = vmul.f32 %v3611_v4, %v3584_v41 }
 0x77b   : > { %v3615_v45 = vmul.f32 0.5, %v3614_v12 }
 0x77c   : > { %v3631_v10 = vmul.f32 %v3627_v35, %v3622_v63  ;;  %v3632_v40 = vmul.f32 %v3628_v62, %v3623_v56 }
 0x77d   : > { %v3616_v61 = vsub.f32 1.5, %v3615_v45 }
 0x77e   : > { %v3635_v11 = vpack.c.bf16 %v3632_v40, %v3631_v10 }
 0x77f   : > { %v3617_v24 = vmul.f32 %v6381_v52, %v3616_v61 }
 0x780   : > { %3637 = vst [vmem:[#allocation2] sm:$0xff] %v3635_v11 }
 0x781   : > { %v3621_v23 = vsel %vm3620_vm5, %v6381_v52, %v3617_v24 }
 0x782   : > { %v3624_v26 = vmul.f32 %v3621_v23, %v3585_v17  ;;  %v3625_v3 = vmul.f32 %v3621_v23, %v3586_v59 }
 0x784   : > { %v3633_v25 = vmul.f32 %v3627_v35, %v3624_v26  ;;  %v3634_v9 = vmul.f32 %v3628_v62, %v3625_v3 }
 0x786   : > { %v3636_v28 = vpack.c.bf16 %v3634_v9, %v3633_v25 }
 0x788   : > { %3638 = vst [vmem:[#allocation2 + $0x8] sm:$0xff] %v3636_v28 }
 0x789 PF: > { %v5692_v5 = vld [vmem:[%s6806_s30 + $0xe0] sm:$0xf]  ;;  %v6194_v15 = vld [vmem:[%s6806_s30 + $0xec] sm:$0xf0]  ;;  %v6192_v16 = vld [vmem:[%s6806_s30 + $0xe4] sm:$0xf] }
 0x78a   : > { %v5820_v29 = vld [vmem:[%s6806_s30 + $0x1e0] sm:$0xf]  ;;  %v5693_v8 = vor.u32 %v6194_v15, %v5692_v5  ;;  %v6226_v14 = vld [vmem:[%s6806_s30 + $0x1ec] sm:$0xf0]  ;;  %v5694_v36 = vld [vmem:[%s6806_s30 + $0xf0] sm:$0xf0] }
 0x78b   : > { %v5821_v48 = vor.u32 %v6226_v14, %v5820_v29  ;;  %v5697_v30 = vor.u32 %v6192_v16, %v5694_v36  ;;  %v6224_v31 = vld [vmem:[%s6806_s30 + $0x1e4] sm:$0xf]  ;;  %v5822_v32 = vld [vmem:[%s6806_s30 + $0x1f0] sm:$0xf0]  ;;  %v5676_v34 = vld [vmem:[%s6806_s30 + $0xc0] sm:$0xf] }
 0x78c   : > { %4035 = vmatpush.bf16.msra.mxu0 %v5693_v8  ;;  %v5825_v37 = vor.u32 %v6224_v31, %v5822_v32  ;;  %v6190_v6 = vld [vmem:[%s6806_s30 + $0xcc] sm:$0xf0]  ;;  %v5804_v39 = vld [vmem:[%s6806_s30 + $0x1c0] sm:$0xf]  ;;  %v6188_v53 = vld [vmem:[%s6806_s30 + $0xc4] sm:$0xf] }
 0x78d   : > { %v6222_v41 = vld [vmem:[%s6806_s30 + $0x1cc] sm:$0xf0]  ;;  %4049 = vmatpush.bf16.msra.mxu1 %v5821_v48  ;;  %4063 = vmatpush.bf16.msra.mxu2 %v5697_v30  ;;  %v5677_v27 = vor.u32 %v6190_v6, %v5676_v34  ;;  %v5678_v42 = vld [vmem:[%s6806_s30 + $0xd0] sm:$0xf0]  ;;  %v6220_v1 = vld [vmem:[%s6806_s30 + $0x1c4] sm:$0xf] }
 0x78e   : > { %v5805_v43 = vor.u32 %v6222_v41, %v5804_v39  ;;  %4077 = vmatpush.bf16.msra.mxu3 %v5825_v37  ;;  %v5681_v33 = vor.u32 %v6188_v53, %v5678_v42  ;;  %v5806_v44 = vld [vmem:[%s6806_s30 + $0x1d0] sm:$0xf0]  ;;  %v5660_v7 = vld [vmem:[%s6806_s30 + $0xa0] sm:$0xf]  ;;  %v6186_v47 = vld [vmem:[%s6806_s30 + $0xac] sm:$0xf0] }
 0x78f   : > { %v5809_v17 = vor.u32 %v6220_v1, %v5806_v44  ;;  %v5788_v58 = vld [vmem:[%s6806_s30 + $0x1a0] sm:$0xf]  ;;  %v6218_v59 = vld [vmem:[%s6806_s30 + $0x1ac] sm:$0xf0]  ;;  %v6184_v19 = vld [vmem:[%s6806_s30 + $0xa4] sm:$0xf]  ;;  %v5661_v21 = vor.u32 %v6186_v47, %v5660_v7 }
 0x790   : > { %4036 = vmatpush.bf16.msra.mxu0 %v5677_v27  ;;  %v5662_v49 = vld [vmem:[%s6806_s30 + $0xb0] sm:$0xf0]  ;;  %v6216_v38 = vld [vmem:[%s6806_s30 + $0x1a4] sm:$0xf]  ;;  %v5789_v54 = vor.u32 %v6218_v59, %v5788_v58  ;;  %v5644_v57 = vld [vmem:[%s6806_s30 + $0x80] sm:$0xf] }
 0x791   : > { %v5790_v50 = vld [vmem:[%s6806_s30 + $0x1b0] sm:$0xf0]  ;;  %4050 = vmatpush.bf16.msra.mxu1 %v5805_v43  ;;  %4064 = vmatpush.bf16.msra.mxu2 %v5681_v33  ;;  %v5665_v55 = vor.u32 %v6184_v19, %v5662_v49  ;;  %v6182_v46 = vld [vmem:[%s6806_s30 + $0x8c] sm:$0xf0]  ;;  %v5772_v51 = vld [vmem:[%s6806_s30 + $0x180] sm:$0xf] }
 0x792   : > { %4078 = vmatpush.bf16.msra.mxu3 %v5809_v17  ;;  %v5793_v22 = vor.u32 %v6216_v38, %v5790_v50  ;;  %v6214_v18 = vld [vmem:[%s6806_s30 + $0x18c] sm:$0xf0]  ;;  %v6180_v0 = vld [vmem:[%s6806_s30 + $0x84] sm:$0xf]  ;;  %v5646_v20 = vld [vmem:[%s6806_s30 + $0x90] sm:$0xf0]  ;;  %v5645_v2 = vor.u32 %v6182_v46, %v5644_v57 }
 0x793   : > { %v6212_v13 = vld [vmem:[%s6806_s30 + $0x184] sm:$0xf]  ;;  %v5774_v52 = vld [vmem:[%s6806_s30 + $0x190] sm:$0xf0]  ;;  %v5773_v60 = vor.u32 %v6214_v18, %v5772_v51  ;;  %v5649_v35 = vor.u32 %v6180_v0, %v5646_v20  ;;  %v5628_v62 = vld [vmem:[%s6806_s30 + $0x60] sm:$0xf] }
 0x794   : > { %4037 = vmatpush.bf16.msra.mxu0 %v5661_v21  ;;  %v6178_v4 = vld [vmem:[%s6806_s30 + $0x6c] sm:$0xf0]  ;;  %v5756_v12 = vld [vmem:[%s6806_s30 + $0x160] sm:$0xf]  ;;  %v5777_v63 = vor.u32 %v6212_v13, %v5774_v52  ;;  %v6176_v45 = vld [vmem:[%s6806_s30 + $0x64] sm:$0xf] }
 0x795   : > { %4051 = vmatpush.bf16.msra.mxu1 %v5789_v54  ;;  %4065 = vmatpush.bf16.msra.mxu2 %v5665_v55  ;;  %v6210_v56 = vld [vmem:[%s6806_s30 + $0x16c] sm:$0xf0]  ;;  %v5630_v10 = vld [vmem:[%s6806_s30 + $0x70] sm:$0xf0]  ;;  %v6208_v40 = vld [vmem:[%s6806_s30 + $0x164] sm:$0xf]  ;;  %v5629_v11 = vor.u32 %v6178_v4, %v5628_v62 }
 0x796   : > { %4079 = vmatpush.bf16.msra.mxu3 %v5793_v22  ;;  %v5758_v61 = vld [vmem:[%s6806_s30 + $0x170] sm:$0xf0]  ;;  %v5757_v24 = vor.u32 %v6210_v56, %v5756_v12  ;;  %v5633_v23 = vor.u32 %v6176_v45, %v5630_v10  ;;  %v5612_v26 = vld [vmem:[%s6806_s30 + $0x40] sm:$0xf]  ;;  %v6174_v3 = vld [vmem:[%s6806_s30 + $0x4c] sm:$0xf0] }
 0x797   : > { %v5740_v25 = vld [vmem:[%s6806_s30 + $0x140] sm:$0xf]  ;;  %v5761_v9 = vor.u32 %v6208_v40, %v5758_v61  ;;  %v6206_v28 = vld [vmem:[%s6806_s30 + $0x14c] sm:$0xf0]  ;;  %v6172_v5 = vld [vmem:[%s6806_s30 + $0x44] sm:$0xf]  ;;  %v5613_v14 = vor.u32 %v6174_v3, %v5612_v26 }
 0x798   : > { %4038 = vmatpush.bf16.msra.mxu0 %v5645_v2  ;;  %v5614_v15 = vld [vmem:[%s6806_s30 + $0x50] sm:$0xf0]  ;;  %v6204_v29 = vld [vmem:[%s6806_s30 + $0x144] sm:$0xf]  ;;  %v5741_v16 = vor.u32 %v6206_v28, %v5740_v25  ;;  %v5596_v48 = vld [vmem:[%s6806_s30 + $0x20] sm:$0xf] }
 0x799   : > { %4052 = vmatpush.bf16.msra.mxu1 %v5773_v60  ;;  %4066 = vmatpush.bf16.msra.mxu2 %v5649_v35  ;;  %v5742_v8 = vld [vmem:[%s6806_s30 + $0x150] sm:$0xf0]  ;;  %v5617_v36 = vor.u32 %v6172_v5, %v5614_v15  ;;  %v6170_v30 = vld [vmem:[%s6806_s30 + $0x2c] sm:$0xf0]  ;;  %v5724_v31 = vld [vmem:[%s6806_s30 + $0x120] sm:$0xf] }
 0x79a   : > { %4080 = vmatpush.bf16.msra.mxu3 %v5777_v63  ;;  %v5745_v32 = vor.u32 %v6204_v29, %v5742_v8  ;;  %v6202_v34 = vld [vmem:[%s6806_s30 + $0x12c] sm:$0xf0]  ;;  %v6168_v37 = vld [vmem:[%s6806_s30 + $0x24] sm:$0xf]  ;;  %v5598_v6 = vld [vmem:[%s6806_s30 + $0x30] sm:$0xf0]  ;;  %v5597_v27 = vor.u32 %v6170_v30, %v5596_v48 }
 0x79b   : > { %v6200_v39 = vld [vmem:[%s6806_s30 + $0x124] sm:$0xf]  ;;  %v5726_v41 = vld [vmem:[%s6806_s30 + $0x130] sm:$0xf0]  ;;  %v5580_v43 = vld [vmem:[%s6806_s30] sm:$0xf]  ;;  %v5725_v1 = vor.u32 %v6202_v34, %v5724_v31  ;;  %v5601_v33 = vor.u32 %v6168_v37, %v5598_v6 }
 0x79c   : > { %4039 = vmatpush.bf16.msra.mxu0 %v5629_v11  ;;  %v6166_v53 = vld [vmem:[%s6806_s30 + $0xc] sm:$0xf0]  ;;  %v5708_v42 = vld [vmem:[%s6806_s30 + $0x100] sm:$0xf]  ;;  %v6164_v7 = vld [vmem:[%s6806_s30 + $0x4] sm:$0xf]  ;;  %v5729_v17 = vor.u32 %v6200_v39, %v5726_v41 }
 0x79d   : > { %4053 = vmatpush.bf16.msra.mxu1 %v5757_v24  ;;  %4067 = vmatpush.bf16.msra.mxu2 %v5633_v23  ;;  %v6198_v44 = vld [vmem:[%s6806_s30 + $0x10c] sm:$0xf0]  ;;  %v5582_v47 = vld [vmem:[%s6806_s30 + $0x10] sm:$0xf0]  ;;  %v6196_v58 = vld [vmem:[%s6806_s30 + $0x104] sm:$0xf]  ;;  %v5581_v50 = vor.u32 %v6166_v53, %v5580_v43 }
 0x79e   : > { %4081 = vmatpush.bf16.msra.mxu3 %v5761_v9  ;;  %v5710_v59 = vld [vmem:[%s6806_s30 + $0x110] sm:$0xf0]  ;;  %v5700_v19 = vld [vmem:[%s6806_s30 + $0xe8] sm:$0xf]  ;;  %v6195_v21 = vld [vmem:[%s6806_s30 + $0xf4] sm:$0xf0]  ;;  %v5709_v46 = vor.u32 %v6198_v44, %v5708_v42  ;;  %v5585_v51 = vor.u32 %v6164_v7, %v5582_v47 }
 0x79f   : > { %v5828_v49 = vld [vmem:[%s6806_s30 + $0x1e8] sm:$0xf]  ;;  %v6227_v38 = vld [vmem:[%s6806_s30 + $0x1f4] sm:$0xf0]  ;;  %v6193_v54 = vld [vmem:[%s6806_s30 + $0xec] sm:$0xf]  ;;  %v5713_v20 = vor.u32 %v6196_v58, %v5710_v59  ;;  %v5701_v13 = vor.u32 %v6195_v21, %v5700_v19 }
 0x7a0   : > { %4040 = vmatpush.bf16.msra.mxu0 %v5613_v14  ;;  %v5702_v55 = vld [vmem:[%s6806_s30 + $0xf8] sm:$0xf0]  ;;  %v6225_v57 = vld [vmem:[%s6806_s30 + $0x1ec] sm:$0xf]  ;;  %v5572_v18 = vld [vmem:[#allocation2] sm:$0xf]  ;;  %v5829_v60 = vor.u32 %v6227_v38, %v5828_v49 }
 0x7a1   : > { %4054 = vmatpush.bf16.msra.mxu1 %v5741_v16  ;;  %4068 = vmatpush.bf16.msra.mxu2 %v5617_v36  ;;  %v5830_v22 = vld [vmem:[%s6806_s30 + $0x1f8] sm:$0xf0]  ;;  %v6163_v0 = vld [vmem:[#allocation2 + $0x4] sm:$0xf0]  ;;  %v6162_v52 = vld [vmem:[#allocation2 + $0x4] sm:$0xf]  ;;  %v5705_v35 = vor.u32 %v6193_v54, %v5702_v55 }
 0x7a2   : > { %4082 = vmatpush.bf16.msra.mxu3 %v5745_v32  ;;  %v5574_v2 = vld [vmem:[#allocation2 + $0x8] sm:$0xf0]  ;;  %v5684_v62 = vld [vmem:[%s6806_s30 + $0xc8] sm:$0xf]  ;;  %v6191_v4 = vld [vmem:[%s6806_s30 + $0xd4] sm:$0xf0]  ;;  %v5833_v63 = vor.u32 %v6225_v57, %v5830_v22  ;;  %v9207_v40 = vor.u32 %v6163_v0, %v5572_v18 }
 0x7a3   : > { %v5812_v12 = vld [vmem:[%s6806_s30 + $0x1c8] sm:$0xf]  ;;  %v6223_v56 = vld [vmem:[%s6806_s30 + $0x1d4] sm:$0xf0]  ;;  %v6189_v45 = vld [vmem:[%s6806_s30 + $0xcc] sm:$0xf]  ;;  %v9211_v24 = vor.u32 %v6162_v52, %v5574_v2  ;;  %v5685_v23 = vor.u32 %v6191_v4, %v5684_v62 }
 0x7a4   : > { %4041 = vmatpush.bf16.msra.mxu0 %v5597_v27  ;;  %v5686_v10 = vld [vmem:[%s6806_s30 + $0xd8] sm:$0xf0]  ;;  %v6221_v61 = vld [vmem:[%s6806_s30 + $0x1cc] sm:$0xf]  ;;  %v5813_v26 = vor.u32 %v6223_v56, %v5812_v12  ;;  %v5668_v25 = vld [vmem:[%s6806_s30 + $0xa8] sm:$0xf] }
 0x7a5   : > { %4055 = vmatpush.bf16.msra.mxu1 %v5725_v1  ;;  %4069 = vmatpush.bf16.msra.mxu2 %v5601_v33  ;;  %v5814_v11 = vld [vmem:[%s6806_s30 + $0x1d8] sm:$0xf0]  ;;  %v5689_v3 = vor.u32 %v6189_v45, %v5686_v10  ;;  %v6187_v9 = vld [vmem:[%s6806_s30 + $0xb4] sm:$0xf0]  ;;  %v5796_v28 = vld [vmem:[%s6806_s30 + $0x1a8] sm:$0xf] }
 0x7a6   : > { %4083 = vmatpush.bf16.msra.mxu3 %v5729_v17  ;;  %v5817_v5 = vor.u32 %v6221_v61, %v5814_v11  ;;  %v6219_v15 = vld [vmem:[%s6806_s30 + $0x1b4] sm:$0xf0]  ;;  %v6185_v29 = vld [vmem:[%s6806_s30 + $0xac] sm:$0xf]  ;;  %v5670_v8 = vld [vmem:[%s6806_s30 + $0xb8] sm:$0xf0]  ;;  %v5669_v36 = vor.u32 %v6187_v9, %v5668_v25 }
 0x7a7   : > { %v6217_v14 = vld [vmem:[%s6806_s30 + $0x1ac] sm:$0xf]  ;;  %v5798_v16 = vld [vmem:[%s6806_s30 + $0x1b8] sm:$0xf0]  ;;  %v5797_v48 = vor.u32 %v6219_v15, %v5796_v28  ;;  %v5673_v30 = vor.u32 %v6185_v29, %v5670_v8  ;;  %v5652_v31 = vld [vmem:[%s6806_s30 + $0x88] sm:$0xf] }
 0x7a8   : > { %4042 = vmatpush.bf16.msra.mxu0 %v5581_v50  ;;  %v6183_v32 = vld [vmem:[%s6806_s30 + $0x94] sm:$0xf0]  ;;  %v5780_v34 = vld [vmem:[%s6806_s30 + $0x188] sm:$0xf]  ;;  %v5801_v37 = vor.u32 %v6217_v14, %v5798_v16  ;;  %v6181_v39 = vld [vmem:[%s6806_s30 + $0x8c] sm:$0xf] }
 0x7a9   : > { %4056 = vmatpush.bf16.msra.mxu1 %v5709_v46  ;;  %4070 = vmatpush.bf16.msra.mxu2 %v5585_v51  ;;  %v6215_v6 = vld [vmem:[%s6806_s30 + $0x194] sm:$0xf0]  ;;  %v5654_v41 = vld [vmem:[%s6806_s30 + $0x98] sm:$0xf0]  ;;  %v6213_v27 = vld [vmem:[%s6806_s30 + $0x18c] sm:$0xf]  ;;  %v5653_v53 = vor.u32 %v6183_v32, %v5652_v31 }
 0x7aa   : > { %4084 = vmatpush.bf16.msra.mxu3 %v5713_v20  ;;  %v5782_v43 = vld [vmem:[%s6806_s30 + $0x198] sm:$0xf0]  ;;  %v5781_v42 = vor.u32 %v6215_v6, %v5780_v34  ;;  %v5657_v1 = vor.u32 %v6181_v39, %v5654_v41  ;;  %v5636_v33 = vld [vmem:[%s6806_s30 + $0x68] sm:$0xf]  ;;  %v6179_v44 = vld [vmem:[%s6806_s30 + $0x74] sm:$0xf0] }
 0x7ab   : > { %4043 = vmatmul.bf16.vlgmr.msra.gmra.mxu0 %v9207_v40  ;;  %v5764_v7 = vld [vmem:[%s6806_s30 + $0x168] sm:$0xf]  ;;  %v5785_v47 = vor.u32 %v6213_v27, %v5782_v43  ;;  %v6211_v17 = vld [vmem:[%s6806_s30 + $0x174] sm:$0xf0]  ;;  %v6177_v58 = vld [vmem:[%s6806_s30 + $0x6c] sm:$0xf]  ;;  %v5637_v49 = vor.u32 %v6179_v44, %v5636_v33 }
 0x7ac   : > { %4091 = vmatpush.bf16.msrb.mxu0 %v5701_v13  ;;  %4071 = vmatmul.bf16.vlgmr.msra.gmra.mxu2 %v9207_v40  ;;  %v5638_v59 = vld [vmem:[%s6806_s30 + $0x78] sm:$0xf0]  ;;  %v6209_v19 = vld [vmem:[%s6806_s30 + $0x16c] sm:$0xf]  ;;  %v5765_v38 = vor.u32 %v6211_v17, %v5764_v7  ;;  %v5620_v54 = vld [vmem:[%s6806_s30 + $0x48] sm:$0xf] }
 0x7ad   : > { %4105 = vmatpush.bf16.msrb.mxu1 %v5829_v60  ;;  %4119 = vmatpush.bf16.msrb.mxu2 %v5705_v35  ;;  %v5766_v21 = vld [vmem:[%s6806_s30 + $0x178] sm:$0xf0]  ;;  %v5641_v50 = vor.u32 %v6177_v58, %v5638_v59  ;;  %v6175_v55 = vld [vmem:[%s6806_s30 + $0x54] sm:$0xf0]  ;;  %v5748_v57 = vld [vmem:[%s6806_s30 + $0x148] sm:$0xf] }
 0x7ae   : > { %4133 = vmatpush.bf16.msrb.mxu3 %v5833_v63  ;;  %4057 = vmatmul.bf16.vlgmr.msra.gmra.mxu1 %v9211_v24  ;;  %v5769_v46 = vor.u32 %v6209_v19, %v5766_v21  ;;  %v6207_v51 = vld [vmem:[%s6806_s30 + $0x154] sm:$0xf0]  ;;  %v6173_v22 = vld [vmem:[%s6806_s30 + $0x4c] sm:$0xf]  ;;  %v5622_v18 = vld [vmem:[%s6806_s30 + $0x58] sm:$0xf0]  ;;  %v5621_v13 = vor.u32 %v6175_v55, %v5620_v54 }
 0x7af   : > { %4085 = vmatmul.bf16.vlgmr.msra.gmra.mxu3 %v9211_v24  ;;  %v6205_v0 = vld [vmem:[%s6806_s30 + $0x14c] sm:$0xf]  ;;  %v5750_v20 = vld [vmem:[%s6806_s30 + $0x158] sm:$0xf0]  ;;  %v5749_v52 = vor.u32 %v6207_v51, %v5748_v57  ;;  %v5625_v2 = vor.u32 %v6173_v22, %v5622_v18  ;;  %v5604_v60 = vld [vmem:[%s6806_s30 + $0x28] sm:$0xf] }
 0x7b0   : > { %4092 = vmatpush.bf16.msrb.mxu0 %v5685_v23  ;;  %v6171_v35 = vld [vmem:[%s6806_s30 + $0x34] sm:$0xf0]  ;;  %v5732_v62 = vld [vmem:[%s6806_s30 + $0x128] sm:$0xf]  ;;  %v5753_v4 = vor.u32 %v6205_v0, %v5750_v20  ;;  %v6169_v63 = vld [vmem:[%s6806_s30 + $0x2c] sm:$0xf] }
 0x7b1   : > { %4106 = vmatpush.bf16.msrb.mxu1 %v5813_v26  ;;  %4120 = vmatpush.bf16.msrb.mxu2 %v5689_v3  ;;  %v6203_v12 = vld [vmem:[%s6806_s30 + $0x134] sm:$0xf0]  ;;  %v5606_v56 = vld [vmem:[%s6806_s30 + $0x38] sm:$0xf0]  ;;  %v6201_v45 = vld [vmem:[%s6806_s30 + $0x12c] sm:$0xf]  ;;  %v5605_v61 = vor.u32 %v6171_v35, %v5604_v60 }
 0x7b2   : > { %4134 = vmatpush.bf16.msrb.mxu3 %v5817_v5  ;;  %v5734_v10 = vld [vmem:[%s6806_s30 + $0x138] sm:$0xf0]  ;;  %v5733_v11 = vor.u32 %v6203_v12, %v5732_v62  ;;  %v5609_v23 = vor.u32 %v6169_v63, %v5606_v56  ;;  %v5588_v26 = vld [vmem:[%s6806_s30 + $0x8] sm:$0xf]  ;;  %v6167_v3 = vld [vmem:[%s6806_s30 + $0x14] sm:$0xf0] }
 0x7b3   : > { %v5716_v25 = vld [vmem:[%s6806_s30 + $0x108] sm:$0xf]  ;;  %v5737_v9 = vor.u32 %v6201_v45, %v5734_v10  ;;  %v6199_v28 = vld [vmem:[%s6806_s30 + $0x114] sm:$0xf0]  ;;  %v6165_v5 = vld [vmem:[%s6806_s30 + $0xc] sm:$0xf]  ;;  %v5589_v14 = vor.u32 %v6167_v3, %v5588_v26 }
 0x7b4   : > { %4093 = vmatpush.bf16.msrb.mxu0 %v5669_v36  ;;  %v5590_v15 = vld [vmem:[%s6806_s30 + $0x18] sm:$0xf0]  ;;  %v6197_v29 = vld [vmem:[%s6806_s30 + $0x10c] sm:$0xf]  ;;  %v5717_v16 = vor.u32 %v6199_v28, %v5716_v25  ;;  %s5836_s15 = sshll.u32 %s6484_s23, 4  ;;  %s9385_s13 = sld [smem:[#allocation17_spill]] }
 0x7b5   : > { %4107 = vmatpush.bf16.msrb.mxu1 %v5797_v48  ;;  %4121 = vmatpush.bf16.msrb.mxu2 %v5673_v30  ;;  %v5718_v8 = vld [vmem:[%s6806_s30 + $0x118] sm:$0xf0]  ;;  %v5593_v36 = vor.u32 %v6165_v5, %v5590_v15  ;;  %s5835_s30 = sshll.u32 %s6480_s22, 2  ;;  %s4170_s22 = sshll.u32 %s6808_s25, 4  ;;  %s4171_s22 = int_to_ptr.vmem [resolvable:$true] %s4170_s22 }
 0x7b6   : > { %4135 = vmatpush.bf16.msrb.mxu3 %v5801_v37  ;;  %v5721_v48 = vor.u32 %v6197_v29, %v5718_v8  ;;  %s4167_s11 = sadd.s32 %s5836_s15, %s5835_s30  ;;  %s9386_s28 = sand.u32 1, %s6464_s18  }
 0x7b7   : > { %s5837_s27 = sshll.u32 %s4167_s11, 3  ;;  %s4156_s0 = scalar_lea.sflag [#allocation5], %s9386_s28 }
 0x7b8   : > { %4094 = vmatpush.bf16.msrb.mxu0 %v5653_v53 }
 0x7b9   : > { %4108 = vmatpush.bf16.msrb.mxu1 %v5781_v42  ;;  %4122 = vmatpush.bf16.msrb.mxu2 %v5657_v1 }
 0x7ba   : > { %4136 = vmatpush.bf16.msrb.mxu3 %v5785_v47  ;;  %s4169_s24 = scalar_lea.hbm %s9385_s13, %s5837_s27  ;;  %s6406_s15 = scalar_lea.hbm %s9385_s13, 256 }
 0x7bb   : > { %s4172_s23 = sshll.u32 %s4169_s24, 4  ;;  %s4173_s23 = int_to_ptr.hbm [resolvable:$true] %s4172_s23 }
 0x7bc   : > { %4095 = vmatpush.bf16.msrb.mxu0 %v5637_v49  ;;  %s6400_s9 = sshra.s32 %s4173_s23, 4  ;;  %s6401_s9 = int_to_ptr.hbm [resolvable:$true] %s6400_s9 }
 0x7bd   : > { %4109 = vmatpush.bf16.msrb.mxu1 %v5765_v38  ;;  %4123 = vmatpush.bf16.msrb.mxu2 %v5641_v50  ;;  %s6402_s14 = scalar_lea.hbm %s6401_s9, 64  ;;  %p6407_p8 = scmp.lt.s32.totalorder %s6401_s9, %s9385_s13 }
 0x7be   : > { %4137 = vmatpush.bf16.msrb.mxu3 %v5769_v46  ;;  %p6403_p5 = scmp.ne.s32.totalorder %s6401_s9, %s6402_s14  ;;  %p6408_p9 = scmp.lt.s32.totalorder %s6406_s15, %s6402_s14 }
 0x7c0   : > { %4096 = vmatpush.bf16.msrb.mxu0 %v5621_v13  ;;  %p6404_p6 = pnand %p6403_p5, %p6642_p10  ;;  %p6409_p11 = por %p6408_p9, %p6407_p8 }
 0x7c1   : > { %4110 = vmatpush.bf16.msrb.mxu1 %v5749_v52  ;;  %4124 = vmatpush.bf16.msrb.mxu2 %v5625_v2 }
 0x7c2   : > { %4138 = vmatpush.bf16.msrb.mxu3 %v5753_v4  ;;  %p6405_p7 = pneg %p6404_p6 }
 0x7c4   : > { %4097 = vmatpush.bf16.msrb.mxu0 %v5605_v61  ;;  %p6410_p13 = pnand %p6409_p11, %p6405_p7 }
 0x7c5   : > { %4111 = vmatpush.bf16.msrb.mxu1 %v5733_v11  ;;  %4125 = vmatpush.bf16.msrb.mxu2 %v5609_v23 }
 0x7c6   : > { %4139 = vmatpush.bf16.msrb.mxu3 %v5737_v9 }
 0x7c8   : > { %4098 = vmatpush.bf16.msrb.mxu0 %v5589_v14 }
 0x7c9   : > { %4112 = vmatpush.bf16.msrb.mxu1 %v5717_v16  ;;  %4126 = vmatpush.bf16.msrb.mxu2 %v5593_v36 }
 0x7ca   : > { %4140 = vmatpush.bf16.msrb.mxu3 %v5721_v48 }
 0x7cb   : > { %4099 = vmatmul.bf16.vlgmr.msrb.gmra.mxu0 %v9207_v40 }
 0x7cc   : > { %4113 = vmatmul.bf16.vlgmr.msrb.gmra.mxu1 %v9211_v24  ;;  %4127 = vmatmul.bf16.vlgmr.msrb.gmra.mxu2 %v9207_v40 }
 0x7cd   : > { %4141 = vmatmul.bf16.vlgmr.msrb.gmra.mxu3 %v9211_v24 }
 0x828   : > { %v4044_v30 = vpop.f32.mrf.mxu0 }
 0x82b   : > { %v4058_v31 = vpop.f32.mrf.mxu1 }
 0x82c   : > { %v4059_v32 = vadd.f32 %v4058_v31, %v4044_v30 }
 0x82e   : > { %4147 = vst [vmem:[%s6808_s25] sm:$0xff] %v4059_v32 }
 0x82f   : > { %v4072_v34 = vpop.f32.mrf.mxu2 }
 0x830   : > { %v4046_v39 = vpop.f32.mrf.mxu0 }
 0x832   : > { %v4086_v37 = vpop.f32.mrf.mxu3 }
 0x833   : > { %v4087_v6 = vadd.f32 %v4086_v37, %v4072_v34  ;;  %v4060_v41 = vpop.f32.mrf.mxu1 }
 0x834   : > { %v4061_v27 = vadd.f32 %v4060_v41, %v4046_v39 }
 0x835   : > { %4148 = vst [vmem:[%s6808_s25 + $0x8] sm:$0xff] %v4087_v6 }
 0x836   : > { %4151 = vst [vmem:[%s6808_s25 + $0x20] sm:$0xff] %v4061_v27 }
 0x837   : > { %v4074_v43 = vpop.f32.mrf.mxu2 }
 0x83a   : > { %v4088_v40 = vpop.f32.mrf.mxu3 }
 0x83b   : > { %v4089_v53 = vadd.f32 %v4088_v40, %v4074_v43 }
 0x83d   : > { %4152 = vst [vmem:[%s6808_s25 + $0x28] sm:$0xff] %v4089_v53 }
 0x848   : > { %v4100_v24 = vpop.f32.mrf.mxu0 }
 0x849   : > { %v4114_v42 = vpop.f32.mrf.mxu1 }
 0x84a   : > { %v4115_v1 = vadd.f32 %v4114_v42, %v4100_v24 }
 0x84c   : > { %4149 = vst [vmem:[%s6808_s25 + $0x10] sm:$0xff] %v4115_v1 }
 0x84f   : > { %v4128_v33 = vpop.f32.mrf.mxu2 }
 0x850   : > { %v4142_v44 = vpop.f32.mrf.mxu3  ;;  %v4102_v7 = vpop.f32.mrf.mxu0 }
 0x851   : > { %v4143_v47 = vadd.f32 %v4142_v44, %v4128_v33  ;;  %v4116_v17 = vpop.f32.mrf.mxu1 }
 0x852   : > { %v4117_v58 = vadd.f32 %v4116_v17, %v4102_v7 }
 0x853   : > { %4150 = vst [vmem:[%s6808_s25 + $0x18] sm:$0xff] %v4143_v47 }
 0x854   : > { %4153 = vst [vmem:[%s6808_s25 + $0x30] sm:$0xff] %v4117_v58 }
 0x857   : > { %v4130_v59 = vpop.f32.mrf.mxu2 }
 0x858   : > { %v4144_v19 = vpop.f32.mrf.mxu3 }
 0x859   : > { %v4145_v21 = vadd.f32 %v4144_v19, %v4130_v59 }
 0x85b   : > { %4154 = vst [vmem:[%s6808_s25 + $0x38] sm:$0xff] %v4145_v21 }
 0x85c   : > { %6413 = shalt.err (!%p6410_p13)
}
 0x85d   : > { %s6500_s25 = smov 512   ;;  %s6501_s12 = smov 1024  }
 0x85e   : > { %s6502_s16 = smov 32  }
 0x85f   : > { %6228 = dma.vmem_to_hbm [thread:$0]  (%p6642_p10), %s4171_s22, 1024, %s4173_s23, %s4156_s0, %s6500_s25, %s6501_s12, %s6502_s16  }
 0x860 PF: > { %p6234_p0 = scmp.ge.s32.totalorder %s6496_s26, 2  ;;  %s4187_s24 = sand.u32 1, %s6460_s17  }
 0x861   : > { %s4188_s28 = scalar_lea.sflag [#allocation5], %s4187_s24 }
 0x862   : > { %p6231_p1 = pnand %p6234_p0, %p6649_p12 }
 0x864   : > { %p6232_p2 = pneg %p6231_p1 }
 0x866   : > { %6455 = dma.done.wait (%p6232_p2), %s4188_s28, 1024  }
 0x867   : > { %6457 = vsyncadd (%p6232_p2), %s4188_s28, 4294966272  ;;  %s24_s26 = sadd.s32 1, %s6496_s26   ;;  %s9387_s29 = sld [smem:[#allocation11_spill]] }
 0x868   : > { %p21_p3 = scmp.ge.s32.totalorder %s24_s26, 6   ;;  %s9388_s22 = sld [smem:[#allocation7_spill]] }
 0x869   : > { %s9389_s23 = sld [smem:[#allocation8_spill]]  ;;  %s9392_s17 = smov %s6464_s18 }
 0x86a   : > { %s9390_s24 = sld [smem:[#allocation9_spill]]  ;;  %s9393_s18 = smov %s6468_s19 }
 0x86b   : > { %s9391_s25 = sld [smem:[#allocation10_spill]]  ;;  %s9394_s19 = smov %s6647_s8 }
 0x86c   : > { %s9395_s20 = smov %s6476_s21  ;;  %23 = sbr.rel (!%p21_p3) target bundleno = 13 (0xd), region = 134 }
 0x86d   : > { %s9396_s21 = smov %s9387_s29 }
 0x871   :  { %4194 = vsyncpa [#allocation5], 1 }
 0x872   :  { %4196 = vsyncpa [#allocation5 + $0x1], 1 }

</bundles_post_ra>
